<compile_context>
chip_gen: v7x
topology: tpu7x:2x2x1
jax: 0.10.0
libtpu: 0.0.40
codegen_flags: <defaults>
</compile_context>

<pallas_src>
import functools

import jax
import jax.numpy as jnp
from jax import lax
from jax.experimental import pallas as pl
from jax.experimental.pallas import tpu as pltpu

_SUBLANES = 8


def _lstm_kernel_factory(hidden_size, batch_p, t_block, unroll):
    H, Bp, Tb = hidden_size, batch_p, t_block

    def kernel(x_ref, h0_ref, c0_ref,
               w_ih1_ref, w_hh1_ref, b1_ref,
               w2_ref, b2_ref,
               h2seq_ref, hn_ref, cn_ref,
               xproj_s):
        tb = pl.program_id(0)
        cdt = w_hh1_ref.dtype            # MXU operand dtype (f32 or bf16)

        # ---- initialize the VMEM-resident state blocks from (h0, c0) --------
        @pl.when(tb == 0)
        def _():
            hn_ref[...] = h0_ref[...]
            cn_ref[...] = c0_ref[...]

        # ---- hoisted input projection: ONE matmul per time block ------------
        # x_ref is (Tb*Bp, I) time-major rows; bias folded in; staged to VMEM
        # so the serial loop reads one (Bp, 4H) tile-row per step.
        xproj_s[...] = (
            jnp.dot(x_ref[...].astype(cdt), w_ih1_ref[...],
                    preferred_element_type=jnp.float32)
            + b1_ref[...])

        # hoist weight / bias reads out of the loop
        w_hh1 = w_hh1_ref[...]                                # (H, 4H)
        w2 = w2_ref[...]                                      # (2H, 4H)
        b2 = jnp.broadcast_to(b2_ref[...], (Bp, 4 * H))       # (Bp, 4H)

        h1 = hn_ref[0]
        h2 = hn_ref[1]
        c1 = cn_ref[0]
        c2 = cn_ref[1]

        # ---- serial recurrence: only the recurrent matmuls per timestep -----
        def step(t, carry):
            h1, c1, h2, c2 = carry
            row = pl.multiple_of(t * Bp, _SUBLANES)

            # layer-1 cell
            g1 = xproj_s[pl.ds(row, Bp), :] + jnp.dot(
                h1.astype(cdt), w_hh1, preferred_element_type=jnp.float32)
            i1 = jax.nn.sigmoid(g1[:, 0 * H:1 * H])
            f1 = jax.nn.sigmoid(g1[:, 1 * H:2 * H])
            g1g = jnp.tanh(g1[:, 2 * H:3 * H])
            o1 = jax.nn.sigmoid(g1[:, 3 * H:4 * H])
            c1 = f1 * c1 + i1 * g1g
            h1 = o1 * jnp.tanh(c1)

            # layer-2 cell: fused input+recurrent matmul (K = 2H = 256)
            hcat = jnp.concatenate([h1, h2], axis=1).astype(cdt)
            g2 = jnp.dot(hcat, w2, preferred_element_type=jnp.float32) + b2
            i2 = jax.nn.sigmoid(g2[:, 0 * H:1 * H])
            f2 = jax.nn.sigmoid(g2[:, 1 * H:2 * H])
            g2g = jnp.tanh(g2[:, 2 * H:3 * H])
            o2 = jax.nn.sigmoid(g2[:, 3 * H:4 * H])
            c2 = f2 * c2 + i2 * g2g
            h2 = o2 * jnp.tanh(c2)

            # lane-dense (H=128), full-sublane (Bp=8) store -> unmasked vst
            h2seq_ref[pl.ds(row, Bp), :] = h2
            return h1, c1, h2, c2

        h1, c1, h2, c2 = lax.fori_loop(0, Tb, step, (h1, c1, h2, c2),
                                       unroll=unroll)

        # carry state to the next time block; these output blocks stay VMEM
        # resident (constant index_map) and always hold valid data.
        hn_ref[0] = h1
        hn_ref[1] = h2
        cn_ref[0] = c1
        cn_ref[1] = c2

    return kernel


def lstm_model_forward(x_btI, hidden, params, *, t_block=None,
                       mxu_dtype=jnp.float32):
    """x_btI: (B, T, I) float32 (batch_first); hidden: (h0, c0) each (2, B, H).
    Returns (out, (h_n, c_n)) matching the PyTorch forward:
      out: (B*T, I),  h_n/c_n: (2, B, H)."""
    h0, c0 = hidden
    B, T, I = x_btI.shape
    H = params["w_hh1"].shape[1]               # w_hh1 is (4H, H) PyTorch-style

    # ---- pad batch to a full 8-sublane tile --------------------------------
    Bp = max(_SUBLANES, ((B + _SUBLANES - 1) // _SUBLANES) * _SUBLANES)
    pad = Bp - B
    if pad:
        x_p = jnp.pad(x_btI, ((0, pad), (0, 0), (0, 0)))
        h0_p = jnp.pad(h0, ((0, 0), (0, pad), (0, 0)))
        c0_p = jnp.pad(c0, ((0, 0), (0, pad), (0, 0)))
    else:
        x_p, h0_p, c0_p = x_btI, h0, c0

    # ---- time blocking: biggest block whose VMEM footprint is safe ---------
    if t_block is None:
        max_rows = 1024                        # keeps xproj scratch ~2 MiB max
        t_block = max(1, min(T, max_rows // Bp))
        while T % t_block:
            t_block -= 1
    assert T % t_block == 0
    nblk = T // t_block
    unroll = t_block if t_block <= 8 else 4

    # ---- kernel-friendly weight layouts (pre-transposed / fused) -----------
    w_ih1 = params["w_ih1"].T.astype(mxu_dtype)                  # (I, 4H)
    w_hh1 = params["w_hh1"].T.astype(mxu_dtype)                  # (H, 4H)
    b1 = (params["b_ih1"] + params["b_hh1"]).reshape(1, 4 * H).astype(jnp.float32)
    w2 = jnp.concatenate([params["w_ih2"].T, params["w_hh2"].T],
                         axis=0).astype(mxu_dtype)               # (2H, 4H)
    b2 = (params["b_ih2"] + params["b_hh2"]).reshape(1, 4 * H).astype(jnp.float32)

    # time-major flattened input: row t*Bp + b
    x_tm = jnp.transpose(x_p, (1, 0, 2)).reshape(T * Bp, I)

    flops = int(2 * T * Bp * I * 4 * H
                + T * (2 * Bp * H * 4 * H + 2 * Bp * 2 * H * 4 * H))
    transcendentals = int(8 * T * Bp * H)
    bytes_accessed = int(4 * (T * Bp * (I + H) + I * 4 * H + 3 * H * 4 * H
                              + 4 * 2 * Bp * H))
    ce = pl.CostEstimate(flops=flops, transcendentals=transcendentals,
                         bytes_accessed=bytes_accessed)

    full = lambda shape: pl.BlockSpec(shape, lambda tb: tuple(0 for _ in shape))

    h2seq, h_n, c_n = pl.pallas_call(
        _lstm_kernel_factory(H, Bp, t_block, unroll),
        out_shape=(
            jax.ShapeDtypeStruct((T * Bp, H), jnp.float32),   # layer-2 hidden seq
            jax.ShapeDtypeStruct((2, Bp, H), jnp.float32),    # h_n
            jax.ShapeDtypeStruct((2, Bp, H), jnp.float32),    # c_n
        ),
        grid_spec=pltpu.PrefetchScalarGridSpec(
            num_scalar_prefetch=0,
            grid=(nblk,),
            in_specs=[
                pl.BlockSpec((t_block * Bp, I), lambda tb: (tb, 0)),  # x block
                full((2, Bp, H)),                                      # h0
                full((2, Bp, H)),                                      # c0
                full((I, 4 * H)),                                      # w_ih1
                full((H, 4 * H)),                                      # w_hh1
                full((1, 4 * H)),                                      # b1
                full((2 * H, 4 * H)),                                  # w2
                full((1, 4 * H)),                                      # b2
            ],
            out_specs=[
                pl.BlockSpec((t_block * Bp, H), lambda tb: (tb, 0)),   # h2 seq
                full((2, Bp, H)),                                      # h_n
                full((2, Bp, H)),                                      # c_n
            ],
            scratch_shapes=[
                pltpu.VMEM((t_block * Bp, 4 * H), jnp.float32),  # staged xproj
            ],
        ),
        compiler_params=pltpu.CompilerParams(
            dimension_semantics=("arbitrary",)),
        cost_estimate=ce,
    )(x_tm, h0_p, c0_p, w_ih1, w_hh1, b1, w2, b2)

    # ---- FC head in XLA on the lane-dense hidden sequence ------------------
    hp = jax.lax.Precision.HIGHEST
    h2_bth = jnp.transpose(h2seq.reshape(T, Bp, H)[:, :B, :], (1, 0, 2))
    out = (jnp.dot(h2_bth.reshape(B * T, H), params["w_fc"].T, precision=hp)
           + params["b_fc"])
    return out, (h_n[:, :B, :], c_n[:, :B, :])


def _reference_forward(x, hidden, params):
    """Pure-JAX reference mirroring the PyTorch forward (sanity check)."""
    h0, c0 = hidden
    B, T, I = x.shape
    H = params["w_hh1"].shape[1]
    hp = jax.lax.Precision.HIGHEST
    h1, c1, h2, c2 = h0[0], c0[0], h0[1], c0[1]
    outs = []
    for t in range(T):
        xt = x[:, t, :]
        g1 = (jnp.dot(xt, params["w_ih1"].T, precision=hp)
              + jnp.dot(h1, params["w_hh1"].T, precision=hp)
              + params["b_ih1"] + params["b_hh1"])
        i1 = jax.nn.sigmoid(g1[:, :H]); f1 = jax.nn.sigmoid(g1[:, H:2 * H])
        gg1 = jnp.tanh(g1[:, 2 * H:3 * H]); o1 = jax.nn.sigmoid(g1[:, 3 * H:])
        c1 = f1 * c1 + i1 * gg1; h1 = o1 * jnp.tanh(c1)
        g2 = (jnp.dot(h1, params["w_ih2"].T, precision=hp)
              + jnp.dot(h2, params["w_hh2"].T, precision=hp)
              + params["b_ih2"] + params["b_hh2"])
        i2 = jax.nn.sigmoid(g2[:, :H]); f2 = jax.nn.sigmoid(g2[:, H:2 * H])
        gg2 = jnp.tanh(g2[:, 2 * H:3 * H]); o2 = jax.nn.sigmoid(g2[:, 3 * H:])
        c2 = f2 * c2 + i2 * gg2; h2 = o2 * jnp.tanh(c2)
        outs.append(h2)
    out_bth = jnp.stack(outs, axis=1)                      # (B, T, H)
    out = (jnp.dot(out_bth.reshape(B * T, H), params["w_fc"].T, precision=hp)
           + params["b_fc"])
    return out, (jnp.stack([h1, h2]), jnp.stack([c1, c2]))


def _init_params(key, input_size, hidden_size):
    H, I = hidden_size, input_size
    ks = jax.random.split(key, 10)
    scale = 1.0 / jnp.sqrt(jnp.float32(H))
    u = lambda k, shape: jax.random.uniform(k, shape, jnp.float32, -scale, scale)
    return {
        "w_ih1": u(ks[0], (4 * H, I)),
        "w_hh1": u(ks[1], (4 * H, H)),
        "b_ih1": u(ks[2], (4 * H,)),
        "b_hh1": u(ks[3], (4 * H,)),
        "w_ih2": u(ks[4], (4 * H, H)),
        "w_hh2": u(ks[5], (4 * H, H)),
        "b_ih2": u(ks[6], (4 * H,)),
        "b_hh2": u(ks[7], (4 * H,)),
        "w_fc": u(ks[8], (I, H)),
        "b_fc": u(ks[9], (I,)),
    }


if __name__ == "__main__":
    # shapes implied by the module: hidden_size=128, num_layers=2,
    # small batch / sequence / vocab for the demo.
    B, T, I, H = 2, 8, 16, 128
    NUM_LAYERS = 2

    key = jax.random.PRNGKey(0)
    kx, kp = jax.random.split(key)
    x = jax.random.normal(kx, (B, T, I), jnp.float32)      # batch_first input
    params = _init_params(kp, I, H)

    # init_hidden(batch_size): zeros of shape (num_layers, B, H)
    h0 = jnp.zeros((NUM_LAYERS, B, H), jnp.float32)
    c0 = jnp.zeros((NUM_LAYERS, B, H), jnp.float32)

    # f32 MXU-operand path (exact parity with the PyTorch-style reference)
    out, (h_n, c_n) = jax.jit(lstm_model_forward)(x, (h0, c0), params)
    jax.block_until_ready((out, h_n, c_n))

    assert out.shape == (B * T, I)
    assert h_n.shape == (NUM_LAYERS, B, H) and c_n.shape == (NUM_LAYERS, B, H)

    ref_out, (ref_hn, ref_cn) = jax.jit(_reference_forward)(x, (h0, c0), params)
    jax.block_until_ready((ref_out, ref_hn, ref_cn))
    assert float(jnp.max(jnp.abs(out - ref_out))) < 5e-3
    assert float(jnp.max(jnp.abs(h_n - ref_hn))) < 5e-3
    assert float(jnp.max(jnp.abs(c_n - ref_cn))) < 5e-3

    # bf16 MXU-operand path (the v6e/v7x perf option); elementwise stays f32.
    out_bf, (hn_bf, cn_bf) = jax.jit(
        functools.partial(lstm_model_forward, mxu_dtype=jnp.bfloat16)
    )(x, (h0, c0), params)
    jax.block_until_ready((out_bf, hn_bf, cn_bf))
    assert float(jnp.max(jnp.abs(out_bf - ref_out))) < 5e-2
    assert float(jnp.max(jnp.abs(hn_bf - ref_hn))) < 5e-2

    print("KERNEL_OK")
</pallas_src>

<mosaic_0001>
module attributes {stable_mosaic.version = 11 : i64} {
  func.func @kernel(%arg0: i32, %arg1: memref<64x16xf32, #tpu.memory_space<vmem>>, %arg2: memref<2x8x128xf32, #tpu.memory_space<vmem>>, %arg3: memref<2x8x128xf32, #tpu.memory_space<vmem>>, %arg4: memref<16x512xf32, #tpu.memory_space<vmem>>, %arg5: memref<128x512xf32, #tpu.memory_space<vmem>>, %arg6: memref<1x512xf32, #tpu.memory_space<vmem>>, %arg7: memref<256x512xf32, #tpu.memory_space<vmem>>, %arg8: memref<1x512xf32, #tpu.memory_space<vmem>>, %arg9: memref<64x128xf32, #tpu.memory_space<vmem>>, %arg10: memref<2x8x128xf32, #tpu.memory_space<vmem>>, %arg11: memref<2x8x128xf32, #tpu.memory_space<vmem>>, %arg12: memref<64x512xf32, #tpu.memory_space<vmem>>) attributes {dimension_semantics = [#tpu.dimension_semantics<arbitrary>], iteration_bounds = array<i64: 1>, scalar_prefetch = 0 : i64, scratch_operands = 1 : i64, tpu.core_type = #tpu.core_type<tc>, window_params = [{transform_indices = @transform_0, window_bounds = array<i64: 64, 16>}, {pipeline_mode = #tpu.pipeline_mode<synchronous>, transform_indices = @transform_1, window_bounds = array<i64: 2, 8, 128>}, {pipeline_mode = #tpu.pipeline_mode<synchronous>, transform_indices = @transform_2, window_bounds = array<i64: 2, 8, 128>}, {pipeline_mode = #tpu.pipeline_mode<synchronous>, transform_indices = @transform_3, window_bounds = array<i64: 16, 512>}, {pipeline_mode = #tpu.pipeline_mode<synchronous>, transform_indices = @transform_4, window_bounds = array<i64: 128, 512>}, {pipeline_mode = #tpu.pipeline_mode<synchronous>, transform_indices = @transform_5, window_bounds = array<i64: 1, 512>}, {pipeline_mode = #tpu.pipeline_mode<synchronous>, transform_indices = @transform_6, window_bounds = array<i64: 256, 512>}, {pipeline_mode = #tpu.pipeline_mode<synchronous>, transform_indices = @transform_7, window_bounds = array<i64: 1, 512>}, {transform_indices = @transform_8, window_bounds = array<i64: 64, 128>}, {pipeline_mode = #tpu.pipeline_mode<synchronous>, transform_indices = @transform_9, window_bounds = array<i64: 2, 8, 128>}, {pipeline_mode = #tpu.pipeline_mode<synchronous>, transform_indices = @transform_10, window_bounds = array<i64: 2, 8, 128>}]} {
    %c0_i32 = arith.constant 0 : i32
    %0 = arith.cmpi eq, %arg0, %c0_i32 : i32
    %1 = arith.extui %0 : i1 to i32
    %c0_i32_0 = arith.constant 0 : i32
    %2 = arith.cmpi ne, %1, %c0_i32_0 : i32
    scf.if %2 {
      %c0_126 = arith.constant 0 : index
      %c0_127 = arith.constant 0 : index
      %c0_128 = arith.constant 0 : index
      %523 = vector.load %arg2[%c0_126, %c0_127, %c0_128] : memref<2x8x128xf32, #tpu.memory_space<vmem>>, vector<2x8x128xf32>
      %c0_129 = arith.constant 0 : index
      %c0_130 = arith.constant 0 : index
      %c0_131 = arith.constant 0 : index
      %524 = vector.load %arg10[%c0_129, %c0_130, %c0_131] : memref<2x8x128xf32, #tpu.memory_space<vmem>>, vector<2x8x128xf32>
      tpu.vector_store %arg10[%c0_129, %c0_130, %c0_131], %523 {strides = array<i32>} : memref<2x8x128xf32, #tpu.memory_space<vmem>>, vector<2x8x128xf32>,
      %c0_132 = arith.constant 0 : index
      %c0_133 = arith.constant 0 : index
      %c0_134 = arith.constant 0 : index
      %525 = vector.load %arg3[%c0_132, %c0_133, %c0_134] : memref<2x8x128xf32, #tpu.memory_space<vmem>>, vector<2x8x128xf32>
      %c0_135 = arith.constant 0 : index
      %c0_136 = arith.constant 0 : index
      %c0_137 = arith.constant 0 : index
      %526 = vector.load %arg11[%c0_135, %c0_136, %c0_137] : memref<2x8x128xf32, #tpu.memory_space<vmem>>, vector<2x8x128xf32>
      tpu.vector_store %arg11[%c0_135, %c0_136, %c0_137], %525 {strides = array<i32>} : memref<2x8x128xf32, #tpu.memory_space<vmem>>, vector<2x8x128xf32>,
    } else {
    }
    %c0 = arith.constant 0 : index
    %c0_1 = arith.constant 0 : index
    %3 = vector.load %arg1[%c0, %c0_1] : memref<64x16xf32, #tpu.memory_space<vmem>>, vector<64x16xf32>
    %c0_2 = arith.constant 0 : index
    %c0_3 = arith.constant 0 : index
    %4 = vector.load %arg4[%c0_2, %c0_3] : memref<16x512xf32, #tpu.memory_space<vmem>>, vector<16x512xf32>
    %cst = arith.constant dense<0.000000e+00> : vector<64x512xf32>
    %5 = tpu.matmul %3, %4, %cst {dimension_numbers = #tpu.dot_dimension_numbers<[1], [0], [0], [1], [0, 0, 1, 1], [], []>} : vector<64x16xf32>, vector<16x512xf32>, vector<64x512xf32> -> vector<64x512xf32>
    %c0_4 = arith.constant 0 : index
    %c0_5 = arith.constant 0 : index
    %6 = vector.load %arg6[%c0_4, %c0_5] : memref<1x512xf32, #tpu.memory_space<vmem>>, vector<1x512xf32>
    %7 = vector.broadcast %6 : vector<1x512xf32> to vector<64x512xf32>
    %8 = arith.addf %5, %7 : vector<64x512xf32>
    %c0_6 = arith.constant 0 : index
    %c0_7 = arith.constant 0 : index
    %9 = vector.load %arg12[%c0_6, %c0_7] : memref<64x512xf32, #tpu.memory_space<vmem>>, vector<64x512xf32>
    tpu.vector_store %arg12[%c0_6, %c0_7], %8 {strides = array<i32>} : memref<64x512xf32, #tpu.memory_space<vmem>>, vector<64x512xf32>,
    %c0_8 = arith.constant 0 : index
    %c0_9 = arith.constant 0 : index
    %10 = vector.load %arg5[%c0_8, %c0_9] : memref<128x512xf32, #tpu.memory_space<vmem>>, vector<128x512xf32>
    %c0_10 = arith.constant 0 : index
    %c0_11 = arith.constant 0 : index
    %11 = vector.load %arg7[%c0_10, %c0_11] : memref<256x512xf32, #tpu.memory_space<vmem>>, vector<256x512xf32>
    %c0_12 = arith.constant 0 : index
    %c0_13 = arith.constant 0 : index
    %12 = vector.load %arg8[%c0_12, %c0_13] : memref<1x512xf32, #tpu.memory_space<vmem>>, vector<1x512xf32>
    %13 = vector.shape_cast %12 : vector<1x512xf32> to vector<1x512xf32>
    %14 = vector.broadcast %13 : vector<1x512xf32> to vector<8x512xf32>
    %c0_14 = arith.constant 0 : index
    %c0_15 = arith.constant 0 : index
    %c0_16 = arith.constant 0 : index
    %15 = vector.load %arg10[%c0_14, %c0_15, %c0_16] : memref<2x8x128xf32, #tpu.memory_space<vmem>>, vector<1x8x128xf32>
    %16 = vector.shape_cast %15 : vector<1x8x128xf32> to vector<8x128xf32>
    %c1 = arith.constant 1 : index
    %c0_17 = arith.constant 0 : index
    %c0_18 = arith.constant 0 : index
    %17 = vector.load %arg10[%c1, %c0_17, %c0_18] : memref<2x8x128xf32, #tpu.memory_space<vmem>>, vector<1x8x128xf32>
    %18 = vector.shape_cast %17 : vector<1x8x128xf32> to vector<8x128xf32>
    %c0_19 = arith.constant 0 : index
    %c0_20 = arith.constant 0 : index
    %c0_21 = arith.constant 0 : index
    %19 = vector.load %arg11[%c0_19, %c0_20, %c0_21] : memref<2x8x128xf32, #tpu.memory_space<vmem>>, vector<1x8x128xf32>
    %20 = vector.shape_cast %19 : vector<1x8x128xf32> to vector<8x128xf32>
    %c1_22 = arith.constant 1 : index
    %c0_23 = arith.constant 0 : index
    %c0_24 = arith.constant 0 : index
    %21 = vector.load %arg11[%c1_22, %c0_23, %c0_24] : memref<2x8x128xf32, #tpu.memory_space<vmem>>, vector<1x8x128xf32>
    %22 = vector.shape_cast %21 : vector<1x8x128xf32> to vector<8x128xf32>
    %c0_i32_25 = arith.constant 0 : i32
    %c8_i32 = arith.constant 8 : i32
    %23 = arith.muli %c0_i32_25, %c8_i32 : i32
    %24 = tpu.assume_multiple %23, 8 : i32
    %25 = arith.index_cast %24 : i32 to index
    %c0_26 = arith.constant 0 : index
    %26 = vector.load %arg12[%25, %c0_26] : memref<64x512xf32, #tpu.memory_space<vmem>>, vector<8x512xf32>
    %cst_27 = arith.constant dense<0.000000e+00> : vector<8x512xf32>
    %27 = tpu.matmul %16, %10, %cst_27 {dimension_numbers = #tpu.dot_dimension_numbers<[1], [0], [0], [1], [0, 0, 1, 1], [], []>} : vector<8x128xf32>, vector<128x512xf32>, vector<8x512xf32> -> vector<8x512xf32>
    %28 = arith.addf %26, %27 : vector<8x512xf32>
    %29 = vector.extract_strided_slice %28 {offsets = [0, 0], sizes = [8, 128], strides = [1, 1]} : vector<8x512xf32> to vector<8x128xf32>
    %30 = arith.negf %29 : vector<8x128xf32>
    %31 = math.exp %30 : vector<8x128xf32>
    %cst_28 = arith.constant 1.000000e+00 : f32
    %32 = vector.broadcast %cst_28 : f32 to vector<8x128xf32>
    %33 = arith.addf %32, %31 : vector<8x128xf32>
    %34 = arith.divf %32, %33 : vector<8x128xf32>
    %35 = vector.extract_strided_slice %28 {offsets = [0, 128], sizes = [8, 128], strides = [1, 1]} : vector<8x512xf32> to vector<8x128xf32>
    %36 = arith.negf %35 : vector<8x128xf32>
    %37 = math.exp %36 : vector<8x128xf32>
    %cst_29 = arith.constant 1.000000e+00 : f32
    %38 = vector.broadcast %cst_29 : f32 to vector<8x128xf32>
    %39 = arith.addf %38, %37 : vector<8x128xf32>
    %40 = arith.divf %38, %39 : vector<8x128xf32>
    %41 = vector.extract_strided_slice %28 {offsets = [0, 256], sizes = [8, 128], strides = [1, 1]} : vector<8x512xf32> to vector<8x128xf32>
    %42 = math.tanh %41 : vector<8x128xf32>
    %43 = vector.extract_strided_slice %28 {offsets = [0, 384], sizes = [8, 128], strides = [1, 1]} : vector<8x512xf32> to vector<8x128xf32>
    %44 = arith.negf %43 : vector<8x128xf32>
    %45 = math.exp %44 : vector<8x128xf32>
    %cst_30 = arith.constant 1.000000e+00 : f32
    %46 = vector.broadcast %cst_30 : f32 to vector<8x128xf32>
    %47 = arith.addf %46, %45 : vector<8x128xf32>
    %48 = arith.divf %46, %47 : vector<8x128xf32>
    %49 = arith.mulf %40, %20 : vector<8x128xf32>
    %50 = arith.mulf %34, %42 : vector<8x128xf32>
    %51 = arith.addf %49, %50 : vector<8x128xf32>
    %52 = math.tanh %51 : vector<8x128xf32>
    %53 = arith.mulf %48, %52 : vector<8x128xf32>
    %54 = tpu.concatenate %53, %18 in 1 : vector<8x128xf32>, vector<8x128xf32> -> vector<8x256xf32>
    %cst_31 = arith.constant dense<0.000000e+00> : vector<8x512xf32>
    %55 = tpu.matmul %54, %11, %cst_31 {dimension_numbers = #tpu.dot_dimension_numbers<[1], [0], [0], [1], [0, 0, 1, 1], [], []>} : vector<8x256xf32>, vector<256x512xf32>, vector<8x512xf32> -> vector<8x512xf32>
    %56 = arith.addf %55, %14 : vector<8x512xf32>
    %57 = vector.extract_strided_slice %56 {offsets = [0, 0], sizes = [8, 128], strides = [1, 1]} : vector<8x512xf32> to vector<8x128xf32>
    %58 = arith.negf %57 : vector<8x128xf32>
    %59 = math.exp %58 : vector<8x128xf32>
    %cst_32 = arith.constant 1.000000e+00 : f32
    %60 = vector.broadcast %cst_32 : f32 to vector<8x128xf32>
    %61 = arith.addf %60, %59 : vector<8x128xf32>
    %62 = arith.divf %60, %61 : vector<8x128xf32>
    %63 = vector.extract_strided_slice %56 {offsets = [0, 128], sizes = [8, 128], strides = [1, 1]} : vector<8x512xf32> to vector<8x128xf32>
    %64 = arith.negf %63 : vector<8x128xf32>
    %65 = math.exp %64 : vector<8x128xf32>
    %cst_33 = arith.constant 1.000000e+00 : f32
    %66 = vector.broadcast %cst_33 : f32 to vector<8x128xf32>
    %67 = arith.addf %66, %65 : vector<8x128xf32>
    %68 = arith.divf %66, %67 : vector<8x128xf32>
    %69 = vector.extract_strided_slice %56 {offsets = [0, 256], sizes = [8, 128], strides = [1, 1]} : vector<8x512xf32> to vector<8x128xf32>
    %70 = math.tanh %69 : vector<8x128xf32>
    %71 = vector.extract_strided_slice %56 {offsets = [0, 384], sizes = [8, 128], strides = [1, 1]} : vector<8x512xf32> to vector<8x128xf32>
    %72 = arith.negf %71 : vector<8x128xf32>
    %73 = math.exp %72 : vector<8x128xf32>
    %cst_34 = arith.constant 1.000000e+00 : f32
    %74 = vector.broadcast %cst_34 : f32 to vector<8x128xf32>
    %75 = arith.addf %74, %73 : vector<8x128xf32>
    %76 = arith.divf %74, %75 : vector<8x128xf32>
    %77 = arith.mulf %68, %22 : vector<8x128xf32>
    %78 = arith.mulf %62, %70 : vector<8x128xf32>
    %79 = arith.addf %77, %78 : vector<8x128xf32>
    %80 = math.tanh %79 : vector<8x128xf32>
    %81 = arith.mulf %76, %80 : vector<8x128xf32>
    %82 = arith.index_cast %24 : i32 to index
    %c0_35 = arith.constant 0 : index
    %83 = vector.load %arg9[%82, %c0_35] : memref<64x128xf32, #tpu.memory_space<vmem>>, vector<8x128xf32>
    tpu.vector_store %arg9[%82, %c0_35], %81 {strides = array<i32>} : memref<64x128xf32, #tpu.memory_space<vmem>>, vector<8x128xf32>,
    %c1_i32 = arith.constant 1 : i32
    %c8_i32_36 = arith.constant 8 : i32
    %84 = arith.muli %c1_i32, %c8_i32_36 : i32
    %85 = tpu.assume_multiple %84, 8 : i32
    %86 = arith.index_cast %85 : i32 to index
    %c0_37 = arith.constant 0 : index
    %87 = vector.load %arg12[%86, %c0_37] : memref<64x512xf32, #tpu.memory_space<vmem>>, vector<8x512xf32>
    %cst_38 = arith.constant dense<0.000000e+00> : vector<8x512xf32>
    %88 = tpu.matmul %53, %10, %cst_38 {dimension_numbers = #tpu.dot_dimension_numbers<[1], [0], [0], [1], [0, 0, 1, 1], [], []>} : vector<8x128xf32>, vector<128x512xf32>, vector<8x512xf32> -> vector<8x512xf32>
    %89 = arith.addf %87, %88 : vector<8x512xf32>
    %90 = vector.extract_strided_slice %89 {offsets = [0, 0], sizes = [8, 128], strides = [1, 1]} : vector<8x512xf32> to vector<8x128xf32>
    %91 = arith.negf %90 : vector<8x128xf32>
    %92 = math.exp %91 : vector<8x128xf32>
    %cst_39 = arith.constant 1.000000e+00 : f32
    %93 = vector.broadcast %cst_39 : f32 to vector<8x128xf32>
    %94 = arith.addf %93, %92 : vector<8x128xf32>
    %95 = arith.divf %93, %94 : vector<8x128xf32>
    %96 = vector.extract_strided_slice %89 {offsets = [0, 128], sizes = [8, 128], strides = [1, 1]} : vector<8x512xf32> to vector<8x128xf32>
    %97 = arith.negf %96 : vector<8x128xf32>
    %98 = math.exp %97 : vector<8x128xf32>
    %cst_40 = arith.constant 1.000000e+00 : f32
    %99 = vector.broadcast %cst_40 : f32 to vector<8x128xf32>
    %100 = arith.addf %99, %98 : vector<8x128xf32>
    %101 = arith.divf %99, %100 : vector<8x128xf32>
    %102 = vector.extract_strided_slice %89 {offsets = [0, 256], sizes = [8, 128], strides = [1, 1]} : vector<8x512xf32> to vector<8x128xf32>
    %103 = math.tanh %102 : vector<8x128xf32>
    %104 = vector.extract_strided_slice %89 {offsets = [0, 384], sizes = [8, 128], strides = [1, 1]} : vector<8x512xf32> to vector<8x128xf32>
    %105 = arith.negf %104 : vector<8x128xf32>
    %106 = math.exp %105 : vector<8x128xf32>
    %cst_41 = arith.constant 1.000000e+00 : f32
    %107 = vector.broadcast %cst_41 : f32 to vector<8x128xf32>
    %108 = arith.addf %107, %106 : vector<8x128xf32>
    %109 = arith.divf %107, %108 : vector<8x128xf32>
    %110 = arith.mulf %101, %51 : vector<8x128xf32>
    %111 = arith.mulf %95, %103 : vector<8x128xf32>
    %112 = arith.addf %110, %111 : vector<8x128xf32>
    %113 = math.tanh %112 : vector<8x128xf32>
    %114 = arith.mulf %109, %113 : vector<8x128xf32>
    %115 = tpu.concatenate %114, %81 in 1 : vector<8x128xf32>, vector<8x128xf32> -> vector<8x256xf32>
    %cst_42 = arith.constant dense<0.000000e+00> : vector<8x512xf32>
    %116 = tpu.matmul %115, %11, %cst_42 {dimension_numbers = #tpu.dot_dimension_numbers<[1], [0], [0], [1], [0, 0, 1, 1], [], []>} : vector<8x256xf32>, vector<256x512xf32>, vector<8x512xf32> -> vector<8x512xf32>
    %117 = arith.addf %116, %14 : vector<8x512xf32>
    %118 = vector.extract_strided_slice %117 {offsets = [0, 0], sizes = [8, 128], strides = [1, 1]} : vector<8x512xf32> to vector<8x128xf32>
    %119 = arith.negf %118 : vector<8x128xf32>
    %120 = math.exp %119 : vector<8x128xf32>
    %cst_43 = arith.constant 1.000000e+00 : f32
    %121 = vector.broadcast %cst_43 : f32 to vector<8x128xf32>
    %122 = arith.addf %121, %120 : vector<8x128xf32>
    %123 = arith.divf %121, %122 : vector<8x128xf32>
    %124 = vector.extract_strided_slice %117 {offsets = [0, 128], sizes = [8, 128], strides = [1, 1]} : vector<8x512xf32> to vector<8x128xf32>
    %125 = arith.negf %124 : vector<8x128xf32>
    %126 = math.exp %125 : vector<8x128xf32>
    %cst_44 = arith.constant 1.000000e+00 : f32
    %127 = vector.broadcast %cst_44 : f32 to vector<8x128xf32>
    %128 = arith.addf %127, %126 : vector<8x128xf32>
    %129 = arith.divf %127, %128 : vector<8x128xf32>
    %130 = vector.extract_strided_slice %117 {offsets = [0, 256], sizes = [8, 128], strides = [1, 1]} : vector<8x512xf32> to vector<8x128xf32>
    %131 = math.tanh %130 : vector<8x128xf32>
    %132 = vector.extract_strided_slice %117 {offsets = [0, 384], sizes = [8, 128], strides = [1, 1]} : vector<8x512xf32> to vector<8x128xf32>
    %133 = arith.negf %132 : vector<8x128xf32>
    %134 = math.exp %133 : vector<8x128xf32>
    %cst_45 = arith.constant 1.000000e+00 : f32
    %135 = vector.broadcast %cst_45 : f32 to vector<8x128xf32>
    %136 = arith.addf %135, %134 : vector<8x128xf32>
    %137 = arith.divf %135, %136 : vector<8x128xf32>
    %138 = arith.mulf %129, %79 : vector<8x128xf32>
    %139 = arith.mulf %123, %131 : vector<8x128xf32>
    %140 = arith.addf %138, %139 : vector<8x128xf32>
    %141 = math.tanh %140 : vector<8x128xf32>
    %142 = arith.mulf %137, %141 : vector<8x128xf32>
    %143 = arith.index_cast %85 : i32 to index
    %c0_46 = arith.constant 0 : index
    %144 = vector.load %arg9[%143, %c0_46] : memref<64x128xf32, #tpu.memory_space<vmem>>, vector<8x128xf32>
    tpu.vector_store %arg9[%143, %c0_46], %142 {strides = array<i32>} : memref<64x128xf32, #tpu.memory_space<vmem>>, vector<8x128xf32>,
    %c2_i32 = arith.constant 2 : i32
    %c8_i32_47 = arith.constant 8 : i32
    %145 = arith.muli %c2_i32, %c8_i32_47 : i32
    %146 = tpu.assume_multiple %145, 8 : i32
    %147 = arith.index_cast %146 : i32 to index
    %c0_48 = arith.constant 0 : index
    %148 = vector.load %arg12[%147, %c0_48] : memref<64x512xf32, #tpu.memory_space<vmem>>, vector<8x512xf32>
    %cst_49 = arith.constant dense<0.000000e+00> : vector<8x512xf32>
    %149 = tpu.matmul %114, %10, %cst_49 {dimension_numbers = #tpu.dot_dimension_numbers<[1], [0], [0], [1], [0, 0, 1, 1], [], []>} : vector<8x128xf32>, vector<128x512xf32>, vector<8x512xf32> -> vector<8x512xf32>
    %150 = arith.addf %148, %149 : vector<8x512xf32>
    %151 = vector.extract_strided_slice %150 {offsets = [0, 0], sizes = [8, 128], strides = [1, 1]} : vector<8x512xf32> to vector<8x128xf32>
    %152 = arith.negf %151 : vector<8x128xf32>
    %153 = math.exp %152 : vector<8x128xf32>
    %cst_50 = arith.constant 1.000000e+00 : f32
    %154 = vector.broadcast %cst_50 : f32 to vector<8x128xf32>
    %155 = arith.addf %154, %153 : vector<8x128xf32>
    %156 = arith.divf %154, %155 : vector<8x128xf32>
    %157 = vector.extract_strided_slice %150 {offsets = [0, 128], sizes = [8, 128], strides = [1, 1]} : vector<8x512xf32> to vector<8x128xf32>
    %158 = arith.negf %157 : vector<8x128xf32>
    %159 = math.exp %158 : vector<8x128xf32>
    %cst_51 = arith.constant 1.000000e+00 : f32
    %160 = vector.broadcast %cst_51 : f32 to vector<8x128xf32>
    %161 = arith.addf %160, %159 : vector<8x128xf32>
    %162 = arith.divf %160, %161 : vector<8x128xf32>
    %163 = vector.extract_strided_slice %150 {offsets = [0, 256], sizes = [8, 128], strides = [1, 1]} : vector<8x512xf32> to vector<8x128xf32>
    %164 = math.tanh %163 : vector<8x128xf32>
    %165 = vector.extract_strided_slice %150 {offsets = [0, 384], sizes = [8, 128], strides = [1, 1]} : vector<8x512xf32> to vector<8x128xf32>
    %166 = arith.negf %165 : vector<8x128xf32>
    %167 = math.exp %166 : vector<8x128xf32>
    %cst_52 = arith.constant 1.000000e+00 : f32
    %168 = vector.broadcast %cst_52 : f32 to vector<8x128xf32>
    %169 = arith.addf %168, %167 : vector<8x128xf32>
    %170 = arith.divf %168, %169 : vector<8x128xf32>
    %171 = arith.mulf %162, %112 : vector<8x128xf32>
    %172 = arith.mulf %156, %164 : vector<8x128xf32>
    %173 = arith.addf %171, %172 : vector<8x128xf32>
    %174 = math.tanh %173 : vector<8x128xf32>
    %175 = arith.mulf %170, %174 : vector<8x128xf32>
    %176 = tpu.concatenate %175, %142 in 1 : vector<8x128xf32>, vector<8x128xf32> -> vector<8x256xf32>
    %cst_53 = arith.constant dense<0.000000e+00> : vector<8x512xf32>
    %177 = tpu.matmul %176, %11, %cst_53 {dimension_numbers = #tpu.dot_dimension_numbers<[1], [0], [0], [1], [0, 0, 1, 1], [], []>} : vector<8x256xf32>, vector<256x512xf32>, vector<8x512xf32> -> vector<8x512xf32>
    %178 = arith.addf %177, %14 : vector<8x512xf32>
    %179 = vector.extract_strided_slice %178 {offsets = [0, 0], sizes = [8, 128], strides = [1, 1]} : vector<8x512xf32> to vector<8x128xf32>
    %180 = arith.negf %179 : vector<8x128xf32>
    %181 = math.exp %180 : vector<8x128xf32>
    %cst_54 = arith.constant 1.000000e+00 : f32
    %182 = vector.broadcast %cst_54 : f32 to vector<8x128xf32>
    %183 = arith.addf %182, %181 : vector<8x128xf32>
    %184 = arith.divf %182, %183 : vector<8x128xf32>
    %185 = vector.extract_strided_slice %178 {offsets = [0, 128], sizes = [8, 128], strides = [1, 1]} : vector<8x512xf32> to vector<8x128xf32>
    %186 = arith.negf %185 : vector<8x128xf32>
    %187 = math.exp %186 : vector<8x128xf32>
    %cst_55 = arith.constant 1.000000e+00 : f32
    %188 = vector.broadcast %cst_55 : f32 to vector<8x128xf32>
    %189 = arith.addf %188, %187 : vector<8x128xf32>
    %190 = arith.divf %188, %189 : vector<8x128xf32>
    %191 = vector.extract_strided_slice %178 {offsets = [0, 256], sizes = [8, 128], strides = [1, 1]} : vector<8x512xf32> to vector<8x128xf32>
    %192 = math.tanh %191 : vector<8x128xf32>
    %193 = vector.extract_strided_slice %178 {offsets = [0, 384], sizes = [8, 128], strides = [1, 1]} : vector<8x512xf32> to vector<8x128xf32>
    %194 = arith.negf %193 : vector<8x128xf32>
    %195 = math.exp %194 : vector<8x128xf32>
    %cst_56 = arith.constant 1.000000e+00 : f32
    %196 = vector.broadcast %cst_56 : f32 to vector<8x128xf32>
    %197 = arith.addf %196, %195 : vector<8x128xf32>
    %198 = arith.divf %196, %197 : vector<8x128xf32>
    %199 = arith.mulf %190, %140 : vector<8x128xf32>
    %200 = arith.mulf %184, %192 : vector<8x128xf32>
    %201 = arith.addf %199, %200 : vector<8x128xf32>
    %202 = math.tanh %201 : vector<8x128xf32>
    %203 = arith.mulf %198, %202 : vector<8x128xf32>
    %204 = arith.index_cast %146 : i32 to index
    %c0_57 = arith.constant 0 : index
    %205 = vector.load %arg9[%204, %c0_57] : memref<64x128xf32, #tpu.memory_space<vmem>>, vector<8x128xf32>
    tpu.vector_store %arg9[%204, %c0_57], %203 {strides = array<i32>} : memref<64x128xf32, #tpu.memory_space<vmem>>, vector<8x128xf32>,
    %c3_i32 = arith.constant 3 : i32
    %c8_i32_58 = arith.constant 8 : i32
    %206 = arith.muli %c3_i32, %c8_i32_58 : i32
    %207 = tpu.assume_multiple %206, 8 : i32
    %208 = arith.index_cast %207 : i32 to index
    %c0_59 = arith.constant 0 : index
    %209 = vector.load %arg12[%208, %c0_59] : memref<64x512xf32, #tpu.memory_space<vmem>>, vector<8x512xf32>
    %cst_60 = arith.constant dense<0.000000e+00> : vector<8x512xf32>
    %210 = tpu.matmul %175, %10, %cst_60 {dimension_numbers = #tpu.dot_dimension_numbers<[1], [0], [0], [1], [0, 0, 1, 1], [], []>} : vector<8x128xf32>, vector<128x512xf32>, vector<8x512xf32> -> vector<8x512xf32>
    %211 = arith.addf %209, %210 : vector<8x512xf32>
    %212 = vector.extract_strided_slice %211 {offsets = [0, 0], sizes = [8, 128], strides = [1, 1]} : vector<8x512xf32> to vector<8x128xf32>
    %213 = arith.negf %212 : vector<8x128xf32>
    %214 = math.exp %213 : vector<8x128xf32>
    %cst_61 = arith.constant 1.000000e+00 : f32
    %215 = vector.broadcast %cst_61 : f32 to vector<8x128xf32>
    %216 = arith.addf %215, %214 : vector<8x128xf32>
    %217 = arith.divf %215, %216 : vector<8x128xf32>
    %218 = vector.extract_strided_slice %211 {offsets = [0, 128], sizes = [8, 128], strides = [1, 1]} : vector<8x512xf32> to vector<8x128xf32>
    %219 = arith.negf %218 : vector<8x128xf32>
    %220 = math.exp %219 : vector<8x128xf32>
    %cst_62 = arith.constant 1.000000e+00 : f32
    %221 = vector.broadcast %cst_62 : f32 to vector<8x128xf32>
    %222 = arith.addf %221, %220 : vector<8x128xf32>
    %223 = arith.divf %221, %222 : vector<8x128xf32>
    %224 = vector.extract_strided_slice %211 {offsets = [0, 256], sizes = [8, 128], strides = [1, 1]} : vector<8x512xf32> to vector<8x128xf32>
    %225 = math.tanh %224 : vector<8x128xf32>
    %226 = vector.extract_strided_slice %211 {offsets = [0, 384], sizes = [8, 128], strides = [1, 1]} : vector<8x512xf32> to vector<8x128xf32>
    %227 = arith.negf %226 : vector<8x128xf32>
    %228 = math.exp %227 : vector<8x128xf32>
    %cst_63 = arith.constant 1.000000e+00 : f32
    %229 = vector.broadcast %cst_63 : f32 to vector<8x128xf32>
    %230 = arith.addf %229, %228 : vector<8x128xf32>
    %231 = arith.divf %229, %230 : vector<8x128xf32>
    %232 = arith.mulf %223, %173 : vector<8x128xf32>
    %233 = arith.mulf %217, %225 : vector<8x128xf32>
    %234 = arith.addf %232, %233 : vector<8x128xf32>
    %235 = math.tanh %234 : vector<8x128xf32>
    %236 = arith.mulf %231, %235 : vector<8x128xf32>
    %237 = tpu.concatenate %236, %203 in 1 : vector<8x128xf32>, vector<8x128xf32> -> vector<8x256xf32>
    %cst_64 = arith.constant dense<0.000000e+00> : vector<8x512xf32>
    %238 = tpu.matmul %237, %11, %cst_64 {dimension_numbers = #tpu.dot_dimension_numbers<[1], [0], [0], [1], [0, 0, 1, 1], [], []>} : vector<8x256xf32>, vector<256x512xf32>, vector<8x512xf32> -> vector<8x512xf32>
    %239 = arith.addf %238, %14 : vector<8x512xf32>
    %240 = vector.extract_strided_slice %239 {offsets = [0, 0], sizes = [8, 128], strides = [1, 1]} : vector<8x512xf32> to vector<8x128xf32>
    %241 = arith.negf %240 : vector<8x128xf32>
    %242 = math.exp %241 : vector<8x128xf32>
    %cst_65 = arith.constant 1.000000e+00 : f32
    %243 = vector.broadcast %cst_65 : f32 to vector<8x128xf32>
    %244 = arith.addf %243, %242 : vector<8x128xf32>
    %245 = arith.divf %243, %244 : vector<8x128xf32>
    %246 = vector.extract_strided_slice %239 {offsets = [0, 128], sizes = [8, 128], strides = [1, 1]} : vector<8x512xf32> to vector<8x128xf32>
    %247 = arith.negf %246 : vector<8x128xf32>
    %248 = math.exp %247 : vector<8x128xf32>
    %cst_66 = arith.constant 1.000000e+00 : f32
    %249 = vector.broadcast %cst_66 : f32 to vector<8x128xf32>
    %250 = arith.addf %249, %248 : vector<8x128xf32>
    %251 = arith.divf %249, %250 : vector<8x128xf32>
    %252 = vector.extract_strided_slice %239 {offsets = [0, 256], sizes = [8, 128], strides = [1, 1]} : vector<8x512xf32> to vector<8x128xf32>
    %253 = math.tanh %252 : vector<8x128xf32>
    %254 = vector.extract_strided_slice %239 {offsets = [0, 384], sizes = [8, 128], strides = [1, 1]} : vector<8x512xf32> to vector<8x128xf32>
    %255 = arith.negf %254 : vector<8x128xf32>
    %256 = math.exp %255 : vector<8x128xf32>
    %cst_67 = arith.constant 1.000000e+00 : f32
    %257 = vector.broadcast %cst_67 : f32 to vector<8x128xf32>
    %258 = arith.addf %257, %256 : vector<8x128xf32>
    %259 = arith.divf %257, %258 : vector<8x128xf32>
    %260 = arith.mulf %251, %201 : vector<8x128xf32>
    %261 = arith.mulf %245, %253 : vector<8x128xf32>
    %262 = arith.addf %260, %261 : vector<8x128xf32>
    %263 = math.tanh %262 : vector<8x128xf32>
    %264 = arith.mulf %259, %263 : vector<8x128xf32>
    %265 = arith.index_cast %207 : i32 to index
    %c0_68 = arith.constant 0 : index
    %266 = vector.load %arg9[%265, %c0_68] : memref<64x128xf32, #tpu.memory_space<vmem>>, vector<8x128xf32>
    tpu.vector_store %arg9[%265, %c0_68], %264 {strides = array<i32>} : memref<64x128xf32, #tpu.memory_space<vmem>>, vector<8x128xf32>,
    %c4_i32 = arith.constant 4 : i32
    %c8_i32_69 = arith.constant 8 : i32
    %267 = arith.muli %c4_i32, %c8_i32_69 : i32
    %268 = tpu.assume_multiple %267, 8 : i32
    %269 = arith.index_cast %268 : i32 to index
    %c0_70 = arith.constant 0 : index
    %270 = vector.load %arg12[%269, %c0_70] : memref<64x512xf32, #tpu.memory_space<vmem>>, vector<8x512xf32>
    %cst_71 = arith.constant dense<0.000000e+00> : vector<8x512xf32>
    %271 = tpu.matmul %236, %10, %cst_71 {dimension_numbers = #tpu.dot_dimension_numbers<[1], [0], [0], [1], [0, 0, 1, 1], [], []>} : vector<8x128xf32>, vector<128x512xf32>, vector<8x512xf32> -> vector<8x512xf32>
    %272 = arith.addf %270, %271 : vector<8x512xf32>
    %273 = vector.extract_strided_slice %272 {offsets = [0, 0], sizes = [8, 128], strides = [1, 1]} : vector<8x512xf32> to vector<8x128xf32>
    %274 = arith.negf %273 : vector<8x128xf32>
    %275 = math.exp %274 : vector<8x128xf32>
    %cst_72 = arith.constant 1.000000e+00 : f32
    %276 = vector.broadcast %cst_72 : f32 to vector<8x128xf32>
    %277 = arith.addf %276, %275 : vector<8x128xf32>
    %278 = arith.divf %276, %277 : vector<8x128xf32>
    %279 = vector.extract_strided_slice %272 {offsets = [0, 128], sizes = [8, 128], strides = [1, 1]} : vector<8x512xf32> to vector<8x128xf32>
    %280 = arith.negf %279 : vector<8x128xf32>
    %281 = math.exp %280 : vector<8x128xf32>
    %cst_73 = arith.constant 1.000000e+00 : f32
    %282 = vector.broadcast %cst_73 : f32 to vector<8x128xf32>
    %283 = arith.addf %282, %281 : vector<8x128xf32>
    %284 = arith.divf %282, %283 : vector<8x128xf32>
    %285 = vector.extract_strided_slice %272 {offsets = [0, 256], sizes = [8, 128], strides = [1, 1]} : vector<8x512xf32> to vector<8x128xf32>
    %286 = math.tanh %285 : vector<8x128xf32>
    %287 = vector.extract_strided_slice %272 {offsets = [0, 384], sizes = [8, 128], strides = [1, 1]} : vector<8x512xf32> to vector<8x128xf32>
    %288 = arith.negf %287 : vector<8x128xf32>
    %289 = math.exp %288 : vector<8x128xf32>
    %cst_74 = arith.constant 1.000000e+00 : f32
    %290 = vector.broadcast %cst_74 : f32 to vector<8x128xf32>
    %291 = arith.addf %290, %289 : vector<8x128xf32>
    %292 = arith.divf %290, %291 : vector<8x128xf32>
    %293 = arith.mulf %284, %234 : vector<8x128xf32>
    %294 = arith.mulf %278, %286 : vector<8x128xf32>
    %295 = arith.addf %293, %294 : vector<8x128xf32>
    %296 = math.tanh %295 : vector<8x128xf32>
    %297 = arith.mulf %292, %296 : vector<8x128xf32>
    %298 = tpu.concatenate %297, %264 in 1 : vector<8x128xf32>, vector<8x128xf32> -> vector<8x256xf32>
    %cst_75 = arith.constant dense<0.000000e+00> : vector<8x512xf32>
    %299 = tpu.matmul %298, %11, %cst_75 {dimension_numbers = #tpu.dot_dimension_numbers<[1], [0], [0], [1], [0, 0, 1, 1], [], []>} : vector<8x256xf32>, vector<256x512xf32>, vector<8x512xf32> -> vector<8x512xf32>
    %300 = arith.addf %299, %14 : vector<8x512xf32>
    %301 = vector.extract_strided_slice %300 {offsets = [0, 0], sizes = [8, 128], strides = [1, 1]} : vector<8x512xf32> to vector<8x128xf32>
    %302 = arith.negf %301 : vector<8x128xf32>
    %303 = math.exp %302 : vector<8x128xf32>
    %cst_76 = arith.constant 1.000000e+00 : f32
    %304 = vector.broadcast %cst_76 : f32 to vector<8x128xf32>
    %305 = arith.addf %304, %303 : vector<8x128xf32>
    %306 = arith.divf %304, %305 : vector<8x128xf32>
    %307 = vector.extract_strided_slice %300 {offsets = [0, 128], sizes = [8, 128], strides = [1, 1]} : vector<8x512xf32> to vector<8x128xf32>
    %308 = arith.negf %307 : vector<8x128xf32>
    %309 = math.exp %308 : vector<8x128xf32>
    %cst_77 = arith.constant 1.000000e+00 : f32
    %310 = vector.broadcast %cst_77 : f32 to vector<8x128xf32>
    %311 = arith.addf %310, %309 : vector<8x128xf32>
    %312 = arith.divf %310, %311 : vector<8x128xf32>
    %313 = vector.extract_strided_slice %300 {offsets = [0, 256], sizes = [8, 128], strides = [1, 1]} : vector<8x512xf32> to vector<8x128xf32>
    %314 = math.tanh %313 : vector<8x128xf32>
    %315 = vector.extract_strided_slice %300 {offsets = [0, 384], sizes = [8, 128], strides = [1, 1]} : vector<8x512xf32> to vector<8x128xf32>
    %316 = arith.negf %315 : vector<8x128xf32>
    %317 = math.exp %316 : vector<8x128xf32>
    %cst_78 = arith.constant 1.000000e+00 : f32
    %318 = vector.broadcast %cst_78 : f32 to vector<8x128xf32>
    %319 = arith.addf %318, %317 : vector<8x128xf32>
    %320 = arith.divf %318, %319 : vector<8x128xf32>
    %321 = arith.mulf %312, %262 : vector<8x128xf32>
    %322 = arith.mulf %306, %314 : vector<8x128xf32>
    %323 = arith.addf %321, %322 : vector<8x128xf32>
    %324 = math.tanh %323 : vector<8x128xf32>
    %325 = arith.mulf %320, %324 : vector<8x128xf32>
    %326 = arith.index_cast %268 : i32 to index
    %c0_79 = arith.constant 0 : index
    %327 = vector.load %arg9[%326, %c0_79] : memref<64x128xf32, #tpu.memory_space<vmem>>, vector<8x128xf32>
    tpu.vector_store %arg9[%326, %c0_79], %325 {strides = array<i32>} : memref<64x128xf32, #tpu.memory_space<vmem>>, vector<8x128xf32>,
    %c5_i32 = arith.constant 5 : i32
    %c8_i32_80 = arith.constant 8 : i32
    %328 = arith.muli %c5_i32, %c8_i32_80 : i32
    %329 = tpu.assume_multiple %328, 8 : i32
    %330 = arith.index_cast %329 : i32 to index
    %c0_81 = arith.constant 0 : index
    %331 = vector.load %arg12[%330, %c0_81] : memref<64x512xf32, #tpu.memory_space<vmem>>, vector<8x512xf32>
    %cst_82 = arith.constant dense<0.000000e+00> : vector<8x512xf32>
    %332 = tpu.matmul %297, %10, %cst_82 {dimension_numbers = #tpu.dot_dimension_numbers<[1], [0], [0], [1], [0, 0, 1, 1], [], []>} : vector<8x128xf32>, vector<128x512xf32>, vector<8x512xf32> -> vector<8x512xf32>
    %333 = arith.addf %331, %332 : vector<8x512xf32>
    %334 = vector.extract_strided_slice %333 {offsets = [0, 0], sizes = [8, 128], strides = [1, 1]} : vector<8x512xf32> to vector<8x128xf32>
    %335 = arith.negf %334 : vector<8x128xf32>
    %336 = math.exp %335 : vector<8x128xf32>
    %cst_83 = arith.constant 1.000000e+00 : f32
    %337 = vector.broadcast %cst_83 : f32 to vector<8x128xf32>
    %338 = arith.addf %337, %336 : vector<8x128xf32>
    %339 = arith.divf %337, %338 : vector<8x128xf32>
    %340 = vector.extract_strided_slice %333 {offsets = [0, 128], sizes = [8, 128], strides = [1, 1]} : vector<8x512xf32> to vector<8x128xf32>
    %341 = arith.negf %340 : vector<8x128xf32>
    %342 = math.exp %341 : vector<8x128xf32>
    %cst_84 = arith.constant 1.000000e+00 : f32
    %343 = vector.broadcast %cst_84 : f32 to vector<8x128xf32>
    %344 = arith.addf %343, %342 : vector<8x128xf32>
    %345 = arith.divf %343, %344 : vector<8x128xf32>
    %346 = vector.extract_strided_slice %333 {offsets = [0, 256], sizes = [8, 128], strides = [1, 1]} : vector<8x512xf32> to vector<8x128xf32>
    %347 = math.tanh %346 : vector<8x128xf32>
    %348 = vector.extract_strided_slice %333 {offsets = [0, 384], sizes = [8, 128], strides = [1, 1]} : vector<8x512xf32> to vector<8x128xf32>
    %349 = arith.negf %348 : vector<8x128xf32>
    %350 = math.exp %349 : vector<8x128xf32>
    %cst_85 = arith.constant 1.000000e+00 : f32
    %351 = vector.broadcast %cst_85 : f32 to vector<8x128xf32>
    %352 = arith.addf %351, %350 : vector<8x128xf32>
    %353 = arith.divf %351, %352 : vector<8x128xf32>
    %354 = arith.mulf %345, %295 : vector<8x128xf32>
    %355 = arith.mulf %339, %347 : vector<8x128xf32>
    %356 = arith.addf %354, %355 : vector<8x128xf32>
    %357 = math.tanh %356 : vector<8x128xf32>
    %358 = arith.mulf %353, %357 : vector<8x128xf32>
    %359 = tpu.concatenate %358, %325 in 1 : vector<8x128xf32>, vector<8x128xf32> -> vector<8x256xf32>
    %cst_86 = arith.constant dense<0.000000e+00> : vector<8x512xf32>
    %360 = tpu.matmul %359, %11, %cst_86 {dimension_numbers = #tpu.dot_dimension_numbers<[1], [0], [0], [1], [0, 0, 1, 1], [], []>} : vector<8x256xf32>, vector<256x512xf32>, vector<8x512xf32> -> vector<8x512xf32>
    %361 = arith.addf %360, %14 : vector<8x512xf32>
    %362 = vector.extract_strided_slice %361 {offsets = [0, 0], sizes = [8, 128], strides = [1, 1]} : vector<8x512xf32> to vector<8x128xf32>
    %363 = arith.negf %362 : vector<8x128xf32>
    %364 = math.exp %363 : vector<8x128xf32>
    %cst_87 = arith.constant 1.000000e+00 : f32
    %365 = vector.broadcast %cst_87 : f32 to vector<8x128xf32>
    %366 = arith.addf %365, %364 : vector<8x128xf32>
    %367 = arith.divf %365, %366 : vector<8x128xf32>
    %368 = vector.extract_strided_slice %361 {offsets = [0, 128], sizes = [8, 128], strides = [1, 1]} : vector<8x512xf32> to vector<8x128xf32>
    %369 = arith.negf %368 : vector<8x128xf32>
    %370 = math.exp %369 : vector<8x128xf32>
    %cst_88 = arith.constant 1.000000e+00 : f32
    %371 = vector.broadcast %cst_88 : f32 to vector<8x128xf32>
    %372 = arith.addf %371, %370 : vector<8x128xf32>
    %373 = arith.divf %371, %372 : vector<8x128xf32>
    %374 = vector.extract_strided_slice %361 {offsets = [0, 256], sizes = [8, 128], strides = [1, 1]} : vector<8x512xf32> to vector<8x128xf32>
    %375 = math.tanh %374 : vector<8x128xf32>
    %376 = vector.extract_strided_slice %361 {offsets = [0, 384], sizes = [8, 128], strides = [1, 1]} : vector<8x512xf32> to vector<8x128xf32>
    %377 = arith.negf %376 : vector<8x128xf32>
    %378 = math.exp %377 : vector<8x128xf32>
    %cst_89 = arith.constant 1.000000e+00 : f32
    %379 = vector.broadcast %cst_89 : f32 to vector<8x128xf32>
    %380 = arith.addf %379, %378 : vector<8x128xf32>
    %381 = arith.divf %379, %380 : vector<8x128xf32>
    %382 = arith.mulf %373, %323 : vector<8x128xf32>
    %383 = arith.mulf %367, %375 : vector<8x128xf32>
    %384 = arith.addf %382, %383 : vector<8x128xf32>
    %385 = math.tanh %384 : vector<8x128xf32>
    %386 = arith.mulf %381, %385 : vector<8x128xf32>
    %387 = arith.index_cast %329 : i32 to index
    %c0_90 = arith.constant 0 : index
    %388 = vector.load %arg9[%387, %c0_90] : memref<64x128xf32, #tpu.memory_space<vmem>>, vector<8x128xf32>
    tpu.vector_store %arg9[%387, %c0_90], %386 {strides = array<i32>} : memref<64x128xf32, #tpu.memory_space<vmem>>, vector<8x128xf32>,
    %c6_i32 = arith.constant 6 : i32
    %c8_i32_91 = arith.constant 8 : i32
    %389 = arith.muli %c6_i32, %c8_i32_91 : i32
    %390 = tpu.assume_multiple %389, 8 : i32
    %391 = arith.index_cast %390 : i32 to index
    %c0_92 = arith.constant 0 : index
    %392 = vector.load %arg12[%391, %c0_92] : memref<64x512xf32, #tpu.memory_space<vmem>>, vector<8x512xf32>
    %cst_93 = arith.constant dense<0.000000e+00> : vector<8x512xf32>
    %393 = tpu.matmul %358, %10, %cst_93 {dimension_numbers = #tpu.dot_dimension_numbers<[1], [0], [0], [1], [0, 0, 1, 1], [], []>} : vector<8x128xf32>, vector<128x512xf32>, vector<8x512xf32> -> vector<8x512xf32>
    %394 = arith.addf %392, %393 : vector<8x512xf32>
    %395 = vector.extract_strided_slice %394 {offsets = [0, 0], sizes = [8, 128], strides = [1, 1]} : vector<8x512xf32> to vector<8x128xf32>
    %396 = arith.negf %395 : vector<8x128xf32>
    %397 = math.exp %396 : vector<8x128xf32>
    %cst_94 = arith.constant 1.000000e+00 : f32
    %398 = vector.broadcast %cst_94 : f32 to vector<8x128xf32>
    %399 = arith.addf %398, %397 : vector<8x128xf32>
    %400 = arith.divf %398, %399 : vector<8x128xf32>
    %401 = vector.extract_strided_slice %394 {offsets = [0, 128], sizes = [8, 128], strides = [1, 1]} : vector<8x512xf32> to vector<8x128xf32>
    %402 = arith.negf %401 : vector<8x128xf32>
    %403 = math.exp %402 : vector<8x128xf32>
    %cst_95 = arith.constant 1.000000e+00 : f32
    %404 = vector.broadcast %cst_95 : f32 to vector<8x128xf32>
    %405 = arith.addf %404, %403 : vector<8x128xf32>
    %406 = arith.divf %404, %405 : vector<8x128xf32>
    %407 = vector.extract_strided_slice %394 {offsets = [0, 256], sizes = [8, 128], strides = [1, 1]} : vector<8x512xf32> to vector<8x128xf32>
    %408 = math.tanh %407 : vector<8x128xf32>
    %409 = vector.extract_strided_slice %394 {offsets = [0, 384], sizes = [8, 128], strides = [1, 1]} : vector<8x512xf32> to vector<8x128xf32>
    %410 = arith.negf %409 : vector<8x128xf32>
    %411 = math.exp %410 : vector<8x128xf32>
    %cst_96 = arith.constant 1.000000e+00 : f32
    %412 = vector.broadcast %cst_96 : f32 to vector<8x128xf32>
    %413 = arith.addf %412, %411 : vector<8x128xf32>
    %414 = arith.divf %412, %413 : vector<8x128xf32>
    %415 = arith.mulf %406, %356 : vector<8x128xf32>
    %416 = arith.mulf %400, %408 : vector<8x128xf32>
    %417 = arith.addf %415, %416 : vector<8x128xf32>
    %418 = math.tanh %417 : vector<8x128xf32>
    %419 = arith.mulf %414, %418 : vector<8x128xf32>
    %420 = tpu.concatenate %419, %386 in 1 : vector<8x128xf32>, vector<8x128xf32> -> vector<8x256xf32>
    %cst_97 = arith.constant dense<0.000000e+00> : vector<8x512xf32>
    %421 = tpu.matmul %420, %11, %cst_97 {dimension_numbers = #tpu.dot_dimension_numbers<[1], [0], [0], [1], [0, 0, 1, 1], [], []>} : vector<8x256xf32>, vector<256x512xf32>, vector<8x512xf32> -> vector<8x512xf32>
    %422 = arith.addf %421, %14 : vector<8x512xf32>
    %423 = vector.extract_strided_slice %422 {offsets = [0, 0], sizes = [8, 128], strides = [1, 1]} : vector<8x512xf32> to vector<8x128xf32>
    %424 = arith.negf %423 : vector<8x128xf32>
    %425 = math.exp %424 : vector<8x128xf32>
    %cst_98 = arith.constant 1.000000e+00 : f32
    %426 = vector.broadcast %cst_98 : f32 to vector<8x128xf32>
    %427 = arith.addf %426, %425 : vector<8x128xf32>
    %428 = arith.divf %426, %427 : vector<8x128xf32>
    %429 = vector.extract_strided_slice %422 {offsets = [0, 128], sizes = [8, 128], strides = [1, 1]} : vector<8x512xf32> to vector<8x128xf32>
    %430 = arith.negf %429 : vector<8x128xf32>
    %431 = math.exp %430 : vector<8x128xf32>
    %cst_99 = arith.constant 1.000000e+00 : f32
    %432 = vector.broadcast %cst_99 : f32 to vector<8x128xf32>
    %433 = arith.addf %432, %431 : vector<8x128xf32>
    %434 = arith.divf %432, %433 : vector<8x128xf32>
    %435 = vector.extract_strided_slice %422 {offsets = [0, 256], sizes = [8, 128], strides = [1, 1]} : vector<8x512xf32> to vector<8x128xf32>
    %436 = math.tanh %435 : vector<8x128xf32>
    %437 = vector.extract_strided_slice %422 {offsets = [0, 384], sizes = [8, 128], strides = [1, 1]} : vector<8x512xf32> to vector<8x128xf32>
    %438 = arith.negf %437 : vector<8x128xf32>
    %439 = math.exp %438 : vector<8x128xf32>
    %cst_100 = arith.constant 1.000000e+00 : f32
    %440 = vector.broadcast %cst_100 : f32 to vector<8x128xf32>
    %441 = arith.addf %440, %439 : vector<8x128xf32>
    %442 = arith.divf %440, %441 : vector<8x128xf32>
    %443 = arith.mulf %434, %384 : vector<8x128xf32>
    %444 = arith.mulf %428, %436 : vector<8x128xf32>
    %445 = arith.addf %443, %444 : vector<8x128xf32>
    %446 = math.tanh %445 : vector<8x128xf32>
    %447 = arith.mulf %442, %446 : vector<8x128xf32>
    %448 = arith.index_cast %390 : i32 to index
    %c0_101 = arith.constant 0 : index
    %449 = vector.load %arg9[%448, %c0_101] : memref<64x128xf32, #tpu.memory_space<vmem>>, vector<8x128xf32>
    tpu.vector_store %arg9[%448, %c0_101], %447 {strides = array<i32>} : memref<64x128xf32, #tpu.memory_space<vmem>>, vector<8x128xf32>,
    %c7_i32 = arith.constant 7 : i32
    %c8_i32_102 = arith.constant 8 : i32
    %450 = arith.muli %c7_i32, %c8_i32_102 : i32
    %451 = tpu.assume_multiple %450, 8 : i32
    %452 = arith.index_cast %451 : i32 to index
    %c0_103 = arith.constant 0 : index
    %453 = vector.load %arg12[%452, %c0_103] : memref<64x512xf32, #tpu.memory_space<vmem>>, vector<8x512xf32>
    %cst_104 = arith.constant dense<0.000000e+00> : vector<8x512xf32>
    %454 = tpu.matmul %419, %10, %cst_104 {dimension_numbers = #tpu.dot_dimension_numbers<[1], [0], [0], [1], [0, 0, 1, 1], [], []>} : vector<8x128xf32>, vector<128x512xf32>, vector<8x512xf32> -> vector<8x512xf32>
    %455 = arith.addf %453, %454 : vector<8x512xf32>
    %456 = vector.extract_strided_slice %455 {offsets = [0, 0], sizes = [8, 128], strides = [1, 1]} : vector<8x512xf32> to vector<8x128xf32>
    %457 = arith.negf %456 : vector<8x128xf32>
    %458 = math.exp %457 : vector<8x128xf32>
    %cst_105 = arith.constant 1.000000e+00 : f32
    %459 = vector.broadcast %cst_105 : f32 to vector<8x128xf32>
    %460 = arith.addf %459, %458 : vector<8x128xf32>
    %461 = arith.divf %459, %460 : vector<8x128xf32>
    %462 = vector.extract_strided_slice %455 {offsets = [0, 128], sizes = [8, 128], strides = [1, 1]} : vector<8x512xf32> to vector<8x128xf32>
    %463 = arith.negf %462 : vector<8x128xf32>
    %464 = math.exp %463 : vector<8x128xf32>
    %cst_106 = arith.constant 1.000000e+00 : f32
    %465 = vector.broadcast %cst_106 : f32 to vector<8x128xf32>
    %466 = arith.addf %465, %464 : vector<8x128xf32>
    %467 = arith.divf %465, %466 : vector<8x128xf32>
    %468 = vector.extract_strided_slice %455 {offsets = [0, 256], sizes = [8, 128], strides = [1, 1]} : vector<8x512xf32> to vector<8x128xf32>
    %469 = math.tanh %468 : vector<8x128xf32>
    %470 = vector.extract_strided_slice %455 {offsets = [0, 384], sizes = [8, 128], strides = [1, 1]} : vector<8x512xf32> to vector<8x128xf32>
    %471 = arith.negf %470 : vector<8x128xf32>
    %472 = math.exp %471 : vector<8x128xf32>
    %cst_107 = arith.constant 1.000000e+00 : f32
    %473 = vector.broadcast %cst_107 : f32 to vector<8x128xf32>
    %474 = arith.addf %473, %472 : vector<8x128xf32>
    %475 = arith.divf %473, %474 : vector<8x128xf32>
    %476 = arith.mulf %467, %417 : vector<8x128xf32>
    %477 = arith.mulf %461, %469 : vector<8x128xf32>
    %478 = arith.addf %476, %477 : vector<8x128xf32>
    %479 = math.tanh %478 : vector<8x128xf32>
    %480 = arith.mulf %475, %479 : vector<8x128xf32>
    %481 = tpu.concatenate %480, %447 in 1 : vector<8x128xf32>, vector<8x128xf32> -> vector<8x256xf32>
    %cst_108 = arith.constant dense<0.000000e+00> : vector<8x512xf32>
    %482 = tpu.matmul %481, %11, %cst_108 {dimension_numbers = #tpu.dot_dimension_numbers<[1], [0], [0], [1], [0, 0, 1, 1], [], []>} : vector<8x256xf32>, vector<256x512xf32>, vector<8x512xf32> -> vector<8x512xf32>
    %483 = arith.addf %482, %14 : vector<8x512xf32>
    %484 = vector.extract_strided_slice %483 {offsets = [0, 0], sizes = [8, 128], strides = [1, 1]} : vector<8x512xf32> to vector<8x128xf32>
    %485 = arith.negf %484 : vector<8x128xf32>
    %486 = math.exp %485 : vector<8x128xf32>
    %cst_109 = arith.constant 1.000000e+00 : f32
    %487 = vector.broadcast %cst_109 : f32 to vector<8x128xf32>
    %488 = arith.addf %487, %486 : vector<8x128xf32>
    %489 = arith.divf %487, %488 : vector<8x128xf32>
    %490 = vector.extract_strided_slice %483 {offsets = [0, 128], sizes = [8, 128], strides = [1, 1]} : vector<8x512xf32> to vector<8x128xf32>
    %491 = arith.negf %490 : vector<8x128xf32>
    %492 = math.exp %491 : vector<8x128xf32>
    %cst_110 = arith.constant 1.000000e+00 : f32
    %493 = vector.broadcast %cst_110 : f32 to vector<8x128xf32>
    %494 = arith.addf %493, %492 : vector<8x128xf32>
    %495 = arith.divf %493, %494 : vector<8x128xf32>
    %496 = vector.extract_strided_slice %483 {offsets = [0, 256], sizes = [8, 128], strides = [1, 1]} : vector<8x512xf32> to vector<8x128xf32>
    %497 = math.tanh %496 : vector<8x128xf32>
    %498 = vector.extract_strided_slice %483 {offsets = [0, 384], sizes = [8, 128], strides = [1, 1]} : vector<8x512xf32> to vector<8x128xf32>
    %499 = arith.negf %498 : vector<8x128xf32>
    %500 = math.exp %499 : vector<8x128xf32>
    %cst_111 = arith.constant 1.000000e+00 : f32
    %501 = vector.broadcast %cst_111 : f32 to vector<8x128xf32>
    %502 = arith.addf %501, %500 : vector<8x128xf32>
    %503 = arith.divf %501, %502 : vector<8x128xf32>
    %504 = arith.mulf %495, %445 : vector<8x128xf32>
    %505 = arith.mulf %489, %497 : vector<8x128xf32>
    %506 = arith.addf %504, %505 : vector<8x128xf32>
    %507 = math.tanh %506 : vector<8x128xf32>
    %508 = arith.mulf %503, %507 : vector<8x128xf32>
    %509 = arith.index_cast %451 : i32 to index
    %c0_112 = arith.constant 0 : index
    %510 = vector.load %arg9[%509, %c0_112] : memref<64x128xf32, #tpu.memory_space<vmem>>, vector<8x128xf32>
    tpu.vector_store %arg9[%509, %c0_112], %508 {strides = array<i32>} : memref<64x128xf32, #tpu.memory_space<vmem>>, vector<8x128xf32>,
    %c8_i32_113 = arith.constant 8 : i32
    %c0_114 = arith.constant 0 : index
    %c0_115 = arith.constant 0 : index
    %c0_116 = arith.constant 0 : index
    %511 = vector.load %arg10[%c0_114, %c0_115, %c0_116] : memref<2x8x128xf32, #tpu.memory_space<vmem>>, vector<1x8x128xf32>
    %512 = vector.shape_cast %511 : vector<1x8x128xf32> to vector<8x128xf32>
    %513 = vector.shape_cast %480 : vector<8x128xf32> to vector<1x8x128xf32>
    tpu.vector_store %arg10[%c0_114, %c0_115, %c0_116], %513 {strides = array<i32>} : memref<2x8x128xf32, #tpu.memory_space<vmem>>, vector<1x8x128xf32>,
    %c1_117 = arith.constant 1 : index
    %c0_118 = arith.constant 0 : index
    %c0_119 = arith.constant 0 : index
    %514 = vector.load %arg10[%c1_117, %c0_118, %c0_119] : memref<2x8x128xf32, #tpu.memory_space<vmem>>, vector<1x8x128xf32>
    %515 = vector.shape_cast %514 : vector<1x8x128xf32> to vector<8x128xf32>
    %516 = vector.shape_cast %508 : vector<8x128xf32> to vector<1x8x128xf32>
    tpu.vector_store %arg10[%c1_117, %c0_118, %c0_119], %516 {strides = array<i32>} : memref<2x8x128xf32, #tpu.memory_space<vmem>>, vector<1x8x128xf32>,
    %c0_120 = arith.constant 0 : index
    %c0_121 = arith.constant 0 : index
    %c0_122 = arith.constant 0 : index
    %517 = vector.load %arg11[%c0_120, %c0_121, %c0_122] : memref<2x8x128xf32, #tpu.memory_space<vmem>>, vector<1x8x128xf32>
    %518 = vector.shape_cast %517 : vector<1x8x128xf32> to vector<8x128xf32>
    %519 = vector.shape_cast %478 : vector<8x128xf32> to vector<1x8x128xf32>
    tpu.vector_store %arg11[%c0_120, %c0_121, %c0_122], %519 {strides = array<i32>} : memref<2x8x128xf32, #tpu.memory_space<vmem>>, vector<1x8x128xf32>,
    %c1_123 = arith.constant 1 : index
    %c0_124 = arith.constant 0 : index
    %c0_125 = arith.constant 0 : index
    %520 = vector.load %arg11[%c1_123, %c0_124, %c0_125] : memref<2x8x128xf32, #tpu.memory_space<vmem>>, vector<1x8x128xf32>
    %521 = vector.shape_cast %520 : vector<1x8x128xf32> to vector<8x128xf32>
    %522 = vector.shape_cast %506 : vector<8x128xf32> to vector<1x8x128xf32>
    tpu.vector_store %arg11[%c1_123, %c0_124, %c0_125], %522 {strides = array<i32>} : memref<2x8x128xf32, #tpu.memory_space<vmem>>, vector<1x8x128xf32>,
    return
  }
  func.func @transform_0(%arg0: i32) -> (i32, i32) {
    %c0_i32 = arith.constant 0 : i32
    %c0_i32_0 = arith.constant 0 : i32
    return %arg0, %c0_i32 : i32, i32
  }
  func.func @transform_1(%arg0: i32) -> (i32, i32, i32) {
    %c0_i32 = arith.constant 0 : i32
    %c0_i32_0 = arith.constant 0 : i32
    %c0_i32_1 = arith.constant 0 : i32
    %c0_i32_2 = arith.constant 0 : i32
    return %c0_i32, %c0_i32_0, %c0_i32_1 : i32, i32, i32
  }
  func.func @transform_2(%arg0: i32) -> (i32, i32, i32) {
    %c0_i32 = arith.constant 0 : i32
    %c0_i32_0 = arith.constant 0 : i32
    %c0_i32_1 = arith.constant 0 : i32
    %c0_i32_2 = arith.constant 0 : i32
    return %c0_i32, %c0_i32_0, %c0_i32_1 : i32, i32, i32
  }
  func.func @transform_3(%arg0: i32) -> (i32, i32) {
    %c0_i32 = arith.constant 0 : i32
    %c0_i32_0 = arith.constant 0 : i32
    %c0_i32_1 = arith.constant 0 : i32
    return %c0_i32, %c0_i32_0 : i32, i32
  }
  func.func @transform_4(%arg0: i32) -> (i32, i32) {
    %c0_i32 = arith.constant 0 : i32
    %c0_i32_0 = arith.constant 0 : i32
    %c0_i32_1 = arith.constant 0 : i32
    return %c0_i32, %c0_i32_0 : i32, i32
  }
  func.func @transform_5(%arg0: i32) -> (i32, i32) {
    %c0_i32 = arith.constant 0 : i32
    %c0_i32_0 = arith.constant 0 : i32
    %c0_i32_1 = arith.constant 0 : i32
    return %c0_i32, %c0_i32_0 : i32, i32
  }
  func.func @transform_6(%arg0: i32) -> (i32, i32) {
    %c0_i32 = arith.constant 0 : i32
    %c0_i32_0 = arith.constant 0 : i32
    %c0_i32_1 = arith.constant 0 : i32
    return %c0_i32, %c0_i32_0 : i32, i32
  }
  func.func @transform_7(%arg0: i32) -> (i32, i32) {
    %c0_i32 = arith.constant 0 : i32
    %c0_i32_0 = arith.constant 0 : i32
    %c0_i32_1 = arith.constant 0 : i32
    return %c0_i32, %c0_i32_0 : i32, i32
  }
  func.func @transform_8(%arg0: i32) -> (i32, i32) {
    %c0_i32 = arith.constant 0 : i32
    %c0_i32_0 = arith.constant 0 : i32
    return %arg0, %c0_i32 : i32, i32
  }
  func.func @transform_9(%arg0: i32) -> (i32, i32, i32) {
    %c0_i32 = arith.constant 0 : i32
    %c0_i32_0 = arith.constant 0 : i32
    %c0_i32_1 = arith.constant 0 : i32
    %c0_i32_2 = arith.constant 0 : i32
    return %c0_i32, %c0_i32_0, %c0_i32_1 : i32, i32, i32
  }
  func.func @transform_10(%arg0: i32) -> (i32, i32, i32) {
    %c0_i32 = arith.constant 0 : i32
    %c0_i32_0 = arith.constant 0 : i32
    %c0_i32_1 = arith.constant 0 : i32
    %c0_i32_2 = arith.constant 0 : i32
    return %c0_i32, %c0_i32_0, %c0_i32_1 : i32, i32, i32
  }
}

</mosaic_0001>

<bundles_post_ra>
// kernel: lstm_model_forward.1
= control target key start
LH: loop header
LB: loop body
LE: loop exit
PB: predicated region body
PF: predicated region fallthrough
CT: control target
= control target key end

     0   :  { %v7218_v3 = vmov 0.0   ;;  %vm82_vm0 = vcmask 130048   ;;  %s7207_s3 = inlined_call_operand.vmem [shape: f32[16,512], index: 3, kind: input, shape index: {}]   ;;  %s7208_s0 = inlined_call_operand.vmem [shape: f32[64,16], index: 0, kind: input, shape index: {}]   ;;  %s7209_s4 = inlined_call_operand.vmem [shape: f32[128,512], index: 4, kind: input, shape index: {}]   ;;  %s7210_s6 = inlined_call_operand.vmem [shape: f32[256,512], index: 6, kind: input, shape index: {}]   ;;  %s7211_s1 = inlined_call_operand.vmem [shape: f32[2,8,128], index: 1, kind: input, shape index: {}]   ;;  %s7212_s5 = inlined_call_operand.vmem [shape: f32[1,512], index: 5, kind: input, shape index: {}]   ;;  %s7213_s2 = inlined_call_operand.vmem [shape: f32[2,8,128], index: 2, kind: input, shape index: {}]   ;;  %s7214_s7 = inlined_call_operand.vmem [shape: f32[1,512], index: 7, kind: input, shape index: {}]   ;;  %s7215_s8 = inlined_call_operand.vmem [shape: f32[64,128], index: 8, kind: output, shape index: {0}]   ;;  %s7216_s10 = inlined_call_operand.vmem [shape: f32[2,8,128], index: 10, kind: output, shape index: {2}]   ;;  %s7217_s9 = inlined_call_operand.vmem [shape: f32[2,8,128], index: 9, kind: output, shape index: {1}]  }
   0x1   :  { %v53_v0 = vld [vmem:[%s7207_s3 + $0x8] sm:$0xff]  ;;  %v55_v2 = vld [vmem:[%s7207_s3 + $0x18] sm:$0xff]  ;;  %171 = vmatprep.mubr.f32.mxu0 %v7218_v3  ;;  %284 = vmatprep.mubr.f32.mxu1 %v7218_v3  ;;  %v52_v6 = vld [vmem:[%s7207_s3] sm:$0xff] }
   0x2   :  { %v57_v1 = vld [vmem:[%s7207_s3 + $0x28] sm:$0xff]  ;;  %v59_v5 = vld [vmem:[%s7207_s3 + $0x38] sm:$0xff]  ;;  %v56_v7 = vld [vmem:[%s7207_s3 + $0x20] sm:$0xff] }
   0x3   :  { %v3442_v4 = vpack.c.bf16 %v57_v1, %v53_v0  ;;  %v3446_v8 = vpack.c.bf16 %v59_v5, %v55_v2  ;;  %v3444_v9 = vpack.c.bf16 %v56_v7, %v52_v6  ;;  %v54_v10 = vld [vmem:[%s7207_s3 + $0x10] sm:$0xff]  ;;  %v44_v12 = vld [vmem:[%s7208_s0] sm:$0xff]  ;;  %v366_v14 = vld [vmem:[%s7209_s4 + $0x8] sm:$0xff] }
   0x4   :  { %v58_v11 = vld [vmem:[%s7207_s3 + $0x30] sm:$0xff]  ;;  %v370_v15 = vld [vmem:[%s7209_s4 + $0x28] sm:$0xff]  ;;  %v368_v16 = vld [vmem:[%s7209_s4 + $0x18] sm:$0xff] }
   0x5   :  { %3443 = vmatprep.subr.bf16.mxu0 %v3442_v4  ;;  %v3448_v13 = vpack.c.bf16 %v58_v11, %v54_v10  ;;  %3447 = vmatprep.subr.bf16.mxu1 %v3446_v8  ;;  %v5401_v17 = vpack.c.bf16 %v370_v15, %v366_v14  ;;  %v372_v18 = vld [vmem:[%s7209_s4 + $0x38] sm:$0xff]  ;;  %v365_v19 = vld [vmem:[%s7209_s4] sm:$0xff]  ;;  %v367_v23 = vld [vmem:[%s7209_s4 + $0x10] sm:$0xff] }
   0x6   :  { %3445 = vmatpush1.bf16.msra.mxu0 %v3444_v9  ;;  %v369_v20 = vld [vmem:[%s7209_s4 + $0x20] sm:$0xff]  ;;  %v5412_v21 = vpack.c.bf16 %v372_v18, %v368_v16  ;;  %v371_v24 = vld [vmem:[%s7209_s4 + $0x30] sm:$0xff]  ;;  %v374_v26 = vld [vmem:[%s7209_s4 + $0x48] sm:$0xff] }
   0x7   :  { %7354 = vst [vmem:[#allocation3_spill] sm:$0xff] %v5401_v17  ;;  %3449 = vmatpush1.bf16.msra.mxu1 %v3448_v13  ;;  %v5414_v22 = vpack.c.bf16 %v369_v20, %v365_v19  ;;  %3451 = vmatprep.subr.bf16.mxu0 %v5401_v17  ;;  %v5423_v25 = vpack.c.bf16 %v371_v24, %v367_v23  ;;  %v378_v27 = vld [vmem:[%s7209_s4 + $0x68] sm:$0xff]  ;;  %v376_v28 = vld [vmem:[%s7209_s4 + $0x58] sm:$0xff]  ;;  %v373_v31 = vld [vmem:[%s7209_s4 + $0x40] sm:$0xff] }
   0x8   :  { %7355 = vst [vmem:[#allocation4_spill] sm:$0xff] %v5412_v21  ;;  %3483 = vmatprep.subr.bf16.mxu1 %v5412_v21  ;;  %v5436_v29 = vpack.c.bf16 %v378_v27, %v374_v26  ;;  %v380_v30 = vld [vmem:[%s7209_s4 + $0x78] sm:$0xff]  ;;  %v377_v32 = vld [vmem:[%s7209_s4 + $0x60] sm:$0xff]  ;;  %v45_v33 = vld [vmem:[%s7208_s0 + $0x8] sm:$0xff] }
   0x9   :  { %3367 = vmatmul.mubr.msk.f32.vlgmr.msra.gmra.mrb[0].mxu0 %vm82_vm0, %v44_v12  ;;  %v5452_v34 = vpack.c.bf16 %v380_v30, %v376_v28  ;;  %v5454_v35 = vpack.c.bf16 %v377_v32, %v373_v31  ;;  %v375_v36 = vld [vmem:[%s7209_s4 + $0x50] sm:$0xff]  ;;  %v382_v39 = vld [vmem:[%s7209_s4 + $0x88] sm:$0xff]  ;;  %v384_v41 = vld [vmem:[%s7209_s4 + $0x98] sm:$0xff] }
   0xa   :  { %3375 = vmatmul.mubr.msk.f32.vlgmr.msra.gmra.mrb[0].mxu1 %vm82_vm0, %v44_v12  ;;  %3453 = vmatpush1.bf16.msra.mxu0 %v5414_v22  ;;  %v379_v37 = vld [vmem:[%s7209_s4 + $0x70] sm:$0xff]  ;;  %v386_v40 = vld [vmem:[%s7209_s4 + $0xa8] sm:$0xff]  ;;  %v388_v43 = vld [vmem:[%s7209_s4 + $0xb8] sm:$0xff] }
   0xb   :  { %3485 = vmatpush1.bf16.msra.mxu1 %v5423_v25  ;;  %177 = vmatprep.mubr.f32.mxu0 %v7218_v3  ;;  %v5464_v38 = vpack.c.bf16 %v379_v37, %v375_v36  ;;  %v5477_v42 = vpack.c.bf16 %v386_v40, %v382_v39  ;;  %v381_v44 = vld [vmem:[%s7209_s4 + $0x80] sm:$0xff]  ;;  %v46_v46 = vld [vmem:[%s7208_s0 + $0x10] sm:$0xff]  ;;  %v5493_v47 = vpack.c.bf16 %v388_v43, %v384_v41  ;;  %v390_v51 = vld [vmem:[%s7209_s4 + $0xc8] sm:$0xff] }
   0xc   :  { %290 = vmatprep.mubr.f32.mxu1 %v7218_v3  ;;  %3455 = vmatprep.subr.bf16.mxu0 %v5436_v29  ;;  %v385_v45 = vld [vmem:[%s7209_s4 + $0xa0] sm:$0xff]  ;;  %v383_v48 = vld [vmem:[%s7209_s4 + $0x90] sm:$0xff]  ;;  %v394_v52 = vld [vmem:[%s7209_s4 + $0xe8] sm:$0xff] }
   0xd   :  { %3368 = vmatmul.mubr.msk.f32.gmra.mrb[2].mxu0 %vm82_vm0, %v45_v33  ;;  %3487 = vmatprep.subr.bf16.mxu1 %v5452_v34  ;;  %v387_v49 = vld [vmem:[%s7209_s4 + $0xb0] sm:$0xff]  ;;  %v5503_v50 = vpack.c.bf16 %v385_v45, %v381_v44  ;;  %v392_v53 = vld [vmem:[%s7209_s4 + $0xd8] sm:$0xff]  ;;  %v389_v56 = vld [vmem:[%s7209_s4 + $0xc0] sm:$0xff]  ;;  %v5529_v58 = vpack.c.bf16 %v394_v52, %v390_v51 }
   0xe   :  { %3376 = vmatmul.mubr.msk.f32.gmra.mrb[2].mxu1 %vm82_vm0, %v45_v33  ;;  %3457 = vmatpush1.bf16.msra.mxu0 %v5454_v35  ;;  %v5516_v54 = vpack.c.bf16 %v387_v49, %v383_v48  ;;  %v396_v55 = vld [vmem:[%s7209_s4 + $0xf8] sm:$0xff]  ;;  %v393_v57 = vld [vmem:[%s7209_s4 + $0xe0] sm:$0xff]  ;;  %v391_v59 = vld [vmem:[%s7209_s4 + $0xd0] sm:$0xff] }
   0xf   :  { %3489 = vmatpush1.bf16.msra.mxu1 %v5464_v38  ;;  %183 = vmatprep.mubr.f32.mxu0 %v7218_v3  ;;  %v395_v60 = vld [vmem:[%s7209_s4 + $0xf0] sm:$0xff]  ;;  %v5539_v61 = vpack.c.bf16 %v396_v55, %v392_v53  ;;  %v398_v62 = vld [vmem:[%s7209_s4 + $0x108] sm:$0xff]  ;;  %v47_v0 = vld [vmem:[%s7208_s0 + $0x18] sm:$0xff]  ;;  %v5552_v1 = vpack.c.bf16 %v393_v57, %v389_v56 }
  0x10   :  { %296 = vmatprep.mubr.f32.mxu1 %v7218_v3  ;;  %3459 = vmatprep.subr.bf16.mxu0 %v5477_v42  ;;  %v402_v63 = vld [vmem:[%s7209_s4 + $0x128] sm:$0xff]  ;;  %v400_v2 = vld [vmem:[%s7209_s4 + $0x118] sm:$0xff]  ;;  %v5562_v5 = vpack.c.bf16 %v395_v60, %v391_v59  ;;  %v397_v6 = vld [vmem:[%s7209_s4 + $0x100] sm:$0xff] }
  0x11   :  { %3369 = vmatmul.mubr.msk.f32.gmra.mrb[4].mxu0 %vm82_vm0, %v46_v46  ;;  %3491 = vmatprep.subr.bf16.mxu1 %v5493_v47  ;;  %v404_v4 = vld [vmem:[%s7209_s4 + $0x138] sm:$0xff]  ;;  %v401_v7 = vld [vmem:[%s7209_s4 + $0x120] sm:$0xff]  ;;  %v5572_v8 = vpack.c.bf16 %v402_v63, %v398_v62  ;;  %v399_v9 = vld [vmem:[%s7209_s4 + $0x110] sm:$0xff] }
  0x12   :  { %3377 = vmatmul.mubr.msk.f32.gmra.mrb[4].mxu1 %vm82_vm0, %v46_v46  ;;  %3461 = vmatpush1.bf16.msra.mxu0 %v5503_v50  ;;  %v403_v10 = vld [vmem:[%s7209_s4 + $0x130] sm:$0xff]  ;;  %v5582_v11 = vpack.c.bf16 %v404_v4, %v400_v2  ;;  %v406_v12 = vld [vmem:[%s7209_s4 + $0x148] sm:$0xff]  ;;  %v48_v14 = vld [vmem:[%s7208_s0 + $0x20] sm:$0xff]  ;;  %v5595_v15 = vpack.c.bf16 %v401_v7, %v397_v6 }
  0x13   :  { %3493 = vmatpush1.bf16.msra.mxu1 %v5516_v54  ;;  %189 = vmatprep.mubr.f32.mxu0 %v7218_v3  ;;  %v410_v13 = vld [vmem:[%s7209_s4 + $0x168] sm:$0xff]  ;;  %v408_v16 = vld [vmem:[%s7209_s4 + $0x158] sm:$0xff]  ;;  %v5605_v19 = vpack.c.bf16 %v403_v10, %v399_v9  ;;  %v405_v20 = vld [vmem:[%s7209_s4 + $0x140] sm:$0xff] }
  0x14   :  { %302 = vmatprep.mubr.f32.mxu1 %v7218_v3  ;;  %3463 = vmatprep.subr.bf16.mxu0 %v5529_v58  ;;  %v412_v18 = vld [vmem:[%s7209_s4 + $0x178] sm:$0xff]  ;;  %v409_v23 = vld [vmem:[%s7209_s4 + $0x160] sm:$0xff]  ;;  %v5615_v24 = vpack.c.bf16 %v410_v13, %v406_v12  ;;  %v407_v26 = vld [vmem:[%s7209_s4 + $0x150] sm:$0xff] }
  0x15   :  { %3370 = vmatmul.mubr.msk.f32.gmra.mrb[6].mxu0 %vm82_vm0, %v47_v0  ;;  %3495 = vmatprep.subr.bf16.mxu1 %v5539_v61  ;;  %v411_v27 = vld [vmem:[%s7209_s4 + $0x170] sm:$0xff]  ;;  %v5625_v28 = vpack.c.bf16 %v412_v18, %v408_v16  ;;  %v414_v30 = vld [vmem:[%s7209_s4 + $0x188] sm:$0xff]  ;;  %v5638_v33 = vpack.c.bf16 %v409_v23, %v405_v20  ;;  %v416_v36 = vld [vmem:[%s7209_s4 + $0x198] sm:$0xff] }
  0x16   :  { %3378 = vmatmul.mubr.msk.f32.gmra.mrb[6].mxu1 %vm82_vm0, %v47_v0  ;;  %3465 = vmatpush1.bf16.msra.mxu0 %v5552_v1  ;;  %v418_v31 = vld [vmem:[%s7209_s4 + $0x1a8] sm:$0xff]  ;;  %v420_v37 = vld [vmem:[%s7209_s4 + $0x1b8] sm:$0xff]  ;;  %v5648_v39 = vpack.c.bf16 %v411_v27, %v407_v26  ;;  %v413_v40 = vld [vmem:[%s7209_s4 + $0x180] sm:$0xff] }
  0x17   :  { %3497 = vmatpush1.bf16.msra.mxu1 %v5562_v5  ;;  %195 = vmatprep.mubr.f32.mxu0 %v7218_v3  ;;  %v49_v32 = vld [vmem:[%s7208_s0 + $0x28] sm:$0xff]  ;;  %v417_v41 = vld [vmem:[%s7209_s4 + $0x1a0] sm:$0xff]  ;;  %v5658_v43 = vpack.c.bf16 %v418_v31, %v414_v30  ;;  %v415_v44 = vld [vmem:[%s7209_s4 + $0x190] sm:$0xff]  ;;  %v5668_v46 = vpack.c.bf16 %v420_v37, %v416_v36 }
  0x18   :  { %308 = vmatprep.mubr.f32.mxu1 %v7218_v3  ;;  %3467 = vmatprep.subr.bf16.mxu0 %v5572_v8  ;;  %v419_v45 = vld [vmem:[%s7209_s4 + $0x1b0] sm:$0xff]  ;;  %v422_v48 = vld [vmem:[%s7209_s4 + $0x1c8] sm:$0xff]  ;;  %v5681_v52 = vpack.c.bf16 %v417_v41, %v413_v40  ;;  %v424_v53 = vld [vmem:[%s7209_s4 + $0x1d8] sm:$0xff] }
  0x19   :  { %3371 = vmatmul.mubr.msk.f32.gmra.mrb[8].mxu0 %vm82_vm0, %v48_v14  ;;  %3499 = vmatprep.subr.bf16.mxu1 %v5582_v11  ;;  %v426_v49 = vld [vmem:[%s7209_s4 + $0x1e8] sm:$0xff]  ;;  %v50_v51 = vld [vmem:[%s7208_s0 + $0x30] sm:$0xff]  ;;  %v428_v55 = vld [vmem:[%s7209_s4 + $0x1f8] sm:$0xff]  ;;  %v5691_v56 = vpack.c.bf16 %v419_v45, %v415_v44 }
  0x1a   :  { %3379 = vmatmul.mubr.msk.f32.gmra.mrb[8].mxu1 %vm82_vm0, %v48_v14  ;;  %3469 = vmatpush1.bf16.msra.mxu0 %v5595_v15  ;;  %v421_v57 = vld [vmem:[%s7209_s4 + $0x1c0] sm:$0xff]  ;;  %v5701_v60 = vpack.c.bf16 %v426_v49, %v422_v48  ;;  %v423_v62 = vld [vmem:[%s7209_s4 + $0x1d0] sm:$0xff]  ;;  %v5711_v0 = vpack.c.bf16 %v428_v55, %v424_v53  ;;  %v430_v2 = vld [vmem:[%s7210_s6 + $0x8] sm:$0xff] }
  0x1b   :  { %3501 = vmatpush1.bf16.msra.mxu1 %v5605_v19  ;;  %201 = vmatprep.mubr.f32.mxu0 %v7218_v3  ;;  %v425_v59 = vld [vmem:[%s7209_s4 + $0x1e0] sm:$0xff]  ;;  %v427_v63 = vld [vmem:[%s7209_s4 + $0x1f0] sm:$0xff]  ;;  %v434_v4 = vld [vmem:[%s7210_s6 + $0x28] sm:$0xff] }
  0x1c   :  { %314 = vmatprep.mubr.f32.mxu1 %v7218_v3  ;;  %3471 = vmatprep.subr.bf16.mxu0 %v5615_v24  ;;  %v51_v6 = vld [vmem:[%s7208_s0 + $0x38] sm:$0xff]  ;;  %v5724_v7 = vpack.c.bf16 %v425_v59, %v421_v57  ;;  %v5734_v12 = vpack.c.bf16 %v427_v63, %v423_v62  ;;  %v429_v13 = vld [vmem:[%s7210_s6] sm:$0xff]  ;;  %v431_v16 = vld [vmem:[%s7210_s6 + $0x10] sm:$0xff]  ;;  %v5747_v18 = vpack.c.bf16 %v434_v4, %v430_v2 }
  0x1d   :  { %3372 = vmatmul.mubr.msk.f32.gmra.mrb[10].mxu0 %vm82_vm0, %v49_v32  ;;  %3503 = vmatprep.subr.bf16.mxu1 %v5625_v28  ;;  %v432_v9 = vld [vmem:[%s7210_s6 + $0x18] sm:$0xff]  ;;  %v433_v14 = vld [vmem:[%s7210_s6 + $0x20] sm:$0xff]  ;;  %v435_v20 = vld [vmem:[%s7210_s6 + $0x30] sm:$0xff] }
  0x1e   :  { %3380 = vmatmul.mubr.msk.f32.gmra.mrb[10].mxu1 %vm82_vm0, %v49_v32  ;;  %3473 = vmatpush1.bf16.msra.mxu0 %v5638_v33  ;;  %v436_v10 = vld [vmem:[%s7210_s6 + $0x38] sm:$0xff]  ;;  %v438_v23 = vld [vmem:[%s7210_s6 + $0x48] sm:$0xff]  ;;  %v36_v32 = vld [vmem:[%s7211_s1] sm:$0xff]  ;;  %v5773_v36 = vpack.c.bf16 %v433_v14, %v429_v13  ;;  %v5777_v37 = vpack.c.bf16 %v435_v20, %v431_v16 }
  0x1f   :  { %3505 = vmatpush1.bf16.msra.mxu1 %v5648_v39  ;;  %207 = vmatprep.mubr.f32.mxu0 %v7218_v3  ;;  %v442_v26 = vld [vmem:[%s7210_s6 + $0x68] sm:$0xff]  ;;  %v5760_v27 = vpack.c.bf16 %v436_v10, %v432_v9  ;;  %v440_v30 = vld [vmem:[%s7210_s6 + $0x58] sm:$0xff]  ;;  %v437_v41 = vld [vmem:[%s7210_s6 + $0x40] sm:$0xff] }
  0x20   :  { %320 = vmatprep.mubr.f32.mxu1 %v7218_v3  ;;  %3475 = vmatprep.subr.bf16.mxu0 %v5658_v43  ;;  %v444_v31 = vld [vmem:[%s7210_s6 + $0x78] sm:$0xff]  ;;  %v5779_v40 = vpack.c.bf16 %v442_v26, %v438_v23  ;;  %v441_v44 = vld [vmem:[%s7210_s6 + $0x60] sm:$0xff]  ;;  %v439_v45 = vld [vmem:[%s7210_s6 + $0x50] sm:$0xff] }
  0x21   :  { %3373 = vmatmul.mubr.msk.f32.gmra.mrb[12].mxu0 %vm82_vm0, %v50_v51  ;;  %3507 = vmatprep.subr.bf16.mxu1 %v5668_v46  ;;  %v5792_v48 = vpack.c.bf16 %v444_v31, %v440_v30  ;;  %v443_v49 = vld [vmem:[%s7210_s6 + $0x70] sm:$0xff]  ;;  %v450_v53 = vld [vmem:[%s7210_s6 + $0xa8] sm:$0xff]  ;;  %v448_v57 = vld [vmem:[%s7210_s6 + $0x98] sm:$0xff]  ;;  %v5814_v62 = vpack.c.bf16 %v441_v44, %v437_v41 }
  0x22   :  { %3381 = vmatmul.mubr.msk.f32.gmra.mrb[12].mxu1 %vm82_vm0, %v50_v51  ;;  %3477 = vmatpush1.bf16.msra.mxu0 %v5681_v52  ;;  %v446_v51 = vld [vmem:[%s7210_s6 + $0x88] sm:$0xff]  ;;  %v452_v59 = vld [vmem:[%s7210_s6 + $0xb8] sm:$0xff]  ;;  %v5818_v63 = vpack.c.bf16 %v443_v49, %v439_v45  ;;  %v445_v4 = vld [vmem:[%s7210_s6 + $0x80] sm:$0xff] }
  0x23   :  { %3509 = vmatpush1.bf16.msra.mxu1 %v5691_v56  ;;  %213 = vmatprep.mubr.f32.mxu0 %v7218_v3  ;;  %v37_v55 = vld [vmem:[%s7211_s1 + $0x8] sm:$0xff]  ;;  %v5820_v2 = vpack.c.bf16 %v450_v53, %v446_v51  ;;  %v447_v9 = vld [vmem:[%s7210_s6 + $0x90] sm:$0xff]  ;;  %v5832_v10 = vpack.c.bf16 %v452_v59, %v448_v57  ;;  %v456_v20 = vld [vmem:[%s7210_s6 + $0xd8] sm:$0xff] }
  0x24   :  { %326 = vmatprep.mubr.f32.mxu1 %v7218_v3  ;;  %3479 = vmatprep.subr.bf16.mxu0 %v5701_v60  ;;  %v451_v13 = vld [vmem:[%s7210_s6 + $0xb0] sm:$0xff]  ;;  %v454_v14 = vld [vmem:[%s7210_s6 + $0xc8] sm:$0xff]  ;;  %v460_v23 = vld [vmem:[%s7210_s6 + $0xf8] sm:$0xff] }
  0x25   :  { %3374 = vmatmul.mubr.msk.f32.gmra.mrb[14].mxu0 %vm82_vm0, %v51_v6  ;;  %3511 = vmatprep.subr.bf16.mxu1 %v5711_v0  ;;  %7356 = vst [vmem:[#allocation5_spill] sm:$0xff] %v5820_v2  ;;  %7357 = vst [vmem:[#allocation6_spill] sm:$0xff] %v5832_v10  ;;  %v458_v16 = vld [vmem:[%s7210_s6 + $0xe8] sm:$0xff]  ;;  %v5854_v30 = vpack.c.bf16 %v451_v13, %v447_v9  ;;  %v457_v41 = vld [vmem:[%s7210_s6 + $0xe0] sm:$0xff]  ;;  %v5868_v45 = vpack.c.bf16 %v460_v23, %v456_v20 }
  0x26   :  { %3382 = vmatmul.mubr.msk.f32.gmra.mrb[14].mxu1 %vm82_vm0, %v51_v6  ;;  %3481 = vmatpush1.bf16.msra.mxu0 %v5724_v7  ;;  %v449_v6 = vld [vmem:[%s7210_s6 + $0xa0] sm:$0xff]  ;;  %v5856_v31 = vpack.c.bf16 %v458_v16, %v454_v14  ;;  %v455_v44 = vld [vmem:[%s7210_s6 + $0xd0] sm:$0xff]  ;;  %v462_v51 = vld [vmem:[%s7210_s6 + $0x108] sm:$0xff] }
  0x27   :  { %3513 = vmatpush1.bf16.msra.mxu1 %v5734_v12  ;;  %656 = vmatprep.mubr.f32.mxu0 %v7218_v3  ;;  %v5850_v26 = vpack.c.bf16 %v449_v6, %v445_v4  ;;  %7359 = vst [vmem:[#allocation8_spill] sm:$0xff] %v5854_v30  ;;  %7361 = vst [vmem:[#allocation10_spill] sm:$0xff] %v5868_v45  ;;  %v459_v49 = vld [vmem:[%s7210_s6 + $0xf0] sm:$0xff]  ;;  %v466_v53 = vld [vmem:[%s7210_s6 + $0x128] sm:$0xff] }
  0x28   :  { %727 = vmatprep.mubr.f32.mxu1 %v7218_v3  ;;  %3515 = vmatprep.subr.bf16.mxu0 %v5747_v18  ;;  %7360 = vst [vmem:[#allocation9_spill] sm:$0xff] %v5856_v31  ;;  %v468_v57 = vld [vmem:[%s7210_s6 + $0x138] sm:$0xff]  ;;  %v5890_v4 = vpack.c.bf16 %v459_v49, %v455_v44  ;;  %v5892_v6 = vpack.c.bf16 %v466_v53, %v462_v51  ;;  %v461_v9 = vld [vmem:[%s7210_s6 + $0x100] sm:$0xff]  ;;  %v463_v16 = vld [vmem:[%s7210_s6 + $0x110] sm:$0xff] }
  0x29   :  { %657 = vmatmul.mubr.f32.vlgmr.msra.gmra.mrb[0].mxu0 %v36_v32  ;;  %3579 = vmatprep.subr.bf16.mxu1 %v5760_v27  ;;  %7358 = vst [vmem:[#allocation7_spill] sm:$0xff] %v5850_v26  ;;  %v465_v13 = vld [vmem:[%s7210_s6 + $0x120] sm:$0xff]  ;;  %v467_v20 = vld [vmem:[%s7210_s6 + $0x130] sm:$0xff]  ;;  %v474_v44 = vld [vmem:[%s7210_s6 + $0x168] sm:$0xff] }
  0x2a   :  { %728 = vmatmul.mubr.f32.vlgmr.msra.gmra.mrb[0].mxu1 %v36_v32  ;;  %3517 = vmatpush1.bf16.msra.mxu0 %v5773_v36  ;;  %v453_v32 = vld [vmem:[%s7210_s6 + $0xc0] sm:$0xff]  ;;  %7363 = vst [vmem:[#allocation12_spill] sm:$0xff] %v5890_v4  ;;  %7364 = vst [vmem:[#allocation13_spill] sm:$0xff] %v5892_v6  ;;  %v5910_v23 = vpack.c.bf16 %v465_v13, %v461_v9  ;;  %v472_v49 = vld [vmem:[%s7210_s6 + $0x158] sm:$0xff] }
  0x2b   :  { %3581 = vmatpush1.bf16.msra.mxu1 %v5777_v37  ;;  %3519 = vmatprep.subr.bf16.mxu0 %v5779_v40  ;;  %v5886_v59 = vpack.c.bf16 %v457_v41, %v453_v32  ;;  %v5914_v32 = vpack.c.bf16 %v467_v20, %v463_v16  ;;  %v470_v41 = vld [vmem:[%s7210_s6 + $0x148] sm:$0xff]  ;;  %v476_v53 = vld [vmem:[%s7210_s6 + $0x178] sm:$0xff]  ;;  %v471_v16 = vld [vmem:[%s7210_s6 + $0x150] sm:$0xff] }
  0x2c   :  { %3583 = vmatprep.subr.bf16.mxu1 %v5792_v48  ;;  %826 = vmatprep.mubr.f32.mxu0 %v37_v55  ;;  %7366 = vst [vmem:[#allocation15_spill] sm:$0xff] %v5910_v23  ;;  %v5928_v51 = vpack.c.bf16 %v474_v44, %v470_v41  ;;  %v5939_v9 = vpack.c.bf16 %v476_v53, %v472_v49  ;;  %v475_v20 = vld [vmem:[%s7210_s6 + $0x170] sm:$0xff]  ;;  %v478_v44 = vld [vmem:[%s7210_s6 + $0x188] sm:$0xff]  ;;  %v480_v53 = vld [vmem:[%s7210_s6 + $0x198] sm:$0xff] }
  0x2d   :  { %897 = vmatprep.mubr.f32.mxu1 %v37_v55  ;;  %v464_v55 = vld [vmem:[%s7210_s6 + $0x118] sm:$0xff]  ;;  %7362 = vst [vmem:[#allocation11_spill] sm:$0xff] %v5886_v59  ;;  %7367 = vst [vmem:[#allocation16_spill] sm:$0xff] %v5914_v32  ;;  %v5950_v41 = vpack.c.bf16 %v475_v20, %v471_v16  ;;  %v482_v49 = vld [vmem:[%s7210_s6 + $0x1a8] sm:$0xff] }
  0x2e   :  { %3521 = vmatpush1.bf16.msra.mxu0 %v5814_v62  ;;  %v5901_v14 = vpack.c.bf16 %v468_v57, %v464_v55  ;;  %7368 = vst [vmem:[#allocation17_spill] sm:$0xff] %v5928_v51  ;;  %v469_v55 = vld [vmem:[%s7210_s6 + $0x140] sm:$0xff]  ;;  %7369 = vst [vmem:[#allocation18_spill] sm:$0xff] %v5939_v9 }
  0x2f   :  { %3585 = vmatpush1.bf16.msra.mxu1 %v5818_v63  ;;  %3523 = vmatprep.subr.bf16.mxu0 %v5820_v2  ;;  %v473_v57 = vld [vmem:[%s7210_s6 + $0x160] sm:$0xff]  ;;  %7371 = vst [vmem:[#allocation20_spill] sm:$0xff] %v5950_v41 }
  0x30   :  { %3587 = vmatprep.subr.bf16.mxu1 %v5832_v10  ;;  %7365 = vst [vmem:[#allocation14_spill] sm:$0xff] %v5901_v14  ;;  %v5941_v13 = vpack.c.bf16 %v473_v57, %v469_v55  ;;  %v5964_v55 = vpack.c.bf16 %v482_v49, %v478_v44  ;;  %v484_v57 = vld [vmem:[%s7210_s6 + $0x1b8] sm:$0xff]  ;;  %v477_v16 = vld [vmem:[%s7210_s6 + $0x180] sm:$0xff]  ;;  %v479_v44 = vld [vmem:[%s7210_s6 + $0x190] sm:$0xff] }
  0x31   :  { %v481_v20 = vld [vmem:[%s7210_s6 + $0x1a0] sm:$0xff]  ;;  %v5975_v3 = vpack.c.bf16 %v484_v57, %v480_v53  ;;  %v483_v49 = vld [vmem:[%s7210_s6 + $0x1b0] sm:$0xff]  ;;  %v486_v53 = vld [vmem:[%s7210_s6 + $0x1c8] sm:$0xff] }
  0x32   :  { %3525 = vmatpush1.bf16.msra.mxu0 %v5850_v26  ;;  %7370 = vst [vmem:[#allocation19_spill] sm:$0xff] %v5941_v13  ;;  %7372 = vst [vmem:[#allocation21_spill] sm:$0xff] %v5964_v55  ;;  %v490_v57 = vld [vmem:[%s7210_s6 + $0x1e8] sm:$0xff] }
  0x33   :  { %3589 = vmatpush1.bf16.msra.mxu1 %v5854_v30  ;;  %3527 = vmatprep.subr.bf16.mxu0 %v5856_v31  ;;  %7373 = vst [vmem:[#allocation22_spill] sm:$0xff] %v5975_v3 }
  0x34   :  { %3591 = vmatprep.subr.bf16.mxu1 %v5868_v45 }
  0x36   :  { %3529 = vmatpush1.bf16.msra.mxu0 %v5886_v59 }
  0x37   :  { %3593 = vmatpush1.bf16.msra.mxu1 %v5890_v4  ;;  %3531 = vmatprep.subr.bf16.mxu0 %v5892_v6 }
  0x38   :  { %3595 = vmatprep.subr.bf16.mxu1 %v5901_v14 }
  0x3a   :  { %3533 = vmatpush1.bf16.msra.mxu0 %v5910_v23 }
  0x3b   :  { %3597 = vmatpush1.bf16.msra.mxu1 %v5914_v32  ;;  %3535 = vmatprep.subr.bf16.mxu0 %v5928_v51 }
  0x3c   :  { %3599 = vmatprep.subr.bf16.mxu1 %v5939_v9  ;;  %v542_v9 = vld [vmem:[%s7210_s6 + $0x388] sm:$0xff] }
  0x3e   :  { %3537 = vmatpush1.bf16.msra.mxu0 %v5941_v13  ;;  %v5977_v13 = vpack.c.bf16 %v481_v20, %v477_v16  ;;  %v488_v16 = vld [vmem:[%s7210_s6 + $0x1d8] sm:$0xff]  ;;  %v6000_v20 = vpack.c.bf16 %v490_v57, %v486_v53  ;;  %v487_v53 = vld [vmem:[%s7210_s6 + $0x1d0] sm:$0xff] }
  0x3f   :  { %3601 = vmatpush1.bf16.msra.mxu1 %v5950_v41  ;;  %3539 = vmatprep.subr.bf16.mxu0 %v5964_v55  ;;  %v5986_v41 = vpack.c.bf16 %v483_v49, %v479_v44  ;;  %v492_v44 = vld [vmem:[%s7210_s6 + $0x1f8] sm:$0xff]  ;;  %v485_v49 = vld [vmem:[%s7210_s6 + $0x1c0] sm:$0xff]  ;;  %v491_v57 = vld [vmem:[%s7210_s6 + $0x1f0] sm:$0xff] }
  0x40   :  { %7374 = vst [vmem:[#allocation23_spill] sm:$0xff] %v5977_v13  ;;  %3603 = vmatprep.subr.bf16.mxu1 %v5975_v3  ;;  %7376 = vst [vmem:[#allocation25_spill] sm:$0xff] %v6000_v20  ;;  %v6011_v3 = vpack.c.bf16 %v492_v44, %v488_v16  ;;  %v498_v16 = vld [vmem:[%s7210_s6 + $0x228] sm:$0xff]  ;;  %v496_v44 = vld [vmem:[%s7210_s6 + $0x218] sm:$0xff] }
  0x41   :  { %7375 = vst [vmem:[#allocation24_spill] sm:$0xff] %v5986_v41 }
  0x42   :  { %3541 = vmatpush1.bf16.msra.mxu0 %v5977_v13  ;;  %v489_v13 = vld [vmem:[%s7210_s6 + $0x1e0] sm:$0xff]  ;;  %7377 = vst [vmem:[#allocation26_spill] sm:$0xff] %v6011_v3 }
  0x43   :  { %3605 = vmatpush1.bf16.msra.mxu1 %v5986_v41  ;;  %v6013_v55 = vpack.c.bf16 %v489_v13, %v485_v49  ;;  %3543 = vmatprep.subr.bf16.mxu0 %v6000_v20  ;;  %v6022_v41 = vpack.c.bf16 %v491_v57, %v487_v53  ;;  %v494_v13 = vld [vmem:[%s7210_s6 + $0x208] sm:$0xff]  ;;  %v500_v53 = vld [vmem:[%s7210_s6 + $0x238] sm:$0xff]  ;;  %v493_v57 = vld [vmem:[%s7210_s6 + $0x200] sm:$0xff] }
  0x44   :  { %3607 = vmatprep.subr.bf16.mxu1 %v6011_v3  ;;  %v6036_v49 = vpack.c.bf16 %v498_v16, %v494_v13  ;;  %v6047_v3 = vpack.c.bf16 %v500_v53, %v496_v44  ;;  %v495_v13 = vld [vmem:[%s7210_s6 + $0x210] sm:$0xff]  ;;  %v506_v44 = vld [vmem:[%s7210_s6 + $0x268] sm:$0xff]  ;;  %v504_v53 = vld [vmem:[%s7210_s6 + $0x258] sm:$0xff] }
  0x45   :  { %7378 = vst [vmem:[#allocation27_spill] sm:$0xff] %v6013_v55  ;;  %7379 = vst [vmem:[#allocation28_spill] sm:$0xff] %v6022_v41  ;;  %v499_v16 = vld [vmem:[%s7210_s6 + $0x230] sm:$0xff] }
  0x46   :  { %3545 = vmatpush1.bf16.msra.mxu0 %v6013_v55  ;;  %7380 = vst [vmem:[#allocation29_spill] sm:$0xff] %v6036_v49  ;;  %v497_v55 = vld [vmem:[%s7210_s6 + $0x220] sm:$0xff]  ;;  %7381 = vst [vmem:[#allocation30_spill] sm:$0xff] %v6047_v3 }
  0x47   :  { %3609 = vmatpush1.bf16.msra.mxu1 %v6022_v41  ;;  %v6049_v20 = vpack.c.bf16 %v497_v55, %v493_v57  ;;  %3547 = vmatprep.subr.bf16.mxu0 %v6036_v49  ;;  %v6058_v41 = vpack.c.bf16 %v499_v16, %v495_v13  ;;  %v502_v55 = vld [vmem:[%s7210_s6 + $0x248] sm:$0xff]  ;;  %v508_v13 = vld [vmem:[%s7210_s6 + $0x278] sm:$0xff]  ;;  %v501_v16 = vld [vmem:[%s7210_s6 + $0x240] sm:$0xff] }
  0x48   :  { %3611 = vmatprep.subr.bf16.mxu1 %v6047_v3  ;;  %v6072_v57 = vpack.c.bf16 %v506_v44, %v502_v55  ;;  %v6083_v3 = vpack.c.bf16 %v508_v13, %v504_v53  ;;  %v503_v55 = vld [vmem:[%s7210_s6 + $0x250] sm:$0xff]  ;;  %v514_v53 = vld [vmem:[%s7210_s6 + $0x2a8] sm:$0xff]  ;;  %v512_v13 = vld [vmem:[%s7210_s6 + $0x298] sm:$0xff] }
  0x49   :  { %7382 = vst [vmem:[#allocation31_spill] sm:$0xff] %v6049_v20  ;;  %7383 = vst [vmem:[#allocation32_spill] sm:$0xff] %v6058_v41  ;;  %v507_v44 = vld [vmem:[%s7210_s6 + $0x270] sm:$0xff] }
  0x4a   :  { %3549 = vmatpush1.bf16.msra.mxu0 %v6049_v20  ;;  %7384 = vst [vmem:[#allocation33_spill] sm:$0xff] %v6072_v57  ;;  %v505_v20 = vld [vmem:[%s7210_s6 + $0x260] sm:$0xff]  ;;  %7385 = vst [vmem:[#allocation34_spill] sm:$0xff] %v6083_v3 }
  0x4b   :  { %3613 = vmatpush1.bf16.msra.mxu1 %v6058_v41  ;;  %v6085_v49 = vpack.c.bf16 %v505_v20, %v501_v16  ;;  %3551 = vmatprep.subr.bf16.mxu0 %v6072_v57  ;;  %v6094_v41 = vpack.c.bf16 %v507_v44, %v503_v55  ;;  %v510_v20 = vld [vmem:[%s7210_s6 + $0x288] sm:$0xff]  ;;  %v516_v55 = vld [vmem:[%s7210_s6 + $0x2b8] sm:$0xff]  ;;  %v509_v44 = vld [vmem:[%s7210_s6 + $0x280] sm:$0xff] }
  0x4c   :  { %3615 = vmatprep.subr.bf16.mxu1 %v6083_v3  ;;  %v6108_v16 = vpack.c.bf16 %v514_v53, %v510_v20  ;;  %v6119_v3 = vpack.c.bf16 %v516_v55, %v512_v13  ;;  %v511_v20 = vld [vmem:[%s7210_s6 + $0x290] sm:$0xff]  ;;  %v522_v13 = vld [vmem:[%s7210_s6 + $0x2e8] sm:$0xff]  ;;  %v520_v55 = vld [vmem:[%s7210_s6 + $0x2d8] sm:$0xff] }
  0x4d   :  { %7386 = vst [vmem:[#allocation35_spill] sm:$0xff] %v6085_v49  ;;  %7387 = vst [vmem:[#allocation36_spill] sm:$0xff] %v6094_v41  ;;  %v515_v53 = vld [vmem:[%s7210_s6 + $0x2b0] sm:$0xff] }
  0x4e   :  { %3553 = vmatpush1.bf16.msra.mxu0 %v6085_v49  ;;  %7388 = vst [vmem:[#allocation37_spill] sm:$0xff] %v6108_v16  ;;  %v513_v49 = vld [vmem:[%s7210_s6 + $0x2a0] sm:$0xff]  ;;  %7389 = vst [vmem:[#allocation38_spill] sm:$0xff] %v6119_v3 }
  0x4f   :  { %3617 = vmatpush1.bf16.msra.mxu1 %v6094_v41  ;;  %v6121_v57 = vpack.c.bf16 %v513_v49, %v509_v44  ;;  %3555 = vmatprep.subr.bf16.mxu0 %v6108_v16  ;;  %v6130_v41 = vpack.c.bf16 %v515_v53, %v511_v20  ;;  %v518_v49 = vld [vmem:[%s7210_s6 + $0x2c8] sm:$0xff]  ;;  %v524_v20 = vld [vmem:[%s7210_s6 + $0x2f8] sm:$0xff]  ;;  %v517_v53 = vld [vmem:[%s7210_s6 + $0x2c0] sm:$0xff] }
  0x50   :  { %3619 = vmatprep.subr.bf16.mxu1 %v6119_v3  ;;  %v6144_v44 = vpack.c.bf16 %v522_v13, %v518_v49  ;;  %v6155_v3 = vpack.c.bf16 %v524_v20, %v520_v55  ;;  %v519_v49 = vld [vmem:[%s7210_s6 + $0x2d0] sm:$0xff]  ;;  %v530_v55 = vld [vmem:[%s7210_s6 + $0x328] sm:$0xff]  ;;  %v528_v20 = vld [vmem:[%s7210_s6 + $0x318] sm:$0xff] }
  0x51   :  { %7390 = vst [vmem:[#allocation39_spill] sm:$0xff] %v6121_v57  ;;  %7391 = vst [vmem:[#allocation40_spill] sm:$0xff] %v6130_v41  ;;  %v523_v13 = vld [vmem:[%s7210_s6 + $0x2f0] sm:$0xff] }
  0x52   :  { %3557 = vmatpush1.bf16.msra.mxu0 %v6121_v57  ;;  %7392 = vst [vmem:[#allocation41_spill] sm:$0xff] %v6144_v44  ;;  %v521_v57 = vld [vmem:[%s7210_s6 + $0x2e0] sm:$0xff]  ;;  %7393 = vst [vmem:[#allocation42_spill] sm:$0xff] %v6155_v3 }
  0x53   :  { %3621 = vmatpush1.bf16.msra.mxu1 %v6130_v41  ;;  %v6157_v16 = vpack.c.bf16 %v521_v57, %v517_v53  ;;  %3559 = vmatprep.subr.bf16.mxu0 %v6144_v44  ;;  %v6166_v41 = vpack.c.bf16 %v523_v13, %v519_v49  ;;  %v526_v57 = vld [vmem:[%s7210_s6 + $0x308] sm:$0xff]  ;;  %v532_v49 = vld [vmem:[%s7210_s6 + $0x338] sm:$0xff]  ;;  %v525_v13 = vld [vmem:[%s7210_s6 + $0x300] sm:$0xff] }
  0x54   :  { %3623 = vmatprep.subr.bf16.mxu1 %v6155_v3  ;;  %v6180_v53 = vpack.c.bf16 %v530_v55, %v526_v57  ;;  %v6191_v3 = vpack.c.bf16 %v532_v49, %v528_v20  ;;  %v527_v57 = vld [vmem:[%s7210_s6 + $0x310] sm:$0xff]  ;;  %v538_v20 = vld [vmem:[%s7210_s6 + $0x368] sm:$0xff]  ;;  %v536_v49 = vld [vmem:[%s7210_s6 + $0x358] sm:$0xff] }
  0x55   :  { %7394 = vst [vmem:[#allocation43_spill] sm:$0xff] %v6157_v16  ;;  %7395 = vst [vmem:[#allocation44_spill] sm:$0xff] %v6166_v41  ;;  %v531_v55 = vld [vmem:[%s7210_s6 + $0x330] sm:$0xff] }
  0x56   :  { %3561 = vmatpush1.bf16.msra.mxu0 %v6157_v16  ;;  %7396 = vst [vmem:[#allocation45_spill] sm:$0xff] %v6180_v53  ;;  %v529_v16 = vld [vmem:[%s7210_s6 + $0x320] sm:$0xff]  ;;  %7397 = vst [vmem:[#allocation46_spill] sm:$0xff] %v6191_v3 }
  0x57   :  { %3625 = vmatpush1.bf16.msra.mxu1 %v6166_v41  ;;  %v6193_v44 = vpack.c.bf16 %v529_v16, %v525_v13  ;;  %3563 = vmatprep.subr.bf16.mxu0 %v6180_v53  ;;  %v6204_v41 = vpack.c.bf16 %v531_v55, %v527_v57  ;;  %v534_v16 = vld [vmem:[%s7210_s6 + $0x348] sm:$0xff]  ;;  %v533_v57 = vld [vmem:[%s7210_s6 + $0x340] sm:$0xff] }
  0x58   :  { %3627 = vmatprep.subr.bf16.mxu1 %v6191_v3  ;;  %v6215_v13 = vpack.c.bf16 %v538_v20, %v534_v16  ;;  %v537_v55 = vld [vmem:[%s7210_s6 + $0x360] sm:$0xff]  ;;  %v535_v16 = vld [vmem:[%s7210_s6 + $0x350] sm:$0xff] }
  0x59   :  { %7398 = vst [vmem:[#allocation47_spill] sm:$0xff] %v6193_v44  ;;  %7399 = vst [vmem:[#allocation48_spill] sm:$0xff] %v6204_v41  ;;  %v6229_v53 = vpack.c.bf16 %v537_v55, %v533_v57  ;;  %v539_v20 = vld [vmem:[%s7210_s6 + $0x370] sm:$0xff]  ;;  %v548_v57 = vld [vmem:[%s7210_s6 + $0x3b8] sm:$0xff] }
  0x5a   :  { %3565 = vmatpush1.bf16.msra.mxu0 %v6193_v44  ;;  %7400 = vst [vmem:[#allocation49_spill] sm:$0xff] %v6215_v13  ;;  %v540_v44 = vld [vmem:[%s7210_s6 + $0x378] sm:$0xff]  ;;  %v6241_v51 = vpack.c.bf16 %v539_v20, %v535_v16  ;;  %v541_v20 = vld [vmem:[%s7210_s6 + $0x380] sm:$0xff] }
  0x5b   :  { %3629 = vmatpush1.bf16.msra.mxu1 %v6204_v41  ;;  %v6227_v3 = vpack.c.bf16 %v540_v44, %v536_v49  ;;  %7402 = vst [vmem:[#allocation51_spill] sm:$0xff] %v6229_v53  ;;  %3567 = vmatprep.subr.bf16.mxu0 %v6215_v13  ;;  %v546_v44 = vld [vmem:[%s7210_s6 + $0x3a8] sm:$0xff]  ;;  %v544_v49 = vld [vmem:[%s7210_s6 + $0x398] sm:$0xff]  ;;  %v545_v13 = vld [vmem:[%s7210_s6 + $0x3a0] sm:$0xff] }
  0x5c   :  { %7403 = vst [vmem:[#allocation52_spill] sm:$0xff] %v6241_v51  ;;  %v6254_v55 = vpack.c.bf16 %v546_v44, %v542_v9  ;;  %v6256_v16 = vpack.c.bf16 %v548_v57, %v544_v49  ;;  %v543_v41 = vld [vmem:[%s7210_s6 + $0x390] sm:$0xff]  ;;  %v6267_v32 = vpack.c.bf16 %v545_v13, %v541_v20  ;;  %v550_v44 = vld [vmem:[%s7210_s6 + $0x3c8] sm:$0xff]  ;;  %v552_v20 = vld [vmem:[%s7210_s6 + $0x3d8] sm:$0xff] }
  0x5d   :  { %7401 = vst [vmem:[#allocation50_spill] sm:$0xff] %v6227_v3  ;;  %3631 = vmatprep.subr.bf16.mxu1 %v6227_v3  ;;  %v547_v9 = vld [vmem:[%s7210_s6 + $0x3b0] sm:$0xff]  ;;  %v554_v49 = vld [vmem:[%s7210_s6 + $0x3e8] sm:$0xff]  ;;  %v549_v3 = vld [vmem:[%s7210_s6 + $0x3c0] sm:$0xff] }
  0x5e   :  { %3569 = vmatpush1.bf16.msra.mxu0 %v6229_v53  ;;  %7404 = vst [vmem:[#allocation53_spill] sm:$0xff] %v6254_v55  ;;  %7405 = vst [vmem:[#allocation54_spill] sm:$0xff] %v6256_v16  ;;  %v6280_v57 = vpack.c.bf16 %v547_v9, %v543_v41  ;;  %v6282_v13 = vpack.c.bf16 %v554_v49, %v550_v44  ;;  %v556_v53 = vld [vmem:[%s7210_s6 + $0x3f8] sm:$0xff]  ;;  %v553_v41 = vld [vmem:[%s7210_s6 + $0x3e0] sm:$0xff] }
  0x5f   :  { %7406 = vst [vmem:[#allocation55_spill] sm:$0xff] %v6267_v32  ;;  %3633 = vmatpush1.bf16.msra.mxu1 %v6241_v51  ;;  %3571 = vmatprep.subr.bf16.mxu0 %v6254_v55  ;;  %v6294_v51 = vpack.c.bf16 %v556_v53, %v552_v20  ;;  %v551_v9 = vld [vmem:[%s7210_s6 + $0x3d0] sm:$0xff]  ;;  %v6306_v49 = vpack.c.bf16 %v553_v41, %v549_v3  ;;  %v62_v20 = vlaneseq  ;;  %v60_v41 = vld [vmem:[%s7212_s5] sm:$0xf] }
  0x60   :  { %7407 = vst [vmem:[#allocation56_spill] sm:$0xff] %v6280_v57  ;;  %7408 = vst [vmem:[#allocation57_spill] sm:$0xff] %v6282_v13  ;;  %3635 = vmatprep.subr.bf16.mxu1 %v6256_v16  ;;  %v555_v44 = vld [vmem:[%s7210_s6 + $0x3f0] sm:$0xff] }
  0x61   :  { %7409 = vst [vmem:[#allocation58_spill] sm:$0xff] %v6294_v51  ;;  %7410 = vst [vmem:[#allocation59_spill] sm:$0xff] %v6306_v49  ;;  %v6310_v53 = vpack.c.bf16 %v555_v44, %v551_v9 }
  0x62   :  { %3573 = vmatpush1.bf16.msra.mxu0 %v6267_v32  ;;  %v6317_v32 = vshrl.u32 %v62_v20, 7 }
  0x63   :  { %3575 = vmatprep.subr.bf16.mxu0 %v6282_v13  ;;  %3637 = vmatpush1.bf16.msra.mxu1 %v6280_v57  ;;  %7411 = vst [vmem:[#allocation60_spill] sm:$0xff] %v6310_v53 }
  0x64   :  { %3639 = vmatprep.subr.bf16.mxu1 %v6294_v51  ;;  %v7314_v3 = vsub.s32 0, %v6317_v32  ;;  %v7315_v9 = vsub.s32 1, %v6317_v32  ;;  %v7322_v20 = vsub.s32 3, %v6317_v32 }
  0x66   :  { %3577 = vmatpush1.bf16.msra.mxu0 %v6306_v49  ;;  %v6326_v44 = vrot.slane %v60_v41, %v7314_v3  ;;  %v6337_v3 = vrot.slane %v60_v41, %v7322_v20 }
  0x67   :  { %3643 = vmatprep.subr.bf16.mxu0 %v5401_v17  ;;  %3641 = vmatpush1.bf16.msra.mxu1 %v6310_v53  ;;  %v6330_v17 = vrot.slane %v60_v41, %v7315_v9  ;;  %v7325_v9 = vsub.s32 2, %v6317_v32 }
  0x68   :  { %3675 = vmatprep.subr.bf16.mxu1 %v5412_v21  ;;  %7412 = vst [vmem:[#allocation61_spill] sm:$0xff] %v6326_v44  ;;  %7414 = vst [vmem:[#allocation63_spill] sm:$0xff] %v6337_v3 }
  0x69   :  { %7413 = vst [vmem:[#allocation62_spill] sm:$0xff] %v6330_v17 }
  0xfc   :  { %v658_v21 = vpop.f32.mrb[0].mxu0 }
  0xfd   :  { %v4986_v53 = vadd.f32 %v658_v21, %v6326_v44  ;;  %v729_v49 = vpop.f32.mrb[0].mxu1  ;;  %v660_v51 = vpop.f32.mrb[1].mxu0  ;;  %v6343_v21 = vrot.slane %v60_v41, %v7325_v9 }
  0xfe   :  { %v4987_v13 = vadd.f32 %v660_v51, %v6330_v17  ;;  %v731_v57 = vpop.f32.mrb[1].mxu1 }
  0xff   :  { %v3385_v16 = vmul.f32 -1.442695, %v4986_v53  ;;  %v5003_v23 = vadd.f32 %v731_v57, %v6337_v3  ;;  %v5002_v51 = vadd.f32 %v729_v49, %v6343_v21 }
 0x100   :  { %v3386_v55 = vmul.f32 -1.442695, %v4987_v13 }
 0x101   :  { %5051 = vpow2.f32 %v3385_v16  ;;  %v3387_v44 = vmul.f32 -1.442695, %v5003_v23 }
 0x102   :  { %5053 = vpow2.f32 %v3386_v55  ;;  %v40_v55 = vld [vmem:[%s7213_s2] sm:$0xff] }
 0x103   :  { %5055 = vpow2.f32 %v3387_v44 }
 0x104   :  { %5057 = vtanh.f32 %v5002_v51 }
 0x10b   :  { %v5052_v17 = vpop.eup %5051 }
 0x10c   :  { %v5054_v53 = vpop.eup %5053  ;;  %v741_v13 = vadd.f32 1.0, %v5052_v17 }
 0x10d   :  { %v747_v20 = vadd.f32 1.0, %v5054_v53  ;;  %v5056_v16 = vpop.eup %5055  ;;  %v7419_v53 = vld [vmem:[#allocation17_spill] sm:$0xff] }
 0x10e   :  { %5059 = vrcp.f32 %v741_v13  ;;  %v5058_v14 = vpop.eup %5057  ;;  %v754_v23 = vadd.f32 1.0, %v5056_v16  ;;  %v7420_v13 = vld [vmem:[#allocation18_spill] sm:$0xff]  ;;  %v7421_v16 = vld [vmem:[#allocation19_spill] sm:$0xff] }
 0x10f   :  { %5061 = vrcp.f32 %v747_v20  ;;  %v7418_v20 = vld [vmem:[#allocation16_spill] sm:$0xff] }
 0x110   :  { %5063 = vrcp.f32 %v754_v23  ;;  %v7425_v23 = vld [vmem:[#allocation23_spill] sm:$0xff] }
 0x118   :  { %v5060_v57 = vpop.eup %5059 }
 0x119   :  { %v5062_v41 = vpop.eup %5061  ;;  %v758_v9 = vmul.f32 %v5060_v57, %v5058_v14  ;;  %v7415_v14 = vmov 0.0   ;;  %v7423_v57 = vld [vmem:[#allocation21_spill] sm:$0xff] }
 0x11a   :  { %v757_v3 = vmul.f32 %v5062_v41, %v40_v55  ;;  %v5064_v17 = vpop.eup %5063  ;;  %v7422_v55 = vld [vmem:[#allocation20_spill] sm:$0xff]  ;;  %v7424_v41 = vld [vmem:[#allocation22_spill] sm:$0xff] }
 0x11c   :  { %v6349_v49 = vadd.f32 %v758_v9, %v757_v3  ;;  %v7416_v3 = vld [vmem:[#allocation14_spill] sm:$0xff]  ;;  %v7417_v9 = vld [vmem:[#allocation15_spill] sm:$0xff] }
 0x11e   :  { %5065 = vtanh.f32 %v6349_v49 }
 0x128   :  { %v5066_v44 = vpop.eup %5065 }
 0x129   :  { %v761_v51 = vmul.f32 %v5066_v44, %v5064_v17  ;;  %v7426_v17 = vld [vmem:[#allocation24_spill] sm:$0xff]  ;;  %v7427_v44 = vld [vmem:[#allocation25_spill] sm:$0xff] }
 0x12b   :  { %827 = vmatmul.mubr.f32.vlgmr.msra.gmra.mrb[16].mxu0 %v761_v51  ;;  %898 = vmatmul.mubr.f32.vlgmr.msra.gmra.mrb[16].mxu1 %v761_v51 }
 0x12c   :  { %3645 = vmatpush1.bf16.msra.mxu0 %v5414_v22  ;;  %3677 = vmatpush1.bf16.msra.mxu1 %v5423_v25 }
 0x12d   :  { %3647 = vmatprep.subr.bf16.mxu0 %v5436_v29  ;;  %3679 = vmatprep.subr.bf16.mxu1 %v5452_v34 }
 0x12e   :  { %1000 = vmatprep.mubr.f32.mxu0 %v7415_v14  ;;  %1071 = vmatprep.mubr.f32.mxu1 %v7415_v14 }
 0x130   :  { %3649 = vmatpush1.bf16.msra.mxu0 %v5454_v35  ;;  %3681 = vmatpush1.bf16.msra.mxu1 %v5464_v38 }
 0x131   :  { %3651 = vmatprep.subr.bf16.mxu0 %v5477_v42  ;;  %3683 = vmatprep.subr.bf16.mxu1 %v5493_v47 }
 0x134   :  { %3653 = vmatpush1.bf16.msra.mxu0 %v5503_v50  ;;  %3685 = vmatpush1.bf16.msra.mxu1 %v5516_v54 }
 0x135   :  { %3655 = vmatprep.subr.bf16.mxu0 %v5529_v58  ;;  %3687 = vmatprep.subr.bf16.mxu1 %v5539_v61 }
 0x138   :  { %3657 = vmatpush1.bf16.msra.mxu0 %v5552_v1  ;;  %3689 = vmatpush1.bf16.msra.mxu1 %v5562_v5 }
 0x139   :  { %3659 = vmatprep.subr.bf16.mxu0 %v5572_v8  ;;  %3691 = vmatprep.subr.bf16.mxu1 %v5582_v11 }
 0x13c   :  { %3661 = vmatpush1.bf16.msra.mxu0 %v5595_v15  ;;  %3693 = vmatpush1.bf16.msra.mxu1 %v5605_v19 }
 0x13d   :  { %3663 = vmatprep.subr.bf16.mxu0 %v5615_v24  ;;  %3695 = vmatprep.subr.bf16.mxu1 %v5625_v28 }
 0x140   :  { %3665 = vmatpush1.bf16.msra.mxu0 %v5638_v33  ;;  %3697 = vmatpush1.bf16.msra.mxu1 %v5648_v39 }
 0x141   :  { %3667 = vmatprep.subr.bf16.mxu0 %v5658_v43  ;;  %3699 = vmatprep.subr.bf16.mxu1 %v5668_v46 }
 0x144   :  { %3669 = vmatpush1.bf16.msra.mxu0 %v5681_v52  ;;  %3701 = vmatpush1.bf16.msra.mxu1 %v5691_v56 }
 0x145   :  { %3671 = vmatprep.subr.bf16.mxu0 %v5701_v60  ;;  %3703 = vmatprep.subr.bf16.mxu1 %v5711_v0 }
 0x148   :  { %3673 = vmatpush1.bf16.msra.mxu0 %v5724_v7  ;;  %3705 = vmatpush1.bf16.msra.mxu1 %v5734_v12 }
 0x149   :  { %3707 = vmatprep.subr.bf16.mxu0 %v5747_v18  ;;  %3771 = vmatprep.subr.bf16.mxu1 %v5760_v27 }
 0x14b   :  { %1001 = vmatmul.mubr.f32.vlgmr.msra.gmra.mrb[2].mxu0 %v761_v51  ;;  %1072 = vmatmul.mubr.f32.vlgmr.msra.gmra.mrb[2].mxu1 %v761_v51  ;;  %v7428_v51 = vld [vmem:[#allocation26_spill] sm:$0xff] }
 0x14c   :  { %3709 = vmatpush1.bf16.msra.mxu0 %v5773_v36  ;;  %3773 = vmatpush1.bf16.msra.mxu1 %v5777_v37 }
 0x14d   :  { %3711 = vmatprep.subr.bf16.mxu0 %v5779_v40  ;;  %3775 = vmatprep.subr.bf16.mxu1 %v5792_v48 }
 0x150   :  { %3713 = vmatpush1.bf16.msra.mxu0 %v5814_v62  ;;  %3777 = vmatpush1.bf16.msra.mxu1 %v5818_v63 }
 0x151   :  { %3715 = vmatprep.subr.bf16.mxu0 %v5820_v2  ;;  %3779 = vmatprep.subr.bf16.mxu1 %v5832_v10 }
 0x154   :  { %3717 = vmatpush1.bf16.msra.mxu0 %v5850_v26  ;;  %3781 = vmatpush1.bf16.msra.mxu1 %v5854_v30 }
 0x155   :  { %3719 = vmatprep.subr.bf16.mxu0 %v5856_v31  ;;  %3783 = vmatprep.subr.bf16.mxu1 %v5868_v45 }
 0x158   :  { %3721 = vmatpush1.bf16.msra.mxu0 %v5886_v59  ;;  %3785 = vmatpush1.bf16.msra.mxu1 %v5890_v4 }
 0x159   :  { %3723 = vmatprep.subr.bf16.mxu0 %v5892_v6  ;;  %3787 = vmatprep.subr.bf16.mxu1 %v7416_v3  ;;  %v7469_v6 = vsub.s32 3, %v6317_v32 }
 0x15c   :  { %3725 = vmatpush1.bf16.msra.mxu0 %v7417_v9  ;;  %3789 = vmatpush1.bf16.msra.mxu1 %v7418_v20  ;;  %v7429_v20 = vld [vmem:[#allocation27_spill] sm:$0xff] }
 0x15d   :  { %3727 = vmatprep.subr.bf16.mxu0 %v7419_v53  ;;  %3791 = vmatprep.subr.bf16.mxu1 %v7420_v13  ;;  %v7430_v53 = vld [vmem:[#allocation28_spill] sm:$0xff]  ;;  %v7431_v13 = vld [vmem:[#allocation29_spill] sm:$0xff] }
 0x160   :  { %3729 = vmatpush1.bf16.msra.mxu0 %v7421_v16  ;;  %3793 = vmatpush1.bf16.msra.mxu1 %v7422_v55  ;;  %v7432_v16 = vld [vmem:[#allocation30_spill] sm:$0xff]  ;;  %v7433_v55 = vld [vmem:[#allocation31_spill] sm:$0xff] }
 0x161   :  { %3731 = vmatprep.subr.bf16.mxu0 %v7423_v57  ;;  %3795 = vmatprep.subr.bf16.mxu1 %v7424_v41  ;;  %v7434_v57 = vld [vmem:[#allocation32_spill] sm:$0xff]  ;;  %v7435_v41 = vld [vmem:[#allocation33_spill] sm:$0xff] }
 0x164   :  { %3733 = vmatpush1.bf16.msra.mxu0 %v7425_v23  ;;  %3797 = vmatpush1.bf16.msra.mxu1 %v7426_v17  ;;  %v7436_v23 = vld [vmem:[#allocation34_spill] sm:$0xff]  ;;  %v7437_v17 = vld [vmem:[#allocation35_spill] sm:$0xff] }
 0x165   :  { %3735 = vmatprep.subr.bf16.mxu0 %v7427_v44  ;;  %3799 = vmatprep.subr.bf16.mxu1 %v7428_v51  ;;  %v7438_v44 = vld [vmem:[#allocation36_spill] sm:$0xff]  ;;  %v7439_v51 = vld [vmem:[#allocation37_spill] sm:$0xff] }
 0x168   :  { %3737 = vmatpush1.bf16.msra.mxu0 %v7429_v20  ;;  %3801 = vmatpush1.bf16.msra.mxu1 %v7430_v53  ;;  %v7440_v20 = vld [vmem:[#allocation38_spill] sm:$0xff]  ;;  %v7441_v53 = vld [vmem:[#allocation39_spill] sm:$0xff] }
 0x169   :  { %3739 = vmatprep.subr.bf16.mxu0 %v7431_v13  ;;  %3803 = vmatprep.subr.bf16.mxu1 %v7432_v16  ;;  %v7442_v13 = vld [vmem:[#allocation40_spill] sm:$0xff]  ;;  %v7443_v16 = vld [vmem:[#allocation41_spill] sm:$0xff] }
 0x16c   :  { %3741 = vmatpush1.bf16.msra.mxu0 %v7433_v55  ;;  %3805 = vmatpush1.bf16.msra.mxu1 %v7434_v57  ;;  %v7444_v55 = vld [vmem:[#allocation42_spill] sm:$0xff]  ;;  %v7445_v57 = vld [vmem:[#allocation43_spill] sm:$0xff] }
 0x16d   :  { %3743 = vmatprep.subr.bf16.mxu0 %v7435_v41  ;;  %3807 = vmatprep.subr.bf16.mxu1 %v7436_v23  ;;  %v7446_v41 = vld [vmem:[#allocation44_spill] sm:$0xff]  ;;  %v7447_v23 = vld [vmem:[#allocation45_spill] sm:$0xff] }
 0x170   :  { %3745 = vmatpush1.bf16.msra.mxu0 %v7437_v17  ;;  %3809 = vmatpush1.bf16.msra.mxu1 %v7438_v44  ;;  %v7448_v17 = vld [vmem:[#allocation46_spill] sm:$0xff]  ;;  %v7449_v44 = vld [vmem:[#allocation47_spill] sm:$0xff] }
 0x171   :  { %3747 = vmatprep.subr.bf16.mxu0 %v7439_v51  ;;  %3811 = vmatprep.subr.bf16.mxu1 %v7440_v20  ;;  %v7450_v51 = vld [vmem:[#allocation48_spill] sm:$0xff]  ;;  %v7451_v20 = vld [vmem:[#allocation49_spill] sm:$0xff] }
 0x174   :  { %3749 = vmatpush1.bf16.msra.mxu0 %v7441_v53  ;;  %3813 = vmatpush1.bf16.msra.mxu1 %v7442_v13  ;;  %v7452_v53 = vld [vmem:[#allocation50_spill] sm:$0xff]  ;;  %v7453_v13 = vld [vmem:[#allocation51_spill] sm:$0xff] }
 0x175   :  { %3751 = vmatprep.subr.bf16.mxu0 %v7443_v16  ;;  %3815 = vmatprep.subr.bf16.mxu1 %v7444_v55  ;;  %v7454_v16 = vld [vmem:[#allocation52_spill] sm:$0xff]  ;;  %v7455_v55 = vld [vmem:[#allocation53_spill] sm:$0xff] }
 0x178   :  { %3753 = vmatpush1.bf16.msra.mxu0 %v7445_v57  ;;  %3817 = vmatpush1.bf16.msra.mxu1 %v7446_v41  ;;  %v7456_v57 = vld [vmem:[#allocation54_spill] sm:$0xff]  ;;  %v7457_v41 = vld [vmem:[#allocation55_spill] sm:$0xff] }
 0x179   :  { %3755 = vmatprep.subr.bf16.mxu0 %v7447_v23  ;;  %3819 = vmatprep.subr.bf16.mxu1 %v7448_v17  ;;  %v7458_v23 = vld [vmem:[#allocation56_spill] sm:$0xff]  ;;  %v7459_v17 = vld [vmem:[#allocation57_spill] sm:$0xff] }
 0x17c   :  { %3757 = vmatpush1.bf16.msra.mxu0 %v7449_v44  ;;  %3821 = vmatpush1.bf16.msra.mxu1 %v7450_v51  ;;  %v7460_v44 = vld [vmem:[#allocation58_spill] sm:$0xff]  ;;  %v7461_v51 = vld [vmem:[#allocation59_spill] sm:$0xff] }
 0x17d   :  { %3759 = vmatprep.subr.bf16.mxu0 %v7451_v20  ;;  %3823 = vmatprep.subr.bf16.mxu1 %v7452_v53  ;;  %v7462_v20 = vld [vmem:[#allocation60_spill] sm:$0xff]  ;;  %v7463_v53 = vld [vmem:[#allocation3_spill] sm:$0xff] }
 0x180   :  { %3761 = vmatpush1.bf16.msra.mxu0 %v7453_v13  ;;  %3825 = vmatpush1.bf16.msra.mxu1 %v7454_v16  ;;  %v7464_v13 = vld [vmem:[#allocation4_spill] sm:$0xff] }
 0x181   :  { %3763 = vmatprep.subr.bf16.mxu0 %v7455_v55  ;;  %3827 = vmatprep.subr.bf16.mxu1 %v7456_v57  ;;  %v557_v57 = vld [vmem:[%s7214_s7] sm:$0xf] }
 0x182   :  { %v6465_v4 = vrot.slane %v557_v57, %v7469_v6 }
 0x184   :  { %3765 = vmatpush1.bf16.msra.mxu0 %v7457_v41  ;;  %3829 = vmatpush1.bf16.msra.mxu1 %v7458_v23  ;;  %v7465_v41 = vsub.s32 0, %v6317_v32  ;;  %7470 = vst [vmem:[#allocation66_spill] sm:$0xff] %v6465_v4 }
 0x185   :  { %3767 = vmatprep.subr.bf16.mxu0 %v7459_v17  ;;  %3831 = vmatprep.subr.bf16.mxu1 %v7460_v44  ;;  %v7467_v17 = vsub.s32 1, %v6317_v32 }
 0x186   :  { %v6455_v55 = vrot.slane %v557_v57, %v7465_v41 }
 0x187   :  { %v6459_v23 = vrot.slane %v557_v57, %v7467_v17  ;;  %v7471_v17 = vsub.s32 2, %v6317_v32 }
 0x188   :  { %3769 = vmatpush1.bf16.msra.mxu0 %v7461_v51  ;;  %3833 = vmatpush1.bf16.msra.mxu1 %v7462_v20  ;;  %7466 = vst [vmem:[#allocation64_spill] sm:$0xff] %v6455_v55 }
 0x189   :  { %3835 = vmatprep.subr.bf16.mxu0 %v7463_v53  ;;  %3867 = vmatprep.subr.bf16.mxu1 %v7464_v13  ;;  %7468 = vst [vmem:[#allocation65_spill] sm:$0xff] %v6459_v23  ;;  %v6470_v59 = vrot.slane %v557_v57, %v7471_v17 }
 0x18b   :  { %7472 = vst [vmem:[#allocation67_spill] sm:$0xff] %v6470_v59 }
 0x1fe   :  { %v828_v44 = vpop.f32.mrb[16].mxu0  ;;  %v899_v51 = vpop.f32.mrb[16].mxu1 }
 0x1ff   :  { %v829_v20 = vadd.f32 %v828_v44, %v6455_v55  ;;  %v830_v16 = vpop.f32.mrb[17].mxu0  ;;  %v901_v53 = vpop.f32.mrb[17].mxu1  ;;  %v900_v44 = vadd.f32 %v899_v51, %v6470_v59 }
 0x200   :  { %v831_v13 = vadd.f32 %v830_v16, %v6459_v23  ;;  %v902_v41 = vadd.f32 %v901_v53, %v6465_v4 }
 0x201   :  { %v3388_v9 = vmul.f32 -1.442695, %v829_v20 }
 0x202   :  { %v3389_v3 = vmul.f32 -1.442695, %v831_v13  ;;  %v3390_v45 = vmul.f32 -1.442695, %v902_v41 }
 0x203   :  { %5067 = vpow2.f32 %v3388_v9 }
 0x204   :  { %5069 = vpow2.f32 %v3389_v3  ;;  %v41_v3 = vld [vmem:[%s7213_s2 + $0x8] sm:$0xff] }
 0x205   :  { %5071 = vpow2.f32 %v3390_v45  ;;  %v7473_v45 = vld [vmem:[#allocation61_spill] sm:$0xff] }
 0x206   :  { %5073 = vtanh.f32 %v900_v44 }
 0x20d   :  { %v5068_v55 = vpop.eup %5067 }
 0x20e   :  { %v5070_v31 = vpop.eup %5069  ;;  %v907_v16 = vadd.f32 1.0, %v5068_v55 }
 0x20f   :  { %v913_v20 = vadd.f32 1.0, %v5070_v31  ;;  %v5072_v6 = vpop.eup %5071 }
 0x210   :  { %5075 = vrcp.f32 %v907_v16  ;;  %v5074_v9 = vpop.eup %5073  ;;  %v920_v57 = vadd.f32 1.0, %v5072_v6  ;;  %v7474_v16 = vld [vmem:[#allocation62_spill] sm:$0xff] }
 0x211   :  { %5077 = vrcp.f32 %v913_v20 }
 0x212   :  { %5079 = vrcp.f32 %v920_v57 }
 0x21a   :  { %v5076_v32 = vpop.eup %5075 }
 0x21b   :  { %v5078_v53 = vpop.eup %5077  ;;  %v924_v13 = vmul.f32 %v5076_v32, %v5074_v9  ;;  %v7475_v9 = vld [vmem:[#allocation63_spill] sm:$0xff] }
 0x21c   :  { %v923_v41 = vmul.f32 %v5078_v53, %v41_v3  ;;  %v5080_v3 = vpop.eup %5079 }
 0x21e   :  { %v1002_v51 = vpop.f32.mrb[2].mxu0  ;;  %v1073_v17 = vpop.f32.mrb[2].mxu1  ;;  %v6476_v59 = vadd.f32 %v924_v13, %v923_v41 }
 0x21f   :  { %v4988_v31 = vadd.f32 %v1002_v51, %v7473_v45  ;;  %v1004_v55 = vpop.f32.mrb[3].mxu0  ;;  %v1075_v44 = vpop.f32.mrb[3].mxu1  ;;  %v5004_v13 = vadd.f32 %v1073_v17, %v6343_v21 }
 0x220   :  { %v4989_v20 = vadd.f32 %v1004_v55, %v7474_v16  ;;  %5081 = vtanh.f32 %v6476_v59  ;;  %v5005_v6 = vadd.f32 %v1075_v44, %v7475_v9 }
 0x221   :  { %v3391_v4 = vmul.f32 -1.442695, %v4988_v31 }
 0x222   :  { %v3392_v23 = vmul.f32 -1.442695, %v4989_v20  ;;  %v3393_v53 = vmul.f32 -1.442695, %v5005_v6 }
 0x223   :  { %5083 = vpow2.f32 %v3391_v4 }
 0x224   :  { %5085 = vpow2.f32 %v3392_v23 }
 0x225   :  { %5087 = vpow2.f32 %v3393_v53 }
 0x226   :  { %5089 = vtanh.f32 %v5004_v13  ;;  %v7477_v13 = vld [vmem:[#allocation10_spill] sm:$0xff] }
 0x22a   :  { %v5082_v32 = vpop.eup %5081 }
 0x22b   :  { %v927_v57 = vmul.f32 %v5082_v32, %v5080_v3 }
 0x22d   :  { %v5084_v41 = vpop.eup %5083  ;;  %928 = vst [vmem:[%s7215_s8] sm:$0xff] %v927_v57  ;;  %1170 = vmatprep.mubr.f32.mxu0 %v927_v57  ;;  %1241 = vmatprep.mubr.f32.mxu1 %v927_v57 }
 0x22e   :  { %v5086_v51 = vpop.eup %5085  ;;  %v1085_v31 = vadd.f32 1.0, %v5084_v41 }
 0x22f   :  { %v1091_v4 = vadd.f32 1.0, %v5086_v51  ;;  %v5088_v23 = vpop.eup %5087  ;;  %v7478_v51 = vld [vmem:[#allocation11_spill] sm:$0xff] }
 0x230   :  { %5091 = vrcp.f32 %v1085_v31  ;;  %v5090_v55 = vpop.eup %5089  ;;  %v1098_v6 = vadd.f32 1.0, %v5088_v23  ;;  %v7479_v31 = vld [vmem:[#allocation12_spill] sm:$0xff]  ;;  %v7481_v23 = vld [vmem:[#allocation14_spill] sm:$0xff] }
 0x231   :  { %5093 = vrcp.f32 %v1091_v4  ;;  %v7480_v4 = vld [vmem:[#allocation13_spill] sm:$0xff] }
 0x232   :  { %5095 = vrcp.f32 %v1098_v6  ;;  %v7486_v6 = vld [vmem:[#allocation19_spill] sm:$0xff] }
 0x23a   :  { %v5092_v44 = vpop.eup %5091 }
 0x23b   :  { %v5094_v20 = vpop.eup %5093  ;;  %v1102_v17 = vmul.f32 %v5092_v44, %v5090_v55  ;;  %v7482_v55 = vld [vmem:[#allocation15_spill] sm:$0xff]  ;;  %v7483_v44 = vld [vmem:[#allocation16_spill] sm:$0xff] }
 0x23c   :  { %v1101_v3 = vmul.f32 %v5094_v20, %v6349_v49  ;;  %v5096_v57 = vpop.eup %5095  ;;  %v7476_v49 = vld [vmem:[#allocation9_spill] sm:$0xff] }
 0x23d   :  { %v7484_v20 = vld [vmem:[#allocation17_spill] sm:$0xff] }
 0x23e   :  { %v6487_v32 = vadd.f32 %v1102_v17, %v1101_v3  ;;  %v7485_v17 = vld [vmem:[#allocation18_spill] sm:$0xff]  ;;  %v7487_v3 = vld [vmem:[#allocation20_spill] sm:$0xff] }
 0x240   :  { %5097 = vtanh.f32 %v6487_v32 }
 0x24a   :  { %v5098_v41 = vpop.eup %5097 }
 0x24b   :  { %v1105_v53 = vmul.f32 %v5098_v41, %v5096_v57  ;;  %v7488_v57 = vld [vmem:[#allocation21_spill] sm:$0xff]  ;;  %v7489_v41 = vld [vmem:[#allocation22_spill] sm:$0xff] }
 0x24d   :  { %1171 = vmatmul.mubr.f32.vlgmr.msra.gmra.mrb[18].mxu0 %v1105_v53  ;;  %1242 = vmatmul.mubr.f32.vlgmr.msra.gmra.mrb[18].mxu1 %v1105_v53 }
 0x24e   :  { %3837 = vmatpush1.bf16.msra.mxu0 %v5414_v22  ;;  %3869 = vmatpush1.bf16.msra.mxu1 %v5423_v25 }
 0x24f   :  { %3839 = vmatprep.subr.bf16.mxu0 %v5436_v29  ;;  %3871 = vmatprep.subr.bf16.mxu1 %v5452_v34 }
 0x250   :  { %1345 = vmatprep.mubr.f32.mxu0 %v7415_v14  ;;  %1416 = vmatprep.mubr.f32.mxu1 %v7415_v14 }
 0x252   :  { %3841 = vmatpush1.bf16.msra.mxu0 %v5454_v35  ;;  %3873 = vmatpush1.bf16.msra.mxu1 %v5464_v38 }
 0x253   :  { %3843 = vmatprep.subr.bf16.mxu0 %v5477_v42  ;;  %3875 = vmatprep.subr.bf16.mxu1 %v5493_v47 }
 0x256   :  { %3845 = vmatpush1.bf16.msra.mxu0 %v5503_v50  ;;  %3877 = vmatpush1.bf16.msra.mxu1 %v5516_v54 }
 0x257   :  { %3847 = vmatprep.subr.bf16.mxu0 %v5529_v58  ;;  %3879 = vmatprep.subr.bf16.mxu1 %v5539_v61 }
 0x25a   :  { %3849 = vmatpush1.bf16.msra.mxu0 %v5552_v1  ;;  %3881 = vmatpush1.bf16.msra.mxu1 %v5562_v5 }
 0x25b   :  { %3851 = vmatprep.subr.bf16.mxu0 %v5572_v8  ;;  %3883 = vmatprep.subr.bf16.mxu1 %v5582_v11 }
 0x25e   :  { %3853 = vmatpush1.bf16.msra.mxu0 %v5595_v15  ;;  %3885 = vmatpush1.bf16.msra.mxu1 %v5605_v19 }
 0x25f   :  { %3855 = vmatprep.subr.bf16.mxu0 %v5615_v24  ;;  %3887 = vmatprep.subr.bf16.mxu1 %v5625_v28 }
 0x262   :  { %3857 = vmatpush1.bf16.msra.mxu0 %v5638_v33  ;;  %3889 = vmatpush1.bf16.msra.mxu1 %v5648_v39 }
 0x263   :  { %3859 = vmatprep.subr.bf16.mxu0 %v5658_v43  ;;  %3891 = vmatprep.subr.bf16.mxu1 %v5668_v46 }
 0x266   :  { %3861 = vmatpush1.bf16.msra.mxu0 %v5681_v52  ;;  %3893 = vmatpush1.bf16.msra.mxu1 %v5691_v56 }
 0x267   :  { %3863 = vmatprep.subr.bf16.mxu0 %v5701_v60  ;;  %3895 = vmatprep.subr.bf16.mxu1 %v5711_v0 }
 0x26a   :  { %3865 = vmatpush1.bf16.msra.mxu0 %v5724_v7  ;;  %3897 = vmatpush1.bf16.msra.mxu1 %v5734_v12 }
 0x26b   :  { %3899 = vmatprep.subr.bf16.mxu0 %v5747_v18  ;;  %3963 = vmatprep.subr.bf16.mxu1 %v5760_v27 }
 0x26d   :  { %1346 = vmatmul.mubr.f32.vlgmr.msra.gmra.mrb[4].mxu0 %v1105_v53  ;;  %1417 = vmatmul.mubr.f32.vlgmr.msra.gmra.mrb[4].mxu1 %v1105_v53  ;;  %v7490_v53 = vld [vmem:[#allocation23_spill] sm:$0xff] }
 0x26e   :  { %3901 = vmatpush1.bf16.msra.mxu0 %v5773_v36  ;;  %3965 = vmatpush1.bf16.msra.mxu1 %v5777_v37 }
 0x26f   :  { %3903 = vmatprep.subr.bf16.mxu0 %v5779_v40  ;;  %3967 = vmatprep.subr.bf16.mxu1 %v5792_v48 }
 0x272   :  { %3905 = vmatpush1.bf16.msra.mxu0 %v5814_v62  ;;  %3969 = vmatpush1.bf16.msra.mxu1 %v5818_v63 }
 0x273   :  { %3907 = vmatprep.subr.bf16.mxu0 %v5820_v2  ;;  %3971 = vmatprep.subr.bf16.mxu1 %v5832_v10 }
 0x276   :  { %3909 = vmatpush1.bf16.msra.mxu0 %v5850_v26  ;;  %3973 = vmatpush1.bf16.msra.mxu1 %v5854_v30 }
 0x277   :  { %3911 = vmatprep.subr.bf16.mxu0 %v7476_v49  ;;  %3975 = vmatprep.subr.bf16.mxu1 %v7477_v13  ;;  %v7531_v13 = vld [vmem:[#allocation65_spill] sm:$0xff] }
 0x27a   :  { %3913 = vmatpush1.bf16.msra.mxu0 %v7478_v51  ;;  %3977 = vmatpush1.bf16.msra.mxu1 %v7479_v31  ;;  %v7530_v31 = vld [vmem:[#allocation64_spill] sm:$0xff] }
 0x27b   :  { %3915 = vmatprep.subr.bf16.mxu0 %v7480_v4  ;;  %3979 = vmatprep.subr.bf16.mxu1 %v7481_v23  ;;  %v7491_v4 = vld [vmem:[#allocation24_spill] sm:$0xff]  ;;  %v7492_v23 = vld [vmem:[#allocation25_spill] sm:$0xff] }
 0x27e   :  { %3917 = vmatpush1.bf16.msra.mxu0 %v7482_v55  ;;  %3981 = vmatpush1.bf16.msra.mxu1 %v7483_v44  ;;  %v7493_v55 = vld [vmem:[#allocation26_spill] sm:$0xff]  ;;  %v7494_v44 = vld [vmem:[#allocation27_spill] sm:$0xff] }
 0x27f   :  { %3919 = vmatprep.subr.bf16.mxu0 %v7484_v20  ;;  %3983 = vmatprep.subr.bf16.mxu1 %v7485_v17  ;;  %v7495_v20 = vld [vmem:[#allocation28_spill] sm:$0xff]  ;;  %v7496_v17 = vld [vmem:[#allocation29_spill] sm:$0xff] }
 0x282   :  { %3921 = vmatpush1.bf16.msra.mxu0 %v7486_v6  ;;  %3985 = vmatpush1.bf16.msra.mxu1 %v7487_v3  ;;  %v7497_v6 = vld [vmem:[#allocation30_spill] sm:$0xff]  ;;  %v7498_v3 = vld [vmem:[#allocation31_spill] sm:$0xff] }
 0x283   :  { %3923 = vmatprep.subr.bf16.mxu0 %v7488_v57  ;;  %3987 = vmatprep.subr.bf16.mxu1 %v7489_v41  ;;  %v7499_v57 = vld [vmem:[#allocation32_spill] sm:$0xff]  ;;  %v7500_v41 = vld [vmem:[#allocation33_spill] sm:$0xff] }
 0x286   :  { %3925 = vmatpush1.bf16.msra.mxu0 %v7490_v53  ;;  %3989 = vmatpush1.bf16.msra.mxu1 %v7491_v4  ;;  %v7501_v53 = vld [vmem:[#allocation34_spill] sm:$0xff]  ;;  %v7502_v4 = vld [vmem:[#allocation35_spill] sm:$0xff] }
 0x287   :  { %3927 = vmatprep.subr.bf16.mxu0 %v7492_v23  ;;  %3991 = vmatprep.subr.bf16.mxu1 %v7493_v55  ;;  %v7503_v23 = vld [vmem:[#allocation36_spill] sm:$0xff]  ;;  %v7504_v55 = vld [vmem:[#allocation37_spill] sm:$0xff] }
 0x28a   :  { %3929 = vmatpush1.bf16.msra.mxu0 %v7494_v44  ;;  %3993 = vmatpush1.bf16.msra.mxu1 %v7495_v20  ;;  %v7505_v44 = vld [vmem:[#allocation38_spill] sm:$0xff]  ;;  %v7506_v20 = vld [vmem:[#allocation39_spill] sm:$0xff] }
 0x28b   :  { %3931 = vmatprep.subr.bf16.mxu0 %v7496_v17  ;;  %3995 = vmatprep.subr.bf16.mxu1 %v7497_v6  ;;  %v7507_v17 = vld [vmem:[#allocation40_spill] sm:$0xff]  ;;  %v7508_v6 = vld [vmem:[#allocation41_spill] sm:$0xff] }
 0x28e   :  { %3933 = vmatpush1.bf16.msra.mxu0 %v7498_v3  ;;  %3997 = vmatpush1.bf16.msra.mxu1 %v7499_v57  ;;  %v7509_v3 = vld [vmem:[#allocation42_spill] sm:$0xff]  ;;  %v7510_v57 = vld [vmem:[#allocation43_spill] sm:$0xff] }
 0x28f   :  { %3935 = vmatprep.subr.bf16.mxu0 %v7500_v41  ;;  %3999 = vmatprep.subr.bf16.mxu1 %v7501_v53  ;;  %v7511_v41 = vld [vmem:[#allocation44_spill] sm:$0xff]  ;;  %v7512_v53 = vld [vmem:[#allocation45_spill] sm:$0xff] }
 0x292   :  { %3937 = vmatpush1.bf16.msra.mxu0 %v7502_v4  ;;  %4001 = vmatpush1.bf16.msra.mxu1 %v7503_v23  ;;  %v7513_v4 = vld [vmem:[#allocation46_spill] sm:$0xff]  ;;  %v7514_v23 = vld [vmem:[#allocation47_spill] sm:$0xff] }
 0x293   :  { %3939 = vmatprep.subr.bf16.mxu0 %v7504_v55  ;;  %4003 = vmatprep.subr.bf16.mxu1 %v7505_v44  ;;  %v7515_v55 = vld [vmem:[#allocation48_spill] sm:$0xff]  ;;  %v7516_v44 = vld [vmem:[#allocation49_spill] sm:$0xff] }
 0x296   :  { %3941 = vmatpush1.bf16.msra.mxu0 %v7506_v20  ;;  %4005 = vmatpush1.bf16.msra.mxu1 %v7507_v17  ;;  %v7517_v20 = vld [vmem:[#allocation50_spill] sm:$0xff]  ;;  %v7518_v17 = vld [vmem:[#allocation51_spill] sm:$0xff] }
 0x297   :  { %3943 = vmatprep.subr.bf16.mxu0 %v7508_v6  ;;  %4007 = vmatprep.subr.bf16.mxu1 %v7509_v3  ;;  %v7519_v6 = vld [vmem:[#allocation52_spill] sm:$0xff]  ;;  %v7520_v3 = vld [vmem:[#allocation53_spill] sm:$0xff] }
 0x29a   :  { %3945 = vmatpush1.bf16.msra.mxu0 %v7510_v57  ;;  %4009 = vmatpush1.bf16.msra.mxu1 %v7511_v41  ;;  %v7521_v57 = vld [vmem:[#allocation54_spill] sm:$0xff]  ;;  %v7522_v41 = vld [vmem:[#allocation55_spill] sm:$0xff] }
 0x29b   :  { %3947 = vmatprep.subr.bf16.mxu0 %v7512_v53  ;;  %4011 = vmatprep.subr.bf16.mxu1 %v7513_v4  ;;  %v7523_v53 = vld [vmem:[#allocation56_spill] sm:$0xff]  ;;  %v7524_v4 = vld [vmem:[#allocation57_spill] sm:$0xff] }
 0x29e   :  { %3949 = vmatpush1.bf16.msra.mxu0 %v7514_v23  ;;  %4013 = vmatpush1.bf16.msra.mxu1 %v7515_v55  ;;  %v7525_v23 = vld [vmem:[#allocation58_spill] sm:$0xff]  ;;  %v7526_v55 = vld [vmem:[#allocation59_spill] sm:$0xff] }
 0x29f   :  { %3951 = vmatprep.subr.bf16.mxu0 %v7516_v44  ;;  %4015 = vmatprep.subr.bf16.mxu1 %v7517_v20  ;;  %v7527_v44 = vld [vmem:[#allocation60_spill] sm:$0xff]  ;;  %v7528_v20 = vld [vmem:[#allocation3_spill] sm:$0xff] }
 0x2a2   :  { %3953 = vmatpush1.bf16.msra.mxu0 %v7518_v17  ;;  %4017 = vmatpush1.bf16.msra.mxu1 %v7519_v6  ;;  %v7529_v17 = vld [vmem:[#allocation4_spill] sm:$0xff] }
 0x2a3   :  { %3955 = vmatprep.subr.bf16.mxu0 %v7520_v3  ;;  %4019 = vmatprep.subr.bf16.mxu1 %v7521_v57 }
 0x2a6   :  { %3957 = vmatpush1.bf16.msra.mxu0 %v7522_v41  ;;  %4021 = vmatpush1.bf16.msra.mxu1 %v7523_v53 }
 0x2a7   :  { %3959 = vmatprep.subr.bf16.mxu0 %v7524_v4  ;;  %4023 = vmatprep.subr.bf16.mxu1 %v7525_v23  ;;  %v7532_v23 = vld [vmem:[#allocation66_spill] sm:$0xff] }
 0x2aa   :  { %3961 = vmatpush1.bf16.msra.mxu0 %v7526_v55  ;;  %4025 = vmatpush1.bf16.msra.mxu1 %v7527_v44  ;;  %v7533_v44 = vld [vmem:[#allocation67_spill] sm:$0xff] }
 0x2ab   :  { %4027 = vmatprep.subr.bf16.mxu0 %v7528_v20  ;;  %4059 = vmatprep.subr.bf16.mxu1 %v7529_v17 }
 0x320   :  { %v1172_v6 = vpop.f32.mrb[18].mxu0  ;;  %v1243_v3 = vpop.f32.mrb[18].mxu1 }
 0x321   :  { %v1173_v57 = vadd.f32 %v1172_v6, %v7530_v31  ;;  %v1174_v51 = vpop.f32.mrb[19].mxu0  ;;  %v1245_v41 = vpop.f32.mrb[19].mxu1  ;;  %v1244_v26 = vadd.f32 %v1243_v3, %v7533_v44 }
 0x322   :  { %v1175_v53 = vadd.f32 %v1174_v51, %v7531_v13  ;;  %v1246_v55 = vadd.f32 %v1245_v41, %v7532_v23 }
 0x323   :  { %v3394_v49 = vmul.f32 -1.442695, %v1173_v57 }
 0x324   :  { %v3395_v4 = vmul.f32 -1.442695, %v1175_v53  ;;  %v3396_v30 = vmul.f32 -1.442695, %v1246_v55 }
 0x325   :  { %5099 = vpow2.f32 %v3394_v49 }
 0x326   :  { %5101 = vpow2.f32 %v3395_v4 }
 0x327   :  { %5103 = vpow2.f32 %v3396_v30 }
 0x328   :  { %5105 = vtanh.f32 %v1244_v26 }
 0x32f   :  { %v5100_v20 = vpop.eup %5099 }
 0x330   :  { %v5102_v10 = vpop.eup %5101  ;;  %v1251_v17 = vadd.f32 1.0, %v5100_v20 }
 0x331   :  { %v1257_v2 = vadd.f32 1.0, %v5102_v10  ;;  %v5104_v6 = vpop.eup %5103 }
 0x332   :  { %5107 = vrcp.f32 %v1251_v17  ;;  %v5106_v31 = vpop.eup %5105  ;;  %v1264_v49 = vadd.f32 1.0, %v5104_v6 }
 0x333   :  { %5109 = vrcp.f32 %v1257_v2 }
 0x334   :  { %5111 = vrcp.f32 %v1264_v49 }
 0x33c   :  { %v5108_v51 = vpop.eup %5107 }
 0x33d   :  { %v5110_v57 = vpop.eup %5109  ;;  %v1268_v53 = vmul.f32 %v5108_v51, %v5106_v31 }
 0x33e   :  { %v1267_v4 = vmul.f32 %v5110_v57, %v6476_v59  ;;  %v5112_v59 = vpop.eup %5111 }
 0x340   :  { %v1347_v41 = vpop.f32.mrb[4].mxu0  ;;  %v1418_v55 = vpop.f32.mrb[4].mxu1  ;;  %v6593_v23 = vadd.f32 %v1268_v53, %v1267_v4 }
 0x341   :  { %v4990_v20 = vadd.f32 %v1347_v41, %v7473_v45  ;;  %v1349_v30 = vpop.f32.mrb[5].mxu0  ;;  %v1420_v26 = vpop.f32.mrb[5].mxu1  ;;  %v5006_v51 = vadd.f32 %v1418_v55, %v6343_v21 }
 0x342   :  { %v4991_v10 = vadd.f32 %v1349_v30, %v7474_v16  ;;  %5113 = vtanh.f32 %v6593_v23  ;;  %v5007_v31 = vadd.f32 %v1420_v26, %v7475_v9 }
 0x343   :  { %v3398_v2 = vmul.f32 -1.442695, %v4990_v20 }
 0x344   :  { %v3399_v17 = vmul.f32 -1.442695, %v4991_v10  ;;  %v3400_v6 = vmul.f32 -1.442695, %v5007_v31 }
 0x345   :  { %5115 = vpow2.f32 %v3398_v2 }
 0x346   :  { %5117 = vpow2.f32 %v3399_v17 }
 0x347   :  { %5119 = vpow2.f32 %v3400_v6 }
 0x348   :  { %5121 = vtanh.f32 %v5006_v51  ;;  %v7535_v51 = vld [vmem:[#allocation6_spill] sm:$0xff] }
 0x34c   :  { %v5114_v3 = vpop.eup %5113 }
 0x34d   :  { %v1271_v57 = vmul.f32 %v5114_v3, %v5112_v59 }
 0x34f   :  { %v5116_v53 = vpop.eup %5115  ;;  %3397 = vst [vmem:[%s7215_s8 + $0x8] sm:$0xff] %v1271_v57  ;;  %1515 = vmatprep.mubr.f32.mxu0 %v1271_v57  ;;  %1586 = vmatprep.mubr.f32.mxu1 %v1271_v57  ;;  %v7536_v57 = vld [vmem:[#allocation7_spill] sm:$0xff] }
 0x350   :  { %v5118_v49 = vpop.eup %5117  ;;  %v1430_v4 = vadd.f32 1.0, %v5116_v53  ;;  %v7537_v53 = vld [vmem:[#allocation8_spill] sm:$0xff] }
 0x351   :  { %v1436_v41 = vadd.f32 1.0, %v5118_v49  ;;  %v5120_v20 = vpop.eup %5119  ;;  %v7538_v49 = vld [vmem:[#allocation9_spill] sm:$0xff] }
 0x352   :  { %5123 = vrcp.f32 %v1430_v4  ;;  %v5122_v30 = vpop.eup %5121  ;;  %v1443_v2 = vadd.f32 1.0, %v5120_v20  ;;  %v7539_v4 = vld [vmem:[#allocation10_spill] sm:$0xff]  ;;  %v7541_v20 = vld [vmem:[#allocation12_spill] sm:$0xff] }
 0x353   :  { %5125 = vrcp.f32 %v1436_v41  ;;  %v7540_v41 = vld [vmem:[#allocation11_spill] sm:$0xff] }
 0x354   :  { %5127 = vrcp.f32 %v1443_v2  ;;  %v7546_v2 = vld [vmem:[#allocation17_spill] sm:$0xff] }
 0x35c   :  { %v5124_v26 = vpop.eup %5123 }
 0x35d   :  { %v5126_v10 = vpop.eup %5125  ;;  %v1447_v55 = vmul.f32 %v5124_v26, %v5122_v30  ;;  %v7542_v30 = vld [vmem:[#allocation13_spill] sm:$0xff]  ;;  %v7543_v26 = vld [vmem:[#allocation14_spill] sm:$0xff] }
 0x35e   :  { %v1446_v17 = vmul.f32 %v5126_v10, %v6487_v32  ;;  %v5128_v59 = vpop.eup %5127  ;;  %v7534_v32 = vld [vmem:[#allocation5_spill] sm:$0xff]  ;;  %v7544_v10 = vld [vmem:[#allocation15_spill] sm:$0xff] }
 0x360   :  { %v6604_v31 = vadd.f32 %v1447_v55, %v1446_v17  ;;  %v7545_v55 = vld [vmem:[#allocation16_spill] sm:$0xff]  ;;  %v7547_v17 = vld [vmem:[#allocation18_spill] sm:$0xff] }
 0x362   :  { %5129 = vtanh.f32 %v6604_v31 }
 0x36c   :  { %v5130_v3 = vpop.eup %5129 }
 0x36d   :  { %v1450_v6 = vmul.f32 %v5130_v3, %v5128_v59  ;;  %v7548_v59 = vld [vmem:[#allocation19_spill] sm:$0xff]  ;;  %v7549_v3 = vld [vmem:[#allocation20_spill] sm:$0xff] }
 0x36f   :  { %1516 = vmatmul.mubr.f32.vlgmr.msra.gmra.mrb[20].mxu0 %v1450_v6  ;;  %1587 = vmatmul.mubr.f32.vlgmr.msra.gmra.mrb[20].mxu1 %v1450_v6 }
 0x370   :  { %4029 = vmatpush1.bf16.msra.mxu0 %v5414_v22  ;;  %4061 = vmatpush1.bf16.msra.mxu1 %v5423_v25 }
 0x371   :  { %4031 = vmatprep.subr.bf16.mxu0 %v5436_v29  ;;  %4063 = vmatprep.subr.bf16.mxu1 %v5452_v34 }
 0x372   :  { %1690 = vmatprep.mubr.f32.mxu0 %v7415_v14  ;;  %1761 = vmatprep.mubr.f32.mxu1 %v7415_v14 }
 0x374   :  { %4033 = vmatpush1.bf16.msra.mxu0 %v5454_v35  ;;  %4065 = vmatpush1.bf16.msra.mxu1 %v5464_v38 }
 0x375   :  { %4035 = vmatprep.subr.bf16.mxu0 %v5477_v42  ;;  %4067 = vmatprep.subr.bf16.mxu1 %v5493_v47 }
 0x378   :  { %4037 = vmatpush1.bf16.msra.mxu0 %v5503_v50  ;;  %4069 = vmatpush1.bf16.msra.mxu1 %v5516_v54 }
 0x379   :  { %4039 = vmatprep.subr.bf16.mxu0 %v5529_v58  ;;  %4071 = vmatprep.subr.bf16.mxu1 %v5539_v61 }
 0x37c   :  { %4041 = vmatpush1.bf16.msra.mxu0 %v5552_v1  ;;  %4073 = vmatpush1.bf16.msra.mxu1 %v5562_v5 }
 0x37d   :  { %4043 = vmatprep.subr.bf16.mxu0 %v5572_v8  ;;  %4075 = vmatprep.subr.bf16.mxu1 %v5582_v11 }
 0x380   :  { %4045 = vmatpush1.bf16.msra.mxu0 %v5595_v15  ;;  %4077 = vmatpush1.bf16.msra.mxu1 %v5605_v19 }
 0x381   :  { %4047 = vmatprep.subr.bf16.mxu0 %v5615_v24  ;;  %4079 = vmatprep.subr.bf16.mxu1 %v5625_v28 }
 0x384   :  { %4049 = vmatpush1.bf16.msra.mxu0 %v5638_v33  ;;  %4081 = vmatpush1.bf16.msra.mxu1 %v5648_v39 }
 0x385   :  { %4051 = vmatprep.subr.bf16.mxu0 %v5658_v43  ;;  %4083 = vmatprep.subr.bf16.mxu1 %v5668_v46 }
 0x388   :  { %4053 = vmatpush1.bf16.msra.mxu0 %v5681_v52  ;;  %4085 = vmatpush1.bf16.msra.mxu1 %v5691_v56 }
 0x389   :  { %4055 = vmatprep.subr.bf16.mxu0 %v5701_v60  ;;  %4087 = vmatprep.subr.bf16.mxu1 %v5711_v0 }
 0x38c   :  { %4057 = vmatpush1.bf16.msra.mxu0 %v5724_v7  ;;  %4089 = vmatpush1.bf16.msra.mxu1 %v5734_v12 }
 0x38d   :  { %4091 = vmatprep.subr.bf16.mxu0 %v5747_v18  ;;  %4155 = vmatprep.subr.bf16.mxu1 %v5760_v27 }
 0x38f   :  { %1691 = vmatmul.mubr.f32.vlgmr.msra.gmra.mrb[6].mxu0 %v1450_v6  ;;  %1762 = vmatmul.mubr.f32.vlgmr.msra.gmra.mrb[6].mxu1 %v1450_v6  ;;  %v7550_v6 = vld [vmem:[#allocation21_spill] sm:$0xff] }
 0x390   :  { %4093 = vmatpush1.bf16.msra.mxu0 %v5773_v36  ;;  %4157 = vmatpush1.bf16.msra.mxu1 %v5777_v37 }
 0x391   :  { %4095 = vmatprep.subr.bf16.mxu0 %v5779_v40  ;;  %4159 = vmatprep.subr.bf16.mxu1 %v5792_v48 }
 0x394   :  { %4097 = vmatpush1.bf16.msra.mxu0 %v5814_v62  ;;  %4161 = vmatpush1.bf16.msra.mxu1 %v5818_v63 }
 0x395   :  { %4099 = vmatprep.subr.bf16.mxu0 %v7534_v32  ;;  %4163 = vmatprep.subr.bf16.mxu1 %v7535_v51 }
 0x398   :  { %4101 = vmatpush1.bf16.msra.mxu0 %v7536_v57  ;;  %4165 = vmatpush1.bf16.msra.mxu1 %v7537_v53 }
 0x399   :  { %4103 = vmatprep.subr.bf16.mxu0 %v7538_v49  ;;  %4167 = vmatprep.subr.bf16.mxu1 %v7539_v4  ;;  %v7592_v4 = vld [vmem:[#allocation64_spill] sm:$0xff] }
 0x39c   :  { %4105 = vmatpush1.bf16.msra.mxu0 %v7540_v41  ;;  %4169 = vmatpush1.bf16.msra.mxu1 %v7541_v20  ;;  %v7551_v41 = vld [vmem:[#allocation22_spill] sm:$0xff]  ;;  %v7552_v20 = vld [vmem:[#allocation23_spill] sm:$0xff] }
 0x39d   :  { %4107 = vmatprep.subr.bf16.mxu0 %v7542_v30  ;;  %4171 = vmatprep.subr.bf16.mxu1 %v7543_v26  ;;  %v7553_v30 = vld [vmem:[#allocation24_spill] sm:$0xff]  ;;  %v7554_v26 = vld [vmem:[#allocation25_spill] sm:$0xff] }
 0x3a0   :  { %4109 = vmatpush1.bf16.msra.mxu0 %v7544_v10  ;;  %4173 = vmatpush1.bf16.msra.mxu1 %v7545_v55  ;;  %v7555_v10 = vld [vmem:[#allocation26_spill] sm:$0xff]  ;;  %v7556_v55 = vld [vmem:[#allocation27_spill] sm:$0xff] }
 0x3a1   :  { %4111 = vmatprep.subr.bf16.mxu0 %v7546_v2  ;;  %4175 = vmatprep.subr.bf16.mxu1 %v7547_v17  ;;  %v7557_v2 = vld [vmem:[#allocation28_spill] sm:$0xff]  ;;  %v7558_v17 = vld [vmem:[#allocation29_spill] sm:$0xff] }
 0x3a4   :  { %4113 = vmatpush1.bf16.msra.mxu0 %v7548_v59  ;;  %4177 = vmatpush1.bf16.msra.mxu1 %v7549_v3  ;;  %v7559_v59 = vld [vmem:[#allocation30_spill] sm:$0xff]  ;;  %v7560_v3 = vld [vmem:[#allocation31_spill] sm:$0xff] }
 0x3a5   :  { %4115 = vmatprep.subr.bf16.mxu0 %v7550_v6  ;;  %4179 = vmatprep.subr.bf16.mxu1 %v7551_v41  ;;  %v7561_v6 = vld [vmem:[#allocation32_spill] sm:$0xff]  ;;  %v7562_v41 = vld [vmem:[#allocation33_spill] sm:$0xff] }
 0x3a8   :  { %4117 = vmatpush1.bf16.msra.mxu0 %v7552_v20  ;;  %4181 = vmatpush1.bf16.msra.mxu1 %v7553_v30  ;;  %v7563_v20 = vld [vmem:[#allocation34_spill] sm:$0xff]  ;;  %v7564_v30 = vld [vmem:[#allocation35_spill] sm:$0xff] }
 0x3a9   :  { %4119 = vmatprep.subr.bf16.mxu0 %v7554_v26  ;;  %4183 = vmatprep.subr.bf16.mxu1 %v7555_v10  ;;  %v7565_v26 = vld [vmem:[#allocation36_spill] sm:$0xff]  ;;  %v7566_v10 = vld [vmem:[#allocation37_spill] sm:$0xff] }
 0x3ac   :  { %4121 = vmatpush1.bf16.msra.mxu0 %v7556_v55  ;;  %4185 = vmatpush1.bf16.msra.mxu1 %v7557_v2  ;;  %v7567_v55 = vld [vmem:[#allocation38_spill] sm:$0xff]  ;;  %v7568_v2 = vld [vmem:[#allocation39_spill] sm:$0xff] }
 0x3ad   :  { %4123 = vmatprep.subr.bf16.mxu0 %v7558_v17  ;;  %4187 = vmatprep.subr.bf16.mxu1 %v7559_v59  ;;  %v7569_v17 = vld [vmem:[#allocation40_spill] sm:$0xff]  ;;  %v7570_v59 = vld [vmem:[#allocation41_spill] sm:$0xff] }
 0x3b0   :  { %4125 = vmatpush1.bf16.msra.mxu0 %v7560_v3  ;;  %4189 = vmatpush1.bf16.msra.mxu1 %v7561_v6  ;;  %v7571_v3 = vld [vmem:[#allocation42_spill] sm:$0xff]  ;;  %v7572_v6 = vld [vmem:[#allocation43_spill] sm:$0xff] }
 0x3b1   :  { %4127 = vmatprep.subr.bf16.mxu0 %v7562_v41  ;;  %4191 = vmatprep.subr.bf16.mxu1 %v7563_v20  ;;  %v7573_v41 = vld [vmem:[#allocation44_spill] sm:$0xff]  ;;  %v7574_v20 = vld [vmem:[#allocation45_spill] sm:$0xff] }
 0x3b4   :  { %4129 = vmatpush1.bf16.msra.mxu0 %v7564_v30  ;;  %4193 = vmatpush1.bf16.msra.mxu1 %v7565_v26  ;;  %v7575_v30 = vld [vmem:[#allocation46_spill] sm:$0xff]  ;;  %v7576_v26 = vld [vmem:[#allocation47_spill] sm:$0xff] }
 0x3b5   :  { %4131 = vmatprep.subr.bf16.mxu0 %v7566_v10  ;;  %4195 = vmatprep.subr.bf16.mxu1 %v7567_v55  ;;  %v7577_v10 = vld [vmem:[#allocation48_spill] sm:$0xff]  ;;  %v7578_v55 = vld [vmem:[#allocation49_spill] sm:$0xff] }
 0x3b8   :  { %4133 = vmatpush1.bf16.msra.mxu0 %v7568_v2  ;;  %4197 = vmatpush1.bf16.msra.mxu1 %v7569_v17  ;;  %v7579_v2 = vld [vmem:[#allocation50_spill] sm:$0xff]  ;;  %v7580_v17 = vld [vmem:[#allocation51_spill] sm:$0xff] }
 0x3b9   :  { %4135 = vmatprep.subr.bf16.mxu0 %v7570_v59  ;;  %4199 = vmatprep.subr.bf16.mxu1 %v7571_v3  ;;  %v7581_v59 = vld [vmem:[#allocation52_spill] sm:$0xff]  ;;  %v7582_v3 = vld [vmem:[#allocation53_spill] sm:$0xff] }
 0x3bc   :  { %4137 = vmatpush1.bf16.msra.mxu0 %v7572_v6  ;;  %4201 = vmatpush1.bf16.msra.mxu1 %v7573_v41  ;;  %v7583_v6 = vld [vmem:[#allocation54_spill] sm:$0xff]  ;;  %v7584_v41 = vld [vmem:[#allocation55_spill] sm:$0xff] }
 0x3bd   :  { %4139 = vmatprep.subr.bf16.mxu0 %v7574_v20  ;;  %4203 = vmatprep.subr.bf16.mxu1 %v7575_v30  ;;  %v7585_v20 = vld [vmem:[#allocation56_spill] sm:$0xff]  ;;  %v7586_v30 = vld [vmem:[#allocation57_spill] sm:$0xff] }
 0x3c0   :  { %4141 = vmatpush1.bf16.msra.mxu0 %v7576_v26  ;;  %4205 = vmatpush1.bf16.msra.mxu1 %v7577_v10  ;;  %v7587_v26 = vld [vmem:[#allocation58_spill] sm:$0xff]  ;;  %v7588_v10 = vld [vmem:[#allocation59_spill] sm:$0xff] }
 0x3c1   :  { %4143 = vmatprep.subr.bf16.mxu0 %v7578_v55  ;;  %4207 = vmatprep.subr.bf16.mxu1 %v7579_v2  ;;  %v7589_v55 = vld [vmem:[#allocation60_spill] sm:$0xff]  ;;  %v7590_v2 = vld [vmem:[#allocation3_spill] sm:$0xff] }
 0x3c4   :  { %4145 = vmatpush1.bf16.msra.mxu0 %v7580_v17  ;;  %4209 = vmatpush1.bf16.msra.mxu1 %v7581_v59  ;;  %v7591_v17 = vld [vmem:[#allocation4_spill] sm:$0xff] }
 0x3c5   :  { %4147 = vmatprep.subr.bf16.mxu0 %v7582_v3  ;;  %4211 = vmatprep.subr.bf16.mxu1 %v7583_v6 }
 0x3c8   :  { %4149 = vmatpush1.bf16.msra.mxu0 %v7584_v41  ;;  %4213 = vmatpush1.bf16.msra.mxu1 %v7585_v20 }
 0x3c9   :  { %4151 = vmatprep.subr.bf16.mxu0 %v7586_v30  ;;  %4215 = vmatprep.subr.bf16.mxu1 %v7587_v26  ;;  %v7593_v26 = vld [vmem:[#allocation66_spill] sm:$0xff] }
 0x3cc   :  { %4153 = vmatpush1.bf16.msra.mxu0 %v7588_v10  ;;  %4217 = vmatpush1.bf16.msra.mxu1 %v7589_v55 }
 0x3cd   :  { %4219 = vmatprep.subr.bf16.mxu0 %v7590_v2  ;;  %4251 = vmatprep.subr.bf16.mxu1 %v7591_v17 }
 0x442   :  { %v1517_v59 = vpop.f32.mrb[20].mxu0  ;;  %v1588_v3 = vpop.f32.mrb[20].mxu1 }
 0x443   :  { %v1518_v6 = vadd.f32 %v1517_v59, %v7592_v4  ;;  %v1519_v49 = vpop.f32.mrb[21].mxu0  ;;  %v1590_v41 = vpop.f32.mrb[21].mxu1  ;;  %v1589_v55 = vadd.f32 %v1588_v3, %v7533_v44 }
 0x444   :  { %v1520_v20 = vadd.f32 %v1519_v49, %v7531_v13  ;;  %v1591_v10 = vadd.f32 %v1590_v41, %v7593_v26 }
 0x445   :  { %v3401_v53 = vmul.f32 -1.442695, %v1518_v6 }
 0x446   :  { %v3402_v30 = vmul.f32 -1.442695, %v1520_v20  ;;  %v3403_v57 = vmul.f32 -1.442695, %v1591_v10 }
 0x447   :  { %5131 = vpow2.f32 %v3401_v53 }
 0x448   :  { %5133 = vpow2.f32 %v3402_v30 }
 0x449   :  { %5135 = vpow2.f32 %v3403_v57 }
 0x44a   :  { %5137 = vtanh.f32 %v1589_v55 }
 0x451   :  { %v5132_v2 = vpop.eup %5131 }
 0x452   :  { %v5134_v51 = vpop.eup %5133  ;;  %v1596_v17 = vadd.f32 1.0, %v5132_v2 }
 0x453   :  { %v1602_v32 = vadd.f32 1.0, %v5134_v51  ;;  %v5136_v59 = vpop.eup %5135 }
 0x454   :  { %5139 = vrcp.f32 %v1596_v17  ;;  %v5138_v4 = vpop.eup %5137  ;;  %v1609_v53 = vadd.f32 1.0, %v5136_v59 }
 0x455   :  { %5141 = vrcp.f32 %v1602_v32 }
 0x456   :  { %5143 = vrcp.f32 %v1609_v53 }
 0x45e   :  { %v5140_v49 = vpop.eup %5139 }
 0x45f   :  { %v5142_v6 = vpop.eup %5141  ;;  %v1613_v20 = vmul.f32 %v5140_v49, %v5138_v4 }
 0x460   :  { %v1612_v30 = vmul.f32 %v5142_v6, %v6593_v23  ;;  %v5144_v23 = vpop.eup %5143 }
 0x462   :  { %v1692_v41 = vpop.f32.mrb[6].mxu0  ;;  %v1763_v10 = vpop.f32.mrb[6].mxu1  ;;  %v6710_v26 = vadd.f32 %v1613_v20, %v1612_v30 }
 0x463   :  { %v4992_v2 = vadd.f32 %v1692_v41, %v7473_v45  ;;  %v1694_v57 = vpop.f32.mrb[7].mxu0  ;;  %v1765_v55 = vpop.f32.mrb[7].mxu1  ;;  %v5008_v49 = vadd.f32 %v1763_v10, %v6343_v21 }
 0x464   :  { %v4993_v51 = vadd.f32 %v1694_v57, %v7474_v16  ;;  %5145 = vtanh.f32 %v6710_v26  ;;  %v5009_v4 = vadd.f32 %v1765_v55, %v7475_v9 }
 0x465   :  { %v3405_v32 = vmul.f32 -1.442695, %v4992_v2 }
 0x466   :  { %v3406_v17 = vmul.f32 -1.442695, %v4993_v51  ;;  %v3407_v59 = vmul.f32 -1.442695, %v5009_v4 }
 0x467   :  { %5147 = vpow2.f32 %v3405_v32 }
 0x468   :  { %5149 = vpow2.f32 %v3406_v17 }
 0x469   :  { %5151 = vpow2.f32 %v3407_v59 }
 0x46a   :  { %5153 = vtanh.f32 %v5008_v49  ;;  %v7595_v49 = vld [vmem:[#allocation6_spill] sm:$0xff] }
 0x46e   :  { %v5146_v3 = vpop.eup %5145 }
 0x46f   :  { %v1616_v6 = vmul.f32 %v5146_v3, %v5144_v23 }
 0x471   :  { %v5148_v20 = vpop.eup %5147  ;;  %3404 = vst [vmem:[%s7215_s8 + $0x10] sm:$0xff] %v1616_v6  ;;  %1860 = vmatprep.mubr.f32.mxu0 %v1616_v6  ;;  %1931 = vmatprep.mubr.f32.mxu1 %v1616_v6  ;;  %v7596_v6 = vld [vmem:[#allocation7_spill] sm:$0xff] }
 0x472   :  { %v5150_v53 = vpop.eup %5149  ;;  %v1775_v30 = vadd.f32 1.0, %v5148_v20  ;;  %v7597_v20 = vld [vmem:[#allocation8_spill] sm:$0xff] }
 0x473   :  { %v1781_v41 = vadd.f32 1.0, %v5150_v53  ;;  %v5152_v2 = vpop.eup %5151  ;;  %v7598_v53 = vld [vmem:[#allocation9_spill] sm:$0xff] }
 0x474   :  { %5155 = vrcp.f32 %v1775_v30  ;;  %v5154_v57 = vpop.eup %5153  ;;  %v1788_v32 = vadd.f32 1.0, %v5152_v2  ;;  %v7599_v30 = vld [vmem:[#allocation10_spill] sm:$0xff]  ;;  %v7601_v2 = vld [vmem:[#allocation12_spill] sm:$0xff] }
 0x475   :  { %5157 = vrcp.f32 %v1781_v41  ;;  %v7600_v41 = vld [vmem:[#allocation11_spill] sm:$0xff] }
 0x476   :  { %5159 = vrcp.f32 %v1788_v32  ;;  %v7606_v32 = vld [vmem:[#allocation17_spill] sm:$0xff] }
 0x47e   :  { %v5156_v55 = vpop.eup %5155 }
 0x47f   :  { %v5158_v51 = vpop.eup %5157  ;;  %v1792_v10 = vmul.f32 %v5156_v55, %v5154_v57  ;;  %v7602_v57 = vld [vmem:[#allocation13_spill] sm:$0xff]  ;;  %v7603_v55 = vld [vmem:[#allocation14_spill] sm:$0xff] }
 0x480   :  { %v1791_v17 = vmul.f32 %v5158_v51, %v6604_v31  ;;  %v5160_v23 = vpop.eup %5159  ;;  %v7594_v31 = vld [vmem:[#allocation5_spill] sm:$0xff]  ;;  %v7604_v51 = vld [vmem:[#allocation15_spill] sm:$0xff] }
 0x482   :  { %v6721_v4 = vadd.f32 %v1792_v10, %v1791_v17  ;;  %v7605_v10 = vld [vmem:[#allocation16_spill] sm:$0xff]  ;;  %v7607_v17 = vld [vmem:[#allocation18_spill] sm:$0xff] }
 0x484   :  { %5161 = vtanh.f32 %v6721_v4 }
 0x48e   :  { %v5162_v3 = vpop.eup %5161 }
 0x48f   :  { %v1795_v59 = vmul.f32 %v5162_v3, %v5160_v23  ;;  %v7608_v23 = vld [vmem:[#allocation19_spill] sm:$0xff]  ;;  %v7609_v3 = vld [vmem:[#allocation20_spill] sm:$0xff] }
 0x491   :  { %1861 = vmatmul.mubr.f32.vlgmr.msra.gmra.mrb[22].mxu0 %v1795_v59  ;;  %1932 = vmatmul.mubr.f32.vlgmr.msra.gmra.mrb[22].mxu1 %v1795_v59 }
 0x492   :  { %4221 = vmatpush1.bf16.msra.mxu0 %v5414_v22  ;;  %4253 = vmatpush1.bf16.msra.mxu1 %v5423_v25 }
 0x493   :  { %4223 = vmatprep.subr.bf16.mxu0 %v5436_v29  ;;  %4255 = vmatprep.subr.bf16.mxu1 %v5452_v34 }
 0x494   :  { %2035 = vmatprep.mubr.f32.mxu0 %v7415_v14  ;;  %2106 = vmatprep.mubr.f32.mxu1 %v7415_v14 }
 0x496   :  { %4225 = vmatpush1.bf16.msra.mxu0 %v5454_v35  ;;  %4257 = vmatpush1.bf16.msra.mxu1 %v5464_v38 }
 0x497   :  { %4227 = vmatprep.subr.bf16.mxu0 %v5477_v42  ;;  %4259 = vmatprep.subr.bf16.mxu1 %v5493_v47 }
 0x49a   :  { %4229 = vmatpush1.bf16.msra.mxu0 %v5503_v50  ;;  %4261 = vmatpush1.bf16.msra.mxu1 %v5516_v54 }
 0x49b   :  { %4231 = vmatprep.subr.bf16.mxu0 %v5529_v58  ;;  %4263 = vmatprep.subr.bf16.mxu1 %v5539_v61 }
 0x49e   :  { %4233 = vmatpush1.bf16.msra.mxu0 %v5552_v1  ;;  %4265 = vmatpush1.bf16.msra.mxu1 %v5562_v5 }
 0x49f   :  { %4235 = vmatprep.subr.bf16.mxu0 %v5572_v8  ;;  %4267 = vmatprep.subr.bf16.mxu1 %v5582_v11 }
 0x4a2   :  { %4237 = vmatpush1.bf16.msra.mxu0 %v5595_v15  ;;  %4269 = vmatpush1.bf16.msra.mxu1 %v5605_v19 }
 0x4a3   :  { %4239 = vmatprep.subr.bf16.mxu0 %v5615_v24  ;;  %4271 = vmatprep.subr.bf16.mxu1 %v5625_v28 }
 0x4a6   :  { %4241 = vmatpush1.bf16.msra.mxu0 %v5638_v33  ;;  %4273 = vmatpush1.bf16.msra.mxu1 %v5648_v39 }
 0x4a7   :  { %4243 = vmatprep.subr.bf16.mxu0 %v5658_v43  ;;  %4275 = vmatprep.subr.bf16.mxu1 %v5668_v46 }
 0x4aa   :  { %4245 = vmatpush1.bf16.msra.mxu0 %v5681_v52  ;;  %4277 = vmatpush1.bf16.msra.mxu1 %v5691_v56 }
 0x4ab   :  { %4247 = vmatprep.subr.bf16.mxu0 %v5701_v60  ;;  %4279 = vmatprep.subr.bf16.mxu1 %v5711_v0 }
 0x4ae   :  { %4249 = vmatpush1.bf16.msra.mxu0 %v5724_v7  ;;  %4281 = vmatpush1.bf16.msra.mxu1 %v5734_v12 }
 0x4af   :  { %4283 = vmatprep.subr.bf16.mxu0 %v5747_v18  ;;  %4347 = vmatprep.subr.bf16.mxu1 %v5760_v27 }
 0x4b1   :  { %2036 = vmatmul.mubr.f32.vlgmr.msra.gmra.mrb[8].mxu0 %v1795_v59  ;;  %2107 = vmatmul.mubr.f32.vlgmr.msra.gmra.mrb[8].mxu1 %v1795_v59  ;;  %v7610_v59 = vld [vmem:[#allocation21_spill] sm:$0xff] }
 0x4b2   :  { %4285 = vmatpush1.bf16.msra.mxu0 %v5773_v36  ;;  %4349 = vmatpush1.bf16.msra.mxu1 %v5777_v37 }
 0x4b3   :  { %4287 = vmatprep.subr.bf16.mxu0 %v5779_v40  ;;  %4351 = vmatprep.subr.bf16.mxu1 %v5792_v48 }
 0x4b6   :  { %4289 = vmatpush1.bf16.msra.mxu0 %v5814_v62  ;;  %4353 = vmatpush1.bf16.msra.mxu1 %v5818_v63 }
 0x4b7   :  { %4291 = vmatprep.subr.bf16.mxu0 %v7594_v31  ;;  %4355 = vmatprep.subr.bf16.mxu1 %v7595_v49 }
 0x4ba   :  { %4293 = vmatpush1.bf16.msra.mxu0 %v7596_v6  ;;  %4357 = vmatpush1.bf16.msra.mxu1 %v7597_v20 }
 0x4bb   :  { %4295 = vmatprep.subr.bf16.mxu0 %v7598_v53  ;;  %4359 = vmatprep.subr.bf16.mxu1 %v7599_v30  ;;  %v7652_v30 = vld [vmem:[#allocation64_spill] sm:$0xff] }
 0x4be   :  { %4297 = vmatpush1.bf16.msra.mxu0 %v7600_v41  ;;  %4361 = vmatpush1.bf16.msra.mxu1 %v7601_v2  ;;  %v7611_v41 = vld [vmem:[#allocation22_spill] sm:$0xff]  ;;  %v7612_v2 = vld [vmem:[#allocation23_spill] sm:$0xff] }
 0x4bf   :  { %4299 = vmatprep.subr.bf16.mxu0 %v7602_v57  ;;  %4363 = vmatprep.subr.bf16.mxu1 %v7603_v55  ;;  %v7613_v57 = vld [vmem:[#allocation24_spill] sm:$0xff]  ;;  %v7614_v55 = vld [vmem:[#allocation25_spill] sm:$0xff] }
 0x4c2   :  { %4301 = vmatpush1.bf16.msra.mxu0 %v7604_v51  ;;  %4365 = vmatpush1.bf16.msra.mxu1 %v7605_v10  ;;  %v7615_v51 = vld [vmem:[#allocation26_spill] sm:$0xff]  ;;  %v7616_v10 = vld [vmem:[#allocation27_spill] sm:$0xff] }
 0x4c3   :  { %4303 = vmatprep.subr.bf16.mxu0 %v7606_v32  ;;  %4367 = vmatprep.subr.bf16.mxu1 %v7607_v17  ;;  %v7617_v32 = vld [vmem:[#allocation28_spill] sm:$0xff]  ;;  %v7618_v17 = vld [vmem:[#allocation29_spill] sm:$0xff] }
 0x4c6   :  { %4305 = vmatpush1.bf16.msra.mxu0 %v7608_v23  ;;  %4369 = vmatpush1.bf16.msra.mxu1 %v7609_v3  ;;  %v7619_v23 = vld [vmem:[#allocation30_spill] sm:$0xff]  ;;  %v7620_v3 = vld [vmem:[#allocation31_spill] sm:$0xff] }
 0x4c7   :  { %4307 = vmatprep.subr.bf16.mxu0 %v7610_v59  ;;  %4371 = vmatprep.subr.bf16.mxu1 %v7611_v41  ;;  %v7621_v59 = vld [vmem:[#allocation32_spill] sm:$0xff]  ;;  %v7622_v41 = vld [vmem:[#allocation33_spill] sm:$0xff] }
 0x4ca   :  { %4309 = vmatpush1.bf16.msra.mxu0 %v7612_v2  ;;  %4373 = vmatpush1.bf16.msra.mxu1 %v7613_v57  ;;  %v7623_v2 = vld [vmem:[#allocation34_spill] sm:$0xff]  ;;  %v7624_v57 = vld [vmem:[#allocation35_spill] sm:$0xff] }
 0x4cb   :  { %4311 = vmatprep.subr.bf16.mxu0 %v7614_v55  ;;  %4375 = vmatprep.subr.bf16.mxu1 %v7615_v51  ;;  %v7625_v55 = vld [vmem:[#allocation36_spill] sm:$0xff]  ;;  %v7626_v51 = vld [vmem:[#allocation37_spill] sm:$0xff] }
 0x4ce   :  { %4313 = vmatpush1.bf16.msra.mxu0 %v7616_v10  ;;  %4377 = vmatpush1.bf16.msra.mxu1 %v7617_v32  ;;  %v7627_v10 = vld [vmem:[#allocation38_spill] sm:$0xff]  ;;  %v7628_v32 = vld [vmem:[#allocation39_spill] sm:$0xff] }
 0x4cf   :  { %4315 = vmatprep.subr.bf16.mxu0 %v7618_v17  ;;  %4379 = vmatprep.subr.bf16.mxu1 %v7619_v23  ;;  %v7629_v17 = vld [vmem:[#allocation40_spill] sm:$0xff]  ;;  %v7630_v23 = vld [vmem:[#allocation41_spill] sm:$0xff] }
 0x4d2   :  { %4317 = vmatpush1.bf16.msra.mxu0 %v7620_v3  ;;  %4381 = vmatpush1.bf16.msra.mxu1 %v7621_v59  ;;  %v7631_v3 = vld [vmem:[#allocation42_spill] sm:$0xff]  ;;  %v7632_v59 = vld [vmem:[#allocation43_spill] sm:$0xff] }
 0x4d3   :  { %4319 = vmatprep.subr.bf16.mxu0 %v7622_v41  ;;  %4383 = vmatprep.subr.bf16.mxu1 %v7623_v2  ;;  %v7633_v41 = vld [vmem:[#allocation44_spill] sm:$0xff]  ;;  %v7634_v2 = vld [vmem:[#allocation45_spill] sm:$0xff] }
 0x4d6   :  { %4321 = vmatpush1.bf16.msra.mxu0 %v7624_v57  ;;  %4385 = vmatpush1.bf16.msra.mxu1 %v7625_v55  ;;  %v7635_v57 = vld [vmem:[#allocation46_spill] sm:$0xff]  ;;  %v7636_v55 = vld [vmem:[#allocation47_spill] sm:$0xff] }
 0x4d7   :  { %4323 = vmatprep.subr.bf16.mxu0 %v7626_v51  ;;  %4387 = vmatprep.subr.bf16.mxu1 %v7627_v10  ;;  %v7637_v51 = vld [vmem:[#allocation48_spill] sm:$0xff]  ;;  %v7638_v10 = vld [vmem:[#allocation49_spill] sm:$0xff] }
 0x4da   :  { %4325 = vmatpush1.bf16.msra.mxu0 %v7628_v32  ;;  %4389 = vmatpush1.bf16.msra.mxu1 %v7629_v17  ;;  %v7639_v32 = vld [vmem:[#allocation50_spill] sm:$0xff]  ;;  %v7640_v17 = vld [vmem:[#allocation51_spill] sm:$0xff] }
 0x4db   :  { %4327 = vmatprep.subr.bf16.mxu0 %v7630_v23  ;;  %4391 = vmatprep.subr.bf16.mxu1 %v7631_v3  ;;  %v7641_v23 = vld [vmem:[#allocation52_spill] sm:$0xff]  ;;  %v7642_v3 = vld [vmem:[#allocation53_spill] sm:$0xff] }
 0x4de   :  { %4329 = vmatpush1.bf16.msra.mxu0 %v7632_v59  ;;  %4393 = vmatpush1.bf16.msra.mxu1 %v7633_v41  ;;  %v7643_v59 = vld [vmem:[#allocation54_spill] sm:$0xff]  ;;  %v7644_v41 = vld [vmem:[#allocation55_spill] sm:$0xff] }
 0x4df   :  { %4331 = vmatprep.subr.bf16.mxu0 %v7634_v2  ;;  %4395 = vmatprep.subr.bf16.mxu1 %v7635_v57  ;;  %v7645_v2 = vld [vmem:[#allocation56_spill] sm:$0xff]  ;;  %v7646_v57 = vld [vmem:[#allocation57_spill] sm:$0xff] }
 0x4e2   :  { %4333 = vmatpush1.bf16.msra.mxu0 %v7636_v55  ;;  %4397 = vmatpush1.bf16.msra.mxu1 %v7637_v51  ;;  %v7647_v55 = vld [vmem:[#allocation58_spill] sm:$0xff]  ;;  %v7648_v51 = vld [vmem:[#allocation59_spill] sm:$0xff] }
 0x4e3   :  { %4335 = vmatprep.subr.bf16.mxu0 %v7638_v10  ;;  %4399 = vmatprep.subr.bf16.mxu1 %v7639_v32  ;;  %v7649_v10 = vld [vmem:[#allocation60_spill] sm:$0xff]  ;;  %v7650_v32 = vld [vmem:[#allocation3_spill] sm:$0xff] }
 0x4e6   :  { %4337 = vmatpush1.bf16.msra.mxu0 %v7640_v17  ;;  %4401 = vmatpush1.bf16.msra.mxu1 %v7641_v23  ;;  %v7651_v17 = vld [vmem:[#allocation4_spill] sm:$0xff] }
 0x4e7   :  { %4339 = vmatprep.subr.bf16.mxu0 %v7642_v3  ;;  %4403 = vmatprep.subr.bf16.mxu1 %v7643_v59 }
 0x4ea   :  { %4341 = vmatpush1.bf16.msra.mxu0 %v7644_v41  ;;  %4405 = vmatpush1.bf16.msra.mxu1 %v7645_v2 }
 0x4eb   :  { %4343 = vmatprep.subr.bf16.mxu0 %v7646_v57  ;;  %4407 = vmatprep.subr.bf16.mxu1 %v7647_v55  ;;  %v7653_v55 = vld [vmem:[#allocation66_spill] sm:$0xff] }
 0x4ee   :  { %4345 = vmatpush1.bf16.msra.mxu0 %v7648_v51  ;;  %4409 = vmatpush1.bf16.msra.mxu1 %v7649_v10 }
 0x4ef   :  { %4411 = vmatprep.subr.bf16.mxu0 %v7650_v32  ;;  %4443 = vmatprep.subr.bf16.mxu1 %v7651_v17 }
 0x564   :  { %v1862_v23 = vpop.f32.mrb[22].mxu0  ;;  %v1933_v3 = vpop.f32.mrb[22].mxu1 }
 0x565   :  { %v1863_v59 = vadd.f32 %v1862_v23, %v7652_v30  ;;  %v1864_v53 = vpop.f32.mrb[23].mxu0  ;;  %v1935_v41 = vpop.f32.mrb[23].mxu1  ;;  %v1934_v10 = vadd.f32 %v1933_v3, %v7533_v44 }
 0x566   :  { %v1865_v2 = vadd.f32 %v1864_v53, %v7531_v13  ;;  %v1936_v51 = vadd.f32 %v1935_v41, %v7653_v55 }
 0x567   :  { %v3408_v20 = vmul.f32 -1.442695, %v1863_v59 }
 0x568   :  { %v3409_v57 = vmul.f32 -1.442695, %v1865_v2  ;;  %v3410_v6 = vmul.f32 -1.442695, %v1936_v51 }
 0x569   :  { %5163 = vpow2.f32 %v3408_v20 }
 0x56a   :  { %5165 = vpow2.f32 %v3409_v57 }
 0x56b   :  { %5167 = vpow2.f32 %v3410_v6 }
 0x56c   :  { %5169 = vtanh.f32 %v1934_v10 }
 0x573   :  { %v5164_v32 = vpop.eup %5163 }
 0x574   :  { %v5166_v49 = vpop.eup %5165  ;;  %v1941_v17 = vadd.f32 1.0, %v5164_v32 }
 0x575   :  { %v1947_v31 = vadd.f32 1.0, %v5166_v49  ;;  %v5168_v23 = vpop.eup %5167 }
 0x576   :  { %5171 = vrcp.f32 %v1941_v17  ;;  %v5170_v30 = vpop.eup %5169  ;;  %v1954_v20 = vadd.f32 1.0, %v5168_v23 }
 0x577   :  { %5173 = vrcp.f32 %v1947_v31 }
 0x578   :  { %5175 = vrcp.f32 %v1954_v20 }
 0x580   :  { %v5172_v53 = vpop.eup %5171 }
 0x581   :  { %v5174_v59 = vpop.eup %5173  ;;  %v1958_v2 = vmul.f32 %v5172_v53, %v5170_v30 }
 0x582   :  { %v1957_v57 = vmul.f32 %v5174_v59, %v6710_v26  ;;  %v5176_v26 = vpop.eup %5175 }
 0x584   :  { %v2037_v41 = vpop.f32.mrb[8].mxu0  ;;  %v2108_v51 = vpop.f32.mrb[8].mxu1  ;;  %v6827_v55 = vadd.f32 %v1958_v2, %v1957_v57 }
 0x585   :  { %v4994_v32 = vadd.f32 %v2037_v41, %v7473_v45  ;;  %v2039_v6 = vpop.f32.mrb[9].mxu0  ;;  %v2110_v10 = vpop.f32.mrb[9].mxu1  ;;  %v5010_v53 = vadd.f32 %v2108_v51, %v6343_v21 }
 0x586   :  { %v4995_v49 = vadd.f32 %v2039_v6, %v7474_v16  ;;  %5177 = vtanh.f32 %v6827_v55  ;;  %v5011_v30 = vadd.f32 %v2110_v10, %v7475_v9 }
 0x587   :  { %v3412_v31 = vmul.f32 -1.442695, %v4994_v32 }
 0x588   :  { %v3413_v17 = vmul.f32 -1.442695, %v4995_v49  ;;  %v3414_v23 = vmul.f32 -1.442695, %v5011_v30 }
 0x589   :  { %5179 = vpow2.f32 %v3412_v31 }
 0x58a   :  { %5181 = vpow2.f32 %v3413_v17 }
 0x58b   :  { %5183 = vpow2.f32 %v3414_v23 }
 0x58c   :  { %5185 = vtanh.f32 %v5010_v53  ;;  %v7655_v53 = vld [vmem:[#allocation6_spill] sm:$0xff] }
 0x590   :  { %v5178_v3 = vpop.eup %5177 }
 0x591   :  { %v1961_v59 = vmul.f32 %v5178_v3, %v5176_v26 }
 0x593   :  { %v5180_v2 = vpop.eup %5179  ;;  %3411 = vst [vmem:[%s7215_s8 + $0x18] sm:$0xff] %v1961_v59  ;;  %2205 = vmatprep.mubr.f32.mxu0 %v1961_v59  ;;  %2276 = vmatprep.mubr.f32.mxu1 %v1961_v59  ;;  %v7656_v59 = vld [vmem:[#allocation7_spill] sm:$0xff] }
 0x594   :  { %v5182_v20 = vpop.eup %5181  ;;  %v2120_v57 = vadd.f32 1.0, %v5180_v2  ;;  %v7657_v2 = vld [vmem:[#allocation8_spill] sm:$0xff] }
 0x595   :  { %v2126_v41 = vadd.f32 1.0, %v5182_v20  ;;  %v5184_v32 = vpop.eup %5183  ;;  %v7658_v20 = vld [vmem:[#allocation9_spill] sm:$0xff] }
 0x596   :  { %5187 = vrcp.f32 %v2120_v57  ;;  %v5186_v6 = vpop.eup %5185  ;;  %v2133_v31 = vadd.f32 1.0, %v5184_v32  ;;  %v7659_v57 = vld [vmem:[#allocation10_spill] sm:$0xff]  ;;  %v7661_v32 = vld [vmem:[#allocation12_spill] sm:$0xff] }
 0x597   :  { %5189 = vrcp.f32 %v2126_v41  ;;  %v7660_v41 = vld [vmem:[#allocation11_spill] sm:$0xff] }
 0x598   :  { %5191 = vrcp.f32 %v2133_v31  ;;  %v7666_v31 = vld [vmem:[#allocation17_spill] sm:$0xff] }
 0x5a0   :  { %v5188_v10 = vpop.eup %5187 }
 0x5a1   :  { %v5190_v49 = vpop.eup %5189  ;;  %v2137_v51 = vmul.f32 %v5188_v10, %v5186_v6  ;;  %v7662_v6 = vld [vmem:[#allocation13_spill] sm:$0xff]  ;;  %v7663_v10 = vld [vmem:[#allocation14_spill] sm:$0xff] }
 0x5a2   :  { %v2136_v17 = vmul.f32 %v5190_v49, %v6721_v4  ;;  %v5192_v26 = vpop.eup %5191  ;;  %v7654_v4 = vld [vmem:[#allocation5_spill] sm:$0xff]  ;;  %v7664_v49 = vld [vmem:[#allocation15_spill] sm:$0xff] }
 0x5a4   :  { %v6838_v30 = vadd.f32 %v2137_v51, %v2136_v17  ;;  %v7665_v51 = vld [vmem:[#allocation16_spill] sm:$0xff]  ;;  %v7667_v17 = vld [vmem:[#allocation18_spill] sm:$0xff] }
 0x5a6   :  { %5193 = vtanh.f32 %v6838_v30 }
 0x5b0   :  { %v5194_v3 = vpop.eup %5193 }
 0x5b1   :  { %v2140_v23 = vmul.f32 %v5194_v3, %v5192_v26  ;;  %v7668_v26 = vld [vmem:[#allocation19_spill] sm:$0xff]  ;;  %v7669_v3 = vld [vmem:[#allocation20_spill] sm:$0xff] }
 0x5b3   :  { %2206 = vmatmul.mubr.f32.vlgmr.msra.gmra.mrb[24].mxu0 %v2140_v23  ;;  %2277 = vmatmul.mubr.f32.vlgmr.msra.gmra.mrb[24].mxu1 %v2140_v23 }
 0x5b4   :  { %4413 = vmatpush1.bf16.msra.mxu0 %v5414_v22  ;;  %4445 = vmatpush1.bf16.msra.mxu1 %v5423_v25 }
 0x5b5   :  { %4415 = vmatprep.subr.bf16.mxu0 %v5436_v29  ;;  %4447 = vmatprep.subr.bf16.mxu1 %v5452_v34 }
 0x5b6   :  { %2380 = vmatprep.mubr.f32.mxu0 %v7415_v14  ;;  %2451 = vmatprep.mubr.f32.mxu1 %v7415_v14 }
 0x5b8   :  { %4417 = vmatpush1.bf16.msra.mxu0 %v5454_v35  ;;  %4449 = vmatpush1.bf16.msra.mxu1 %v5464_v38 }
 0x5b9   :  { %4419 = vmatprep.subr.bf16.mxu0 %v5477_v42  ;;  %4451 = vmatprep.subr.bf16.mxu1 %v5493_v47 }
 0x5bc   :  { %4421 = vmatpush1.bf16.msra.mxu0 %v5503_v50  ;;  %4453 = vmatpush1.bf16.msra.mxu1 %v5516_v54 }
 0x5bd   :  { %4423 = vmatprep.subr.bf16.mxu0 %v5529_v58  ;;  %4455 = vmatprep.subr.bf16.mxu1 %v5539_v61 }
 0x5c0   :  { %4425 = vmatpush1.bf16.msra.mxu0 %v5552_v1  ;;  %4457 = vmatpush1.bf16.msra.mxu1 %v5562_v5 }
 0x5c1   :  { %4427 = vmatprep.subr.bf16.mxu0 %v5572_v8  ;;  %4459 = vmatprep.subr.bf16.mxu1 %v5582_v11 }
 0x5c4   :  { %4429 = vmatpush1.bf16.msra.mxu0 %v5595_v15  ;;  %4461 = vmatpush1.bf16.msra.mxu1 %v5605_v19 }
 0x5c5   :  { %4431 = vmatprep.subr.bf16.mxu0 %v5615_v24  ;;  %4463 = vmatprep.subr.bf16.mxu1 %v5625_v28 }
 0x5c8   :  { %4433 = vmatpush1.bf16.msra.mxu0 %v5638_v33  ;;  %4465 = vmatpush1.bf16.msra.mxu1 %v5648_v39 }
 0x5c9   :  { %4435 = vmatprep.subr.bf16.mxu0 %v5658_v43  ;;  %4467 = vmatprep.subr.bf16.mxu1 %v5668_v46 }
 0x5cc   :  { %4437 = vmatpush1.bf16.msra.mxu0 %v5681_v52  ;;  %4469 = vmatpush1.bf16.msra.mxu1 %v5691_v56 }
 0x5cd   :  { %4439 = vmatprep.subr.bf16.mxu0 %v5701_v60  ;;  %4471 = vmatprep.subr.bf16.mxu1 %v5711_v0 }
 0x5d0   :  { %4441 = vmatpush1.bf16.msra.mxu0 %v5724_v7  ;;  %4473 = vmatpush1.bf16.msra.mxu1 %v5734_v12 }
 0x5d1   :  { %4475 = vmatprep.subr.bf16.mxu0 %v5747_v18  ;;  %4539 = vmatprep.subr.bf16.mxu1 %v5760_v27 }
 0x5d3   :  { %2381 = vmatmul.mubr.f32.vlgmr.msra.gmra.mrb[10].mxu0 %v2140_v23  ;;  %2452 = vmatmul.mubr.f32.vlgmr.msra.gmra.mrb[10].mxu1 %v2140_v23  ;;  %v7670_v23 = vld [vmem:[#allocation21_spill] sm:$0xff] }
 0x5d4   :  { %4477 = vmatpush1.bf16.msra.mxu0 %v5773_v36  ;;  %4541 = vmatpush1.bf16.msra.mxu1 %v5777_v37 }
 0x5d5   :  { %4479 = vmatprep.subr.bf16.mxu0 %v5779_v40  ;;  %4543 = vmatprep.subr.bf16.mxu1 %v5792_v48 }
 0x5d8   :  { %4481 = vmatpush1.bf16.msra.mxu0 %v5814_v62  ;;  %4545 = vmatpush1.bf16.msra.mxu1 %v5818_v63 }
 0x5d9   :  { %4483 = vmatprep.subr.bf16.mxu0 %v7654_v4  ;;  %4547 = vmatprep.subr.bf16.mxu1 %v7655_v53 }
 0x5dc   :  { %4485 = vmatpush1.bf16.msra.mxu0 %v7656_v59  ;;  %4549 = vmatpush1.bf16.msra.mxu1 %v7657_v2 }
 0x5dd   :  { %4487 = vmatprep.subr.bf16.mxu0 %v7658_v20  ;;  %4551 = vmatprep.subr.bf16.mxu1 %v7659_v57  ;;  %v7712_v57 = vld [vmem:[#allocation64_spill] sm:$0xff] }
 0x5e0   :  { %4489 = vmatpush1.bf16.msra.mxu0 %v7660_v41  ;;  %4553 = vmatpush1.bf16.msra.mxu1 %v7661_v32  ;;  %v7671_v41 = vld [vmem:[#allocation22_spill] sm:$0xff]  ;;  %v7672_v32 = vld [vmem:[#allocation23_spill] sm:$0xff] }
 0x5e1   :  { %4491 = vmatprep.subr.bf16.mxu0 %v7662_v6  ;;  %4555 = vmatprep.subr.bf16.mxu1 %v7663_v10  ;;  %v7673_v6 = vld [vmem:[#allocation24_spill] sm:$0xff]  ;;  %v7674_v10 = vld [vmem:[#allocation25_spill] sm:$0xff] }
 0x5e4   :  { %4493 = vmatpush1.bf16.msra.mxu0 %v7664_v49  ;;  %4557 = vmatpush1.bf16.msra.mxu1 %v7665_v51  ;;  %v7675_v49 = vld [vmem:[#allocation26_spill] sm:$0xff]  ;;  %v7676_v51 = vld [vmem:[#allocation27_spill] sm:$0xff] }
 0x5e5   :  { %4495 = vmatprep.subr.bf16.mxu0 %v7666_v31  ;;  %4559 = vmatprep.subr.bf16.mxu1 %v7667_v17  ;;  %v7677_v31 = vld [vmem:[#allocation28_spill] sm:$0xff]  ;;  %v7678_v17 = vld [vmem:[#allocation29_spill] sm:$0xff] }
 0x5e8   :  { %4497 = vmatpush1.bf16.msra.mxu0 %v7668_v26  ;;  %4561 = vmatpush1.bf16.msra.mxu1 %v7669_v3  ;;  %v7679_v26 = vld [vmem:[#allocation30_spill] sm:$0xff]  ;;  %v7680_v3 = vld [vmem:[#allocation31_spill] sm:$0xff] }
 0x5e9   :  { %4499 = vmatprep.subr.bf16.mxu0 %v7670_v23  ;;  %4563 = vmatprep.subr.bf16.mxu1 %v7671_v41  ;;  %v7681_v23 = vld [vmem:[#allocation32_spill] sm:$0xff]  ;;  %v7682_v41 = vld [vmem:[#allocation33_spill] sm:$0xff] }
 0x5ec   :  { %4501 = vmatpush1.bf16.msra.mxu0 %v7672_v32  ;;  %4565 = vmatpush1.bf16.msra.mxu1 %v7673_v6  ;;  %v7683_v32 = vld [vmem:[#allocation34_spill] sm:$0xff]  ;;  %v7684_v6 = vld [vmem:[#allocation35_spill] sm:$0xff] }
 0x5ed   :  { %4503 = vmatprep.subr.bf16.mxu0 %v7674_v10  ;;  %4567 = vmatprep.subr.bf16.mxu1 %v7675_v49  ;;  %v7685_v10 = vld [vmem:[#allocation36_spill] sm:$0xff]  ;;  %v7686_v49 = vld [vmem:[#allocation37_spill] sm:$0xff] }
 0x5f0   :  { %4505 = vmatpush1.bf16.msra.mxu0 %v7676_v51  ;;  %4569 = vmatpush1.bf16.msra.mxu1 %v7677_v31  ;;  %v7687_v51 = vld [vmem:[#allocation38_spill] sm:$0xff]  ;;  %v7688_v31 = vld [vmem:[#allocation39_spill] sm:$0xff] }
 0x5f1   :  { %4507 = vmatprep.subr.bf16.mxu0 %v7678_v17  ;;  %4571 = vmatprep.subr.bf16.mxu1 %v7679_v26  ;;  %v7689_v17 = vld [vmem:[#allocation40_spill] sm:$0xff]  ;;  %v7690_v26 = vld [vmem:[#allocation41_spill] sm:$0xff] }
 0x5f4   :  { %4509 = vmatpush1.bf16.msra.mxu0 %v7680_v3  ;;  %4573 = vmatpush1.bf16.msra.mxu1 %v7681_v23  ;;  %v7691_v3 = vld [vmem:[#allocation42_spill] sm:$0xff]  ;;  %v7692_v23 = vld [vmem:[#allocation43_spill] sm:$0xff] }
 0x5f5   :  { %4511 = vmatprep.subr.bf16.mxu0 %v7682_v41  ;;  %4575 = vmatprep.subr.bf16.mxu1 %v7683_v32  ;;  %v7693_v41 = vld [vmem:[#allocation44_spill] sm:$0xff]  ;;  %v7694_v32 = vld [vmem:[#allocation45_spill] sm:$0xff] }
 0x5f8   :  { %4513 = vmatpush1.bf16.msra.mxu0 %v7684_v6  ;;  %4577 = vmatpush1.bf16.msra.mxu1 %v7685_v10  ;;  %v7695_v6 = vld [vmem:[#allocation46_spill] sm:$0xff]  ;;  %v7696_v10 = vld [vmem:[#allocation47_spill] sm:$0xff] }
 0x5f9   :  { %4515 = vmatprep.subr.bf16.mxu0 %v7686_v49  ;;  %4579 = vmatprep.subr.bf16.mxu1 %v7687_v51  ;;  %v7697_v49 = vld [vmem:[#allocation48_spill] sm:$0xff]  ;;  %v7698_v51 = vld [vmem:[#allocation49_spill] sm:$0xff] }
 0x5fc   :  { %4517 = vmatpush1.bf16.msra.mxu0 %v7688_v31  ;;  %4581 = vmatpush1.bf16.msra.mxu1 %v7689_v17  ;;  %v7699_v31 = vld [vmem:[#allocation50_spill] sm:$0xff]  ;;  %v7700_v17 = vld [vmem:[#allocation51_spill] sm:$0xff] }
 0x5fd   :  { %4519 = vmatprep.subr.bf16.mxu0 %v7690_v26  ;;  %4583 = vmatprep.subr.bf16.mxu1 %v7691_v3  ;;  %v7701_v26 = vld [vmem:[#allocation52_spill] sm:$0xff]  ;;  %v7702_v3 = vld [vmem:[#allocation53_spill] sm:$0xff] }
 0x600   :  { %4521 = vmatpush1.bf16.msra.mxu0 %v7692_v23  ;;  %4585 = vmatpush1.bf16.msra.mxu1 %v7693_v41  ;;  %v7703_v23 = vld [vmem:[#allocation54_spill] sm:$0xff]  ;;  %v7704_v41 = vld [vmem:[#allocation55_spill] sm:$0xff] }
 0x601   :  { %4523 = vmatprep.subr.bf16.mxu0 %v7694_v32  ;;  %4587 = vmatprep.subr.bf16.mxu1 %v7695_v6  ;;  %v7705_v32 = vld [vmem:[#allocation56_spill] sm:$0xff]  ;;  %v7706_v6 = vld [vmem:[#allocation57_spill] sm:$0xff] }
 0x604   :  { %4525 = vmatpush1.bf16.msra.mxu0 %v7696_v10  ;;  %4589 = vmatpush1.bf16.msra.mxu1 %v7697_v49  ;;  %v7707_v10 = vld [vmem:[#allocation58_spill] sm:$0xff]  ;;  %v7708_v49 = vld [vmem:[#allocation59_spill] sm:$0xff] }
 0x605   :  { %4527 = vmatprep.subr.bf16.mxu0 %v7698_v51  ;;  %4591 = vmatprep.subr.bf16.mxu1 %v7699_v31  ;;  %v7709_v51 = vld [vmem:[#allocation60_spill] sm:$0xff]  ;;  %v7710_v31 = vld [vmem:[#allocation3_spill] sm:$0xff] }
 0x608   :  { %4529 = vmatpush1.bf16.msra.mxu0 %v7700_v17  ;;  %4593 = vmatpush1.bf16.msra.mxu1 %v7701_v26  ;;  %v7711_v17 = vld [vmem:[#allocation4_spill] sm:$0xff] }
 0x609   :  { %4531 = vmatprep.subr.bf16.mxu0 %v7702_v3  ;;  %4595 = vmatprep.subr.bf16.mxu1 %v7703_v23 }
 0x60c   :  { %4533 = vmatpush1.bf16.msra.mxu0 %v7704_v41  ;;  %4597 = vmatpush1.bf16.msra.mxu1 %v7705_v32 }
 0x60d   :  { %4535 = vmatprep.subr.bf16.mxu0 %v7706_v6  ;;  %4599 = vmatprep.subr.bf16.mxu1 %v7707_v10  ;;  %v7713_v10 = vld [vmem:[#allocation66_spill] sm:$0xff] }
 0x610   :  { %4537 = vmatpush1.bf16.msra.mxu0 %v7708_v49  ;;  %4601 = vmatpush1.bf16.msra.mxu1 %v7709_v51 }
 0x611   :  { %4603 = vmatprep.subr.bf16.mxu0 %v7710_v31  ;;  %4635 = vmatprep.subr.bf16.mxu1 %v7711_v17 }
 0x686   :  { %v2207_v26 = vpop.f32.mrb[24].mxu0  ;;  %v2278_v3 = vpop.f32.mrb[24].mxu1 }
 0x687   :  { %v2208_v23 = vadd.f32 %v2207_v26, %v7712_v57  ;;  %v2209_v20 = vpop.f32.mrb[25].mxu0  ;;  %v2280_v41 = vpop.f32.mrb[25].mxu1  ;;  %v2279_v51 = vadd.f32 %v2278_v3, %v7533_v44 }
 0x688   :  { %v2210_v32 = vadd.f32 %v2209_v20, %v7531_v13  ;;  %v2281_v49 = vadd.f32 %v2280_v41, %v7713_v10 }
 0x689   :  { %v3415_v2 = vmul.f32 -1.442695, %v2208_v23 }
 0x68a   :  { %v3416_v6 = vmul.f32 -1.442695, %v2210_v32  ;;  %v3417_v59 = vmul.f32 -1.442695, %v2281_v49 }
 0x68b   :  { %5195 = vpow2.f32 %v3415_v2 }
 0x68c   :  { %5197 = vpow2.f32 %v3416_v6 }
 0x68d   :  { %5199 = vpow2.f32 %v3417_v59 }
 0x68e   :  { %5201 = vtanh.f32 %v2279_v51 }
 0x695   :  { %v5196_v31 = vpop.eup %5195 }
 0x696   :  { %v5198_v53 = vpop.eup %5197  ;;  %v2286_v17 = vadd.f32 1.0, %v5196_v31 }
 0x697   :  { %v2292_v4 = vadd.f32 1.0, %v5198_v53  ;;  %v5200_v26 = vpop.eup %5199 }
 0x698   :  { %5203 = vrcp.f32 %v2286_v17  ;;  %v5202_v57 = vpop.eup %5201  ;;  %v2299_v2 = vadd.f32 1.0, %v5200_v26 }
 0x699   :  { %5205 = vrcp.f32 %v2292_v4 }
 0x69a   :  { %5207 = vrcp.f32 %v2299_v2 }
 0x6a2   :  { %v5204_v20 = vpop.eup %5203 }
 0x6a3   :  { %v5206_v23 = vpop.eup %5205  ;;  %v2303_v32 = vmul.f32 %v5204_v20, %v5202_v57 }
 0x6a4   :  { %v2302_v6 = vmul.f32 %v5206_v23, %v6827_v55  ;;  %v5208_v55 = vpop.eup %5207 }
 0x6a6   :  { %v2382_v41 = vpop.f32.mrb[10].mxu0  ;;  %v2453_v49 = vpop.f32.mrb[10].mxu1  ;;  %v6944_v10 = vadd.f32 %v2303_v32, %v2302_v6 }
 0x6a7   :  { %v4996_v31 = vadd.f32 %v2382_v41, %v7473_v45  ;;  %v2384_v59 = vpop.f32.mrb[11].mxu0  ;;  %v2455_v51 = vpop.f32.mrb[11].mxu1  ;;  %v5012_v20 = vadd.f32 %v2453_v49, %v6343_v21 }
 0x6a8   :  { %v4997_v53 = vadd.f32 %v2384_v59, %v7474_v16  ;;  %5209 = vtanh.f32 %v6944_v10  ;;  %v5013_v57 = vadd.f32 %v2455_v51, %v7475_v9 }
 0x6a9   :  { %v3419_v4 = vmul.f32 -1.442695, %v4996_v31 }
 0x6aa   :  { %v3420_v17 = vmul.f32 -1.442695, %v4997_v53  ;;  %v3421_v26 = vmul.f32 -1.442695, %v5013_v57 }
 0x6ab   :  { %5211 = vpow2.f32 %v3419_v4 }
 0x6ac   :  { %5213 = vpow2.f32 %v3420_v17 }
 0x6ad   :  { %5215 = vpow2.f32 %v3421_v26 }
 0x6ae   :  { %5217 = vtanh.f32 %v5012_v20  ;;  %v7715_v20 = vld [vmem:[#allocation6_spill] sm:$0xff] }
 0x6b2   :  { %v5210_v3 = vpop.eup %5209 }
 0x6b3   :  { %v2306_v23 = vmul.f32 %v5210_v3, %v5208_v55 }
 0x6b5   :  { %v5212_v32 = vpop.eup %5211  ;;  %3418 = vst [vmem:[%s7215_s8 + $0x20] sm:$0xff] %v2306_v23  ;;  %2550 = vmatprep.mubr.f32.mxu0 %v2306_v23  ;;  %2621 = vmatprep.mubr.f32.mxu1 %v2306_v23  ;;  %v7716_v23 = vld [vmem:[#allocation7_spill] sm:$0xff] }
 0x6b6   :  { %v5214_v2 = vpop.eup %5213  ;;  %v2465_v6 = vadd.f32 1.0, %v5212_v32  ;;  %v7717_v32 = vld [vmem:[#allocation8_spill] sm:$0xff] }
 0x6b7   :  { %v2471_v41 = vadd.f32 1.0, %v5214_v2  ;;  %v5216_v31 = vpop.eup %5215  ;;  %v7718_v2 = vld [vmem:[#allocation9_spill] sm:$0xff] }
 0x6b8   :  { %5219 = vrcp.f32 %v2465_v6  ;;  %v5218_v59 = vpop.eup %5217  ;;  %v2478_v4 = vadd.f32 1.0, %v5216_v31  ;;  %v7719_v6 = vld [vmem:[#allocation10_spill] sm:$0xff]  ;;  %v7721_v31 = vld [vmem:[#allocation12_spill] sm:$0xff] }
 0x6b9   :  { %5221 = vrcp.f32 %v2471_v41  ;;  %v7720_v41 = vld [vmem:[#allocation11_spill] sm:$0xff] }
 0x6ba   :  { %5223 = vrcp.f32 %v2478_v4  ;;  %v7726_v4 = vld [vmem:[#allocation17_spill] sm:$0xff] }
 0x6c2   :  { %v5220_v51 = vpop.eup %5219 }
 0x6c3   :  { %v5222_v53 = vpop.eup %5221  ;;  %v2482_v49 = vmul.f32 %v5220_v51, %v5218_v59  ;;  %v7722_v59 = vld [vmem:[#allocation13_spill] sm:$0xff]  ;;  %v7723_v51 = vld [vmem:[#allocation14_spill] sm:$0xff] }
 0x6c4   :  { %v2481_v17 = vmul.f32 %v5222_v53, %v6838_v30  ;;  %v5224_v55 = vpop.eup %5223  ;;  %v7714_v30 = vld [vmem:[#allocation5_spill] sm:$0xff]  ;;  %v7724_v53 = vld [vmem:[#allocation15_spill] sm:$0xff] }
 0x6c6   :  { %v6955_v57 = vadd.f32 %v2482_v49, %v2481_v17  ;;  %v7725_v49 = vld [vmem:[#allocation16_spill] sm:$0xff]  ;;  %v7727_v17 = vld [vmem:[#allocation18_spill] sm:$0xff] }
 0x6c8   :  { %5225 = vtanh.f32 %v6955_v57 }
 0x6d2   :  { %v5226_v3 = vpop.eup %5225 }
 0x6d3   :  { %v2485_v26 = vmul.f32 %v5226_v3, %v5224_v55  ;;  %v7728_v55 = vld [vmem:[#allocation19_spill] sm:$0xff]  ;;  %v7729_v3 = vld [vmem:[#allocation20_spill] sm:$0xff] }
 0x6d5   :  { %2551 = vmatmul.mubr.f32.vlgmr.msra.gmra.mrb[26].mxu0 %v2485_v26  ;;  %2622 = vmatmul.mubr.f32.vlgmr.msra.gmra.mrb[26].mxu1 %v2485_v26 }
 0x6d6   :  { %4605 = vmatpush1.bf16.msra.mxu0 %v5414_v22  ;;  %4637 = vmatpush1.bf16.msra.mxu1 %v5423_v25 }
 0x6d7   :  { %4607 = vmatprep.subr.bf16.mxu0 %v5436_v29  ;;  %4639 = vmatprep.subr.bf16.mxu1 %v5452_v34 }
 0x6d8   :  { %2725 = vmatprep.mubr.f32.mxu0 %v7415_v14  ;;  %2796 = vmatprep.mubr.f32.mxu1 %v7415_v14 }
 0x6da   :  { %4609 = vmatpush1.bf16.msra.mxu0 %v5454_v35  ;;  %4641 = vmatpush1.bf16.msra.mxu1 %v5464_v38 }
 0x6db   :  { %4611 = vmatprep.subr.bf16.mxu0 %v5477_v42  ;;  %4643 = vmatprep.subr.bf16.mxu1 %v5493_v47 }
 0x6de   :  { %4613 = vmatpush1.bf16.msra.mxu0 %v5503_v50  ;;  %4645 = vmatpush1.bf16.msra.mxu1 %v5516_v54 }
 0x6df   :  { %4615 = vmatprep.subr.bf16.mxu0 %v5529_v58  ;;  %4647 = vmatprep.subr.bf16.mxu1 %v5539_v61 }
 0x6e2   :  { %4617 = vmatpush1.bf16.msra.mxu0 %v5552_v1  ;;  %4649 = vmatpush1.bf16.msra.mxu1 %v5562_v5 }
 0x6e3   :  { %4619 = vmatprep.subr.bf16.mxu0 %v5572_v8  ;;  %4651 = vmatprep.subr.bf16.mxu1 %v5582_v11 }
 0x6e6   :  { %4621 = vmatpush1.bf16.msra.mxu0 %v5595_v15  ;;  %4653 = vmatpush1.bf16.msra.mxu1 %v5605_v19 }
 0x6e7   :  { %4623 = vmatprep.subr.bf16.mxu0 %v5615_v24  ;;  %4655 = vmatprep.subr.bf16.mxu1 %v5625_v28 }
 0x6ea   :  { %4625 = vmatpush1.bf16.msra.mxu0 %v5638_v33  ;;  %4657 = vmatpush1.bf16.msra.mxu1 %v5648_v39 }
 0x6eb   :  { %4627 = vmatprep.subr.bf16.mxu0 %v5658_v43  ;;  %4659 = vmatprep.subr.bf16.mxu1 %v5668_v46 }
 0x6ee   :  { %4629 = vmatpush1.bf16.msra.mxu0 %v5681_v52  ;;  %4661 = vmatpush1.bf16.msra.mxu1 %v5691_v56 }
 0x6ef   :  { %4631 = vmatprep.subr.bf16.mxu0 %v5701_v60  ;;  %4663 = vmatprep.subr.bf16.mxu1 %v5711_v0 }
 0x6f2   :  { %4633 = vmatpush1.bf16.msra.mxu0 %v5724_v7  ;;  %4665 = vmatpush1.bf16.msra.mxu1 %v5734_v12 }
 0x6f3   :  { %4667 = vmatprep.subr.bf16.mxu0 %v5747_v18  ;;  %4731 = vmatprep.subr.bf16.mxu1 %v5760_v27 }
 0x6f5   :  { %2726 = vmatmul.mubr.f32.vlgmr.msra.gmra.mrb[12].mxu0 %v2485_v26  ;;  %2797 = vmatmul.mubr.f32.vlgmr.msra.gmra.mrb[12].mxu1 %v2485_v26  ;;  %v7730_v26 = vld [vmem:[#allocation21_spill] sm:$0xff] }
 0x6f6   :  { %4669 = vmatpush1.bf16.msra.mxu0 %v5773_v36  ;;  %4733 = vmatpush1.bf16.msra.mxu1 %v5777_v37 }
 0x6f7   :  { %4671 = vmatprep.subr.bf16.mxu0 %v5779_v40  ;;  %4735 = vmatprep.subr.bf16.mxu1 %v5792_v48 }
 0x6fa   :  { %4673 = vmatpush1.bf16.msra.mxu0 %v5814_v62  ;;  %4737 = vmatpush1.bf16.msra.mxu1 %v5818_v63 }
 0x6fb   :  { %4675 = vmatprep.subr.bf16.mxu0 %v7714_v30  ;;  %4739 = vmatprep.subr.bf16.mxu1 %v7715_v20 }
 0x6fe   :  { %4677 = vmatpush1.bf16.msra.mxu0 %v7716_v23  ;;  %4741 = vmatpush1.bf16.msra.mxu1 %v7717_v32 }
 0x6ff   :  { %4679 = vmatprep.subr.bf16.mxu0 %v7718_v2  ;;  %4743 = vmatprep.subr.bf16.mxu1 %v7719_v6  ;;  %v7772_v6 = vld [vmem:[#allocation64_spill] sm:$0xff] }
 0x702   :  { %4681 = vmatpush1.bf16.msra.mxu0 %v7720_v41  ;;  %4745 = vmatpush1.bf16.msra.mxu1 %v7721_v31  ;;  %v7731_v41 = vld [vmem:[#allocation22_spill] sm:$0xff]  ;;  %v7732_v31 = vld [vmem:[#allocation23_spill] sm:$0xff] }
 0x703   :  { %4683 = vmatprep.subr.bf16.mxu0 %v7722_v59  ;;  %4747 = vmatprep.subr.bf16.mxu1 %v7723_v51  ;;  %v7733_v59 = vld [vmem:[#allocation24_spill] sm:$0xff]  ;;  %v7734_v51 = vld [vmem:[#allocation25_spill] sm:$0xff] }
 0x706   :  { %4685 = vmatpush1.bf16.msra.mxu0 %v7724_v53  ;;  %4749 = vmatpush1.bf16.msra.mxu1 %v7725_v49  ;;  %v7735_v53 = vld [vmem:[#allocation26_spill] sm:$0xff]  ;;  %v7736_v49 = vld [vmem:[#allocation27_spill] sm:$0xff] }
 0x707   :  { %4687 = vmatprep.subr.bf16.mxu0 %v7726_v4  ;;  %4751 = vmatprep.subr.bf16.mxu1 %v7727_v17  ;;  %v7737_v4 = vld [vmem:[#allocation28_spill] sm:$0xff]  ;;  %v7738_v17 = vld [vmem:[#allocation29_spill] sm:$0xff] }
 0x70a   :  { %4689 = vmatpush1.bf16.msra.mxu0 %v7728_v55  ;;  %4753 = vmatpush1.bf16.msra.mxu1 %v7729_v3  ;;  %v7739_v55 = vld [vmem:[#allocation30_spill] sm:$0xff]  ;;  %v7740_v3 = vld [vmem:[#allocation31_spill] sm:$0xff] }
 0x70b   :  { %4691 = vmatprep.subr.bf16.mxu0 %v7730_v26  ;;  %4755 = vmatprep.subr.bf16.mxu1 %v7731_v41  ;;  %v7741_v26 = vld [vmem:[#allocation32_spill] sm:$0xff]  ;;  %v7742_v41 = vld [vmem:[#allocation33_spill] sm:$0xff] }
 0x70e   :  { %4693 = vmatpush1.bf16.msra.mxu0 %v7732_v31  ;;  %4757 = vmatpush1.bf16.msra.mxu1 %v7733_v59  ;;  %v7743_v31 = vld [vmem:[#allocation34_spill] sm:$0xff]  ;;  %v7744_v59 = vld [vmem:[#allocation35_spill] sm:$0xff] }
 0x70f   :  { %4695 = vmatprep.subr.bf16.mxu0 %v7734_v51  ;;  %4759 = vmatprep.subr.bf16.mxu1 %v7735_v53  ;;  %v7745_v51 = vld [vmem:[#allocation36_spill] sm:$0xff]  ;;  %v7746_v53 = vld [vmem:[#allocation37_spill] sm:$0xff] }
 0x712   :  { %4697 = vmatpush1.bf16.msra.mxu0 %v7736_v49  ;;  %4761 = vmatpush1.bf16.msra.mxu1 %v7737_v4  ;;  %v7747_v49 = vld [vmem:[#allocation38_spill] sm:$0xff]  ;;  %v7748_v4 = vld [vmem:[#allocation39_spill] sm:$0xff] }
 0x713   :  { %4699 = vmatprep.subr.bf16.mxu0 %v7738_v17  ;;  %4763 = vmatprep.subr.bf16.mxu1 %v7739_v55  ;;  %v7749_v17 = vld [vmem:[#allocation40_spill] sm:$0xff]  ;;  %v7750_v55 = vld [vmem:[#allocation41_spill] sm:$0xff] }
 0x716   :  { %4701 = vmatpush1.bf16.msra.mxu0 %v7740_v3  ;;  %4765 = vmatpush1.bf16.msra.mxu1 %v7741_v26  ;;  %v7751_v3 = vld [vmem:[#allocation42_spill] sm:$0xff]  ;;  %v7752_v26 = vld [vmem:[#allocation43_spill] sm:$0xff] }
 0x717   :  { %4703 = vmatprep.subr.bf16.mxu0 %v7742_v41  ;;  %4767 = vmatprep.subr.bf16.mxu1 %v7743_v31  ;;  %v7753_v41 = vld [vmem:[#allocation44_spill] sm:$0xff]  ;;  %v7754_v31 = vld [vmem:[#allocation45_spill] sm:$0xff] }
 0x71a   :  { %4705 = vmatpush1.bf16.msra.mxu0 %v7744_v59  ;;  %4769 = vmatpush1.bf16.msra.mxu1 %v7745_v51  ;;  %v7755_v59 = vld [vmem:[#allocation46_spill] sm:$0xff]  ;;  %v7756_v51 = vld [vmem:[#allocation47_spill] sm:$0xff] }
 0x71b   :  { %4707 = vmatprep.subr.bf16.mxu0 %v7746_v53  ;;  %4771 = vmatprep.subr.bf16.mxu1 %v7747_v49  ;;  %v7757_v53 = vld [vmem:[#allocation48_spill] sm:$0xff]  ;;  %v7758_v49 = vld [vmem:[#allocation49_spill] sm:$0xff] }
 0x71e   :  { %4709 = vmatpush1.bf16.msra.mxu0 %v7748_v4  ;;  %4773 = vmatpush1.bf16.msra.mxu1 %v7749_v17  ;;  %v7759_v4 = vld [vmem:[#allocation50_spill] sm:$0xff]  ;;  %v7760_v17 = vld [vmem:[#allocation51_spill] sm:$0xff] }
 0x71f   :  { %4711 = vmatprep.subr.bf16.mxu0 %v7750_v55  ;;  %4775 = vmatprep.subr.bf16.mxu1 %v7751_v3  ;;  %v7761_v55 = vld [vmem:[#allocation52_spill] sm:$0xff]  ;;  %v7762_v3 = vld [vmem:[#allocation53_spill] sm:$0xff] }
 0x722   :  { %4713 = vmatpush1.bf16.msra.mxu0 %v7752_v26  ;;  %4777 = vmatpush1.bf16.msra.mxu1 %v7753_v41  ;;  %v7763_v26 = vld [vmem:[#allocation54_spill] sm:$0xff]  ;;  %v7764_v41 = vld [vmem:[#allocation55_spill] sm:$0xff] }
 0x723   :  { %4715 = vmatprep.subr.bf16.mxu0 %v7754_v31  ;;  %4779 = vmatprep.subr.bf16.mxu1 %v7755_v59  ;;  %v7765_v31 = vld [vmem:[#allocation56_spill] sm:$0xff]  ;;  %v7766_v59 = vld [vmem:[#allocation57_spill] sm:$0xff] }
 0x726   :  { %4717 = vmatpush1.bf16.msra.mxu0 %v7756_v51  ;;  %4781 = vmatpush1.bf16.msra.mxu1 %v7757_v53  ;;  %v7767_v51 = vld [vmem:[#allocation58_spill] sm:$0xff]  ;;  %v7768_v53 = vld [vmem:[#allocation59_spill] sm:$0xff] }
 0x727   :  { %4719 = vmatprep.subr.bf16.mxu0 %v7758_v49  ;;  %4783 = vmatprep.subr.bf16.mxu1 %v7759_v4  ;;  %v7769_v49 = vld [vmem:[#allocation60_spill] sm:$0xff]  ;;  %v7770_v4 = vld [vmem:[#allocation3_spill] sm:$0xff] }
 0x72a   :  { %4721 = vmatpush1.bf16.msra.mxu0 %v7760_v17  ;;  %4785 = vmatpush1.bf16.msra.mxu1 %v7761_v55  ;;  %v7771_v17 = vld [vmem:[#allocation4_spill] sm:$0xff] }
 0x72b   :  { %4723 = vmatprep.subr.bf16.mxu0 %v7762_v3  ;;  %4787 = vmatprep.subr.bf16.mxu1 %v7763_v26 }
 0x72e   :  { %4725 = vmatpush1.bf16.msra.mxu0 %v7764_v41  ;;  %4789 = vmatpush1.bf16.msra.mxu1 %v7765_v31 }
 0x72f   :  { %4727 = vmatprep.subr.bf16.mxu0 %v7766_v59  ;;  %4791 = vmatprep.subr.bf16.mxu1 %v7767_v51  ;;  %v7773_v51 = vld [vmem:[#allocation66_spill] sm:$0xff] }
 0x732   :  { %4729 = vmatpush1.bf16.msra.mxu0 %v7768_v53  ;;  %4793 = vmatpush1.bf16.msra.mxu1 %v7769_v49 }
 0x733   :  { %4795 = vmatprep.subr.bf16.mxu0 %v7770_v4  ;;  %4827 = vmatprep.subr.bf16.mxu1 %v7771_v17 }
 0x7a8   :  { %v2552_v55 = vpop.f32.mrb[26].mxu0  ;;  %v2623_v3 = vpop.f32.mrb[26].mxu1 }
 0x7a9   :  { %v2553_v26 = vadd.f32 %v2552_v55, %v7772_v6  ;;  %v2554_v2 = vpop.f32.mrb[27].mxu0  ;;  %v2625_v41 = vpop.f32.mrb[27].mxu1  ;;  %v2624_v49 = vadd.f32 %v2623_v3, %v7533_v44 }
 0x7aa   :  { %v2555_v31 = vadd.f32 %v2554_v2, %v7531_v13  ;;  %v2626_v53 = vadd.f32 %v2625_v41, %v7773_v51 }
 0x7ab   :  { %v3422_v32 = vmul.f32 -1.442695, %v2553_v26 }
 0x7ac   :  { %v3423_v59 = vmul.f32 -1.442695, %v2555_v31  ;;  %v3424_v23 = vmul.f32 -1.442695, %v2626_v53 }
 0x7ad   :  { %5227 = vpow2.f32 %v3422_v32 }
 0x7ae   :  { %5229 = vpow2.f32 %v3423_v59 }
 0x7af   :  { %5231 = vpow2.f32 %v3424_v23 }
 0x7b0   :  { %5233 = vtanh.f32 %v2624_v49 }
 0x7b7   :  { %v5228_v4 = vpop.eup %5227 }
 0x7b8   :  { %v5230_v20 = vpop.eup %5229  ;;  %v2631_v17 = vadd.f32 1.0, %v5228_v4 }
 0x7b9   :  { %v2637_v30 = vadd.f32 1.0, %v5230_v20  ;;  %v5232_v55 = vpop.eup %5231 }
 0x7ba   :  { %5235 = vrcp.f32 %v2631_v17  ;;  %v5234_v6 = vpop.eup %5233  ;;  %v2644_v32 = vadd.f32 1.0, %v5232_v55 }
 0x7bb   :  { %5237 = vrcp.f32 %v2637_v30 }
 0x7bc   :  { %5239 = vrcp.f32 %v2644_v32 }
 0x7c4   :  { %v5236_v2 = vpop.eup %5235 }
 0x7c5   :  { %v5238_v26 = vpop.eup %5237  ;;  %v2648_v31 = vmul.f32 %v5236_v2, %v5234_v6 }
 0x7c6   :  { %v2647_v59 = vmul.f32 %v5238_v26, %v6944_v10  ;;  %v5240_v10 = vpop.eup %5239 }
 0x7c8   :  { %v2727_v41 = vpop.f32.mrb[12].mxu0  ;;  %v2798_v53 = vpop.f32.mrb[12].mxu1  ;;  %v7061_v51 = vadd.f32 %v2648_v31, %v2647_v59 }
 0x7c9   :  { %v4998_v3 = vadd.f32 %v2727_v41, %v7473_v45  ;;  %v2729_v23 = vpop.f32.mrb[13].mxu0  ;;  %v2800_v49 = vpop.f32.mrb[13].mxu1  ;;  %v5014_v2 = vadd.f32 %v2798_v53, %v6343_v21 }
 0x7ca   :  { %v4999_v20 = vadd.f32 %v2729_v23, %v7474_v16  ;;  %5241 = vtanh.f32 %v7061_v51  ;;  %v5015_v6 = vadd.f32 %v2800_v49, %v7475_v9 }
 0x7cb   :  { %v3426_v30 = vmul.f32 -1.442695, %v4998_v3 }
 0x7cc   :  { %v3427_v4 = vmul.f32 -1.442695, %v4999_v20  ;;  %v3428_v55 = vmul.f32 -1.442695, %v5015_v6 }
 0x7cd   :  { %5243 = vpow2.f32 %v3426_v30 }
 0x7ce   :  { %5245 = vpow2.f32 %v3427_v4 }
 0x7cf   :  { %5247 = vpow2.f32 %v3428_v55 }
 0x7d0   :  { %5249 = vtanh.f32 %v5014_v2  ;;  %v7814_v2 = vld [vmem:[#allocation45_spill] sm:$0xff] }
 0x7d4   :  { %v5242_v17 = vpop.eup %5241 }
 0x7d5   :  { %v2651_v26 = vmul.f32 %v5242_v17, %v5240_v10 }
 0x7d7   :  { %v5244_v31 = vpop.eup %5243  ;;  %3425 = vst [vmem:[%s7215_s8 + $0x28] sm:$0xff] %v2651_v26  ;;  %2895 = vmatprep.mubr.f32.mxu0 %v2651_v26  ;;  %2966 = vmatprep.mubr.f32.mxu1 %v2651_v26  ;;  %v7815_v26 = vld [vmem:[#allocation46_spill] sm:$0xff] }
 0x7d8   :  { %v5246_v32 = vpop.eup %5245  ;;  %v2810_v59 = vadd.f32 1.0, %v5244_v31  ;;  %v7816_v31 = vld [vmem:[#allocation47_spill] sm:$0xff] }
 0x7d9   :  { %v2816_v41 = vadd.f32 1.0, %v5246_v32  ;;  %v5248_v3 = vpop.eup %5247  ;;  %v7817_v32 = vld [vmem:[#allocation48_spill] sm:$0xff] }
 0x7da   :  { %5251 = vrcp.f32 %v2810_v59  ;;  %v5250_v23 = vpop.eup %5249  ;;  %v2823_v30 = vadd.f32 1.0, %v5248_v3  ;;  %v7818_v59 = vld [vmem:[#allocation49_spill] sm:$0xff]  ;;  %v7820_v3 = vld [vmem:[#allocation51_spill] sm:$0xff] }
 0x7db   :  { %5253 = vrcp.f32 %v2816_v41  ;;  %v7819_v41 = vld [vmem:[#allocation50_spill] sm:$0xff] }
 0x7dc   :  { %5255 = vrcp.f32 %v2823_v30  ;;  %v7825_v30 = vld [vmem:[#allocation56_spill] sm:$0xff] }
 0x7e4   :  { %v5252_v49 = vpop.eup %5251 }
 0x7e5   :  { %v5254_v20 = vpop.eup %5253  ;;  %v2827_v53 = vmul.f32 %v5252_v49, %v5250_v23  ;;  %v7821_v23 = vld [vmem:[#allocation52_spill] sm:$0xff]  ;;  %v7822_v49 = vld [vmem:[#allocation53_spill] sm:$0xff] }
 0x7e6   :  { %v2826_v4 = vmul.f32 %v5254_v20, %v6955_v57  ;;  %v5256_v10 = vpop.eup %5255  ;;  %v7813_v57 = vld [vmem:[#allocation44_spill] sm:$0xff]  ;;  %v7823_v20 = vld [vmem:[#allocation54_spill] sm:$0xff] }
 0x7e8   :  { %v7072_v6 = vadd.f32 %v2827_v53, %v2826_v4  ;;  %v7824_v53 = vld [vmem:[#allocation55_spill] sm:$0xff]  ;;  %v7826_v4 = vld [vmem:[#allocation57_spill] sm:$0xff] }
 0x7ea   :  { %5257 = vtanh.f32 %v7072_v6 }
 0x7f4   :  { %v5258_v17 = vpop.eup %5257 }
 0x7f5   :  { %v2830_v55 = vmul.f32 %v5258_v17, %v5256_v10  ;;  %v7827_v10 = vld [vmem:[#allocation58_spill] sm:$0xff]  ;;  %v7828_v17 = vld [vmem:[#allocation59_spill] sm:$0xff] }
 0x7f7   :  { %2896 = vmatmul.mubr.f32.vlgmr.msra.gmra.mrb[28].mxu0 %v2830_v55  ;;  %2967 = vmatmul.mubr.f32.vlgmr.msra.gmra.mrb[28].mxu1 %v2830_v55 }
 0x7f8   :  { %4797 = vmatpush1.bf16.msra.mxu0 %v5414_v22  ;;  %4829 = vmatpush1.bf16.msra.mxu1 %v5423_v25  ;;  %v7774_v22 = vld [vmem:[#allocation5_spill] sm:$0xff]  ;;  %v7775_v25 = vld [vmem:[#allocation6_spill] sm:$0xff] }
 0x7f9   :  { %4799 = vmatprep.subr.bf16.mxu0 %v5436_v29  ;;  %4831 = vmatprep.subr.bf16.mxu1 %v5452_v34  ;;  %v7776_v29 = vld [vmem:[#allocation7_spill] sm:$0xff]  ;;  %v7777_v34 = vld [vmem:[#allocation8_spill] sm:$0xff] }
 0x7fa   :  { %3070 = vmatprep.mubr.f32.mxu0 %v7415_v14  ;;  %3141 = vmatprep.mubr.f32.mxu1 %v7415_v14  ;;  %v7812_v14 = vld [vmem:[#allocation43_spill] sm:$0xff] }
 0x7fc   :  { %4801 = vmatpush1.bf16.msra.mxu0 %v5454_v35  ;;  %4833 = vmatpush1.bf16.msra.mxu1 %v5464_v38  ;;  %v7778_v35 = vld [vmem:[#allocation9_spill] sm:$0xff]  ;;  %v7779_v38 = vld [vmem:[#allocation10_spill] sm:$0xff] }
 0x7fd   :  { %4803 = vmatprep.subr.bf16.mxu0 %v5477_v42  ;;  %4835 = vmatprep.subr.bf16.mxu1 %v5493_v47  ;;  %v7780_v42 = vld [vmem:[#allocation11_spill] sm:$0xff]  ;;  %v7781_v47 = vld [vmem:[#allocation12_spill] sm:$0xff] }
 0x800   :  { %4805 = vmatpush1.bf16.msra.mxu0 %v5503_v50  ;;  %4837 = vmatpush1.bf16.msra.mxu1 %v5516_v54  ;;  %v7782_v50 = vld [vmem:[#allocation13_spill] sm:$0xff]  ;;  %v7783_v54 = vld [vmem:[#allocation14_spill] sm:$0xff] }
 0x801   :  { %4807 = vmatprep.subr.bf16.mxu0 %v5529_v58  ;;  %4839 = vmatprep.subr.bf16.mxu1 %v5539_v61  ;;  %v7784_v58 = vld [vmem:[#allocation15_spill] sm:$0xff]  ;;  %v7785_v61 = vld [vmem:[#allocation16_spill] sm:$0xff] }
 0x804   :  { %4809 = vmatpush1.bf16.msra.mxu0 %v5552_v1  ;;  %4841 = vmatpush1.bf16.msra.mxu1 %v5562_v5  ;;  %v7786_v1 = vld [vmem:[#allocation17_spill] sm:$0xff]  ;;  %v7787_v5 = vld [vmem:[#allocation18_spill] sm:$0xff] }
 0x805   :  { %4811 = vmatprep.subr.bf16.mxu0 %v5572_v8  ;;  %4843 = vmatprep.subr.bf16.mxu1 %v5582_v11  ;;  %v7788_v8 = vld [vmem:[#allocation19_spill] sm:$0xff]  ;;  %v7789_v11 = vld [vmem:[#allocation20_spill] sm:$0xff] }
 0x808   :  { %4813 = vmatpush1.bf16.msra.mxu0 %v5595_v15  ;;  %4845 = vmatpush1.bf16.msra.mxu1 %v5605_v19  ;;  %v7790_v15 = vld [vmem:[#allocation21_spill] sm:$0xff]  ;;  %v7791_v19 = vld [vmem:[#allocation22_spill] sm:$0xff] }
 0x809   :  { %4815 = vmatprep.subr.bf16.mxu0 %v5615_v24  ;;  %4847 = vmatprep.subr.bf16.mxu1 %v5625_v28  ;;  %v7792_v24 = vld [vmem:[#allocation23_spill] sm:$0xff]  ;;  %v7793_v28 = vld [vmem:[#allocation24_spill] sm:$0xff] }
 0x80c   :  { %4817 = vmatpush1.bf16.msra.mxu0 %v5638_v33  ;;  %4849 = vmatpush1.bf16.msra.mxu1 %v5648_v39  ;;  %v7794_v33 = vld [vmem:[#allocation25_spill] sm:$0xff]  ;;  %v7795_v39 = vld [vmem:[#allocation26_spill] sm:$0xff] }
 0x80d   :  { %4819 = vmatprep.subr.bf16.mxu0 %v5658_v43  ;;  %4851 = vmatprep.subr.bf16.mxu1 %v5668_v46  ;;  %v7796_v43 = vld [vmem:[#allocation27_spill] sm:$0xff]  ;;  %v7797_v46 = vld [vmem:[#allocation28_spill] sm:$0xff] }
 0x810   :  { %4821 = vmatpush1.bf16.msra.mxu0 %v5681_v52  ;;  %4853 = vmatpush1.bf16.msra.mxu1 %v5691_v56  ;;  %v7798_v52 = vld [vmem:[#allocation29_spill] sm:$0xff]  ;;  %v7799_v56 = vld [vmem:[#allocation30_spill] sm:$0xff] }
 0x811   :  { %4823 = vmatprep.subr.bf16.mxu0 %v5701_v60  ;;  %4855 = vmatprep.subr.bf16.mxu1 %v5711_v0  ;;  %v7800_v60 = vld [vmem:[#allocation31_spill] sm:$0xff]  ;;  %v7801_v0 = vld [vmem:[#allocation32_spill] sm:$0xff] }
 0x814   :  { %4825 = vmatpush1.bf16.msra.mxu0 %v5724_v7  ;;  %4857 = vmatpush1.bf16.msra.mxu1 %v5734_v12  ;;  %v7802_v7 = vld [vmem:[#allocation33_spill] sm:$0xff]  ;;  %v7803_v12 = vld [vmem:[#allocation34_spill] sm:$0xff] }
 0x815   :  { %4859 = vmatprep.subr.bf16.mxu0 %v5747_v18  ;;  %4923 = vmatprep.subr.bf16.mxu1 %v5760_v27  ;;  %v7804_v18 = vld [vmem:[#allocation35_spill] sm:$0xff]  ;;  %v7805_v27 = vld [vmem:[#allocation36_spill] sm:$0xff] }
 0x817   :  { %3071 = vmatmul.mubr.f32.vlgmr.msra.gmra.mrb[14].mxu0 %v2830_v55  ;;  %3142 = vmatmul.mubr.f32.vlgmr.msra.gmra.mrb[14].mxu1 %v2830_v55  ;;  %v7829_v55 = vld [vmem:[#allocation60_spill] sm:$0xff] }
 0x818   :  { %4861 = vmatpush1.bf16.msra.mxu0 %v5773_v36  ;;  %4925 = vmatpush1.bf16.msra.mxu1 %v5777_v37  ;;  %v7806_v36 = vld [vmem:[#allocation37_spill] sm:$0xff]  ;;  %v7807_v37 = vld [vmem:[#allocation38_spill] sm:$0xff] }
 0x819   :  { %4863 = vmatprep.subr.bf16.mxu0 %v5779_v40  ;;  %4927 = vmatprep.subr.bf16.mxu1 %v5792_v48  ;;  %v7808_v40 = vld [vmem:[#allocation39_spill] sm:$0xff]  ;;  %v7809_v48 = vld [vmem:[#allocation40_spill] sm:$0xff] }
 0x81c   :  { %4865 = vmatpush1.bf16.msra.mxu0 %v5814_v62  ;;  %4929 = vmatpush1.bf16.msra.mxu1 %v5818_v63  ;;  %v7810_v62 = vld [vmem:[#allocation41_spill] sm:$0xff]  ;;  %v7811_v63 = vld [vmem:[#allocation42_spill] sm:$0xff] }
 0x81d   :  { %4867 = vmatprep.subr.bf16.mxu0 %v7774_v22  ;;  %4931 = vmatprep.subr.bf16.mxu1 %v7775_v25 }
 0x820   :  { %4869 = vmatpush1.bf16.msra.mxu0 %v7776_v29  ;;  %4933 = vmatpush1.bf16.msra.mxu1 %v7777_v34  ;;  %v7830_v29 = vld [vmem:[#allocation64_spill] sm:$0xff] }
 0x821   :  { %4871 = vmatprep.subr.bf16.mxu0 %v7778_v35  ;;  %4935 = vmatprep.subr.bf16.mxu1 %v7779_v38 }
 0x824   :  { %4873 = vmatpush1.bf16.msra.mxu0 %v7780_v42  ;;  %4937 = vmatpush1.bf16.msra.mxu1 %v7781_v47 }
 0x825   :  { %4875 = vmatprep.subr.bf16.mxu0 %v7782_v50  ;;  %4939 = vmatprep.subr.bf16.mxu1 %v7783_v54  ;;  %v7831_v54 = vld [vmem:[#allocation66_spill] sm:$0xff] }
 0x828   :  { %4877 = vmatpush1.bf16.msra.mxu0 %v7784_v58  ;;  %4941 = vmatpush1.bf16.msra.mxu1 %v7785_v61 }
 0x829   :  { %4879 = vmatprep.subr.bf16.mxu0 %v7786_v1  ;;  %4943 = vmatprep.subr.bf16.mxu1 %v7787_v5 }
 0x82c   :  { %4881 = vmatpush1.bf16.msra.mxu0 %v7788_v8  ;;  %4945 = vmatpush1.bf16.msra.mxu1 %v7789_v11 }
 0x82d   :  { %4883 = vmatprep.subr.bf16.mxu0 %v7790_v15  ;;  %4947 = vmatprep.subr.bf16.mxu1 %v7791_v19 }
 0x830   :  { %4885 = vmatpush1.bf16.msra.mxu0 %v7792_v24  ;;  %4949 = vmatpush1.bf16.msra.mxu1 %v7793_v28 }
 0x831   :  { %4887 = vmatprep.subr.bf16.mxu0 %v7794_v33  ;;  %4951 = vmatprep.subr.bf16.mxu1 %v7795_v39 }
 0x834   :  { %4889 = vmatpush1.bf16.msra.mxu0 %v7796_v43  ;;  %4953 = vmatpush1.bf16.msra.mxu1 %v7797_v46 }
 0x835   :  { %4891 = vmatprep.subr.bf16.mxu0 %v7798_v52  ;;  %4955 = vmatprep.subr.bf16.mxu1 %v7799_v56 }
 0x838   :  { %4893 = vmatpush1.bf16.msra.mxu0 %v7800_v60  ;;  %4957 = vmatpush1.bf16.msra.mxu1 %v7801_v0 }
 0x839   :  { %4895 = vmatprep.subr.bf16.mxu0 %v7802_v7  ;;  %4959 = vmatprep.subr.bf16.mxu1 %v7803_v12 }
 0x83c   :  { %4897 = vmatpush1.bf16.msra.mxu0 %v7804_v18  ;;  %4961 = vmatpush1.bf16.msra.mxu1 %v7805_v27 }
 0x83d   :  { %4899 = vmatprep.subr.bf16.mxu0 %v7806_v36  ;;  %4963 = vmatprep.subr.bf16.mxu1 %v7807_v37 }
 0x840   :  { %4901 = vmatpush1.bf16.msra.mxu0 %v7808_v40  ;;  %4965 = vmatpush1.bf16.msra.mxu1 %v7809_v48 }
 0x841   :  { %4903 = vmatprep.subr.bf16.mxu0 %v7810_v62  ;;  %4967 = vmatprep.subr.bf16.mxu1 %v7811_v63 }
 0x844   :  { %4905 = vmatpush1.bf16.msra.mxu0 %v7812_v14  ;;  %4969 = vmatpush1.bf16.msra.mxu1 %v7813_v57 }
 0x845   :  { %4907 = vmatprep.subr.bf16.mxu0 %v7814_v2  ;;  %4971 = vmatprep.subr.bf16.mxu1 %v7815_v26 }
 0x848   :  { %4909 = vmatpush1.bf16.msra.mxu0 %v7816_v31  ;;  %4973 = vmatpush1.bf16.msra.mxu1 %v7817_v32 }
 0x849   :  { %4911 = vmatprep.subr.bf16.mxu0 %v7818_v59  ;;  %4975 = vmatprep.subr.bf16.mxu1 %v7819_v41 }
 0x84c   :  { %4913 = vmatpush1.bf16.msra.mxu0 %v7820_v3  ;;  %4977 = vmatpush1.bf16.msra.mxu1 %v7821_v23 }
 0x84d   :  { %4915 = vmatprep.subr.bf16.mxu0 %v7822_v49  ;;  %4979 = vmatprep.subr.bf16.mxu1 %v7823_v20 }
 0x850   :  { %4917 = vmatpush1.bf16.msra.mxu0 %v7824_v53  ;;  %4981 = vmatpush1.bf16.msra.mxu1 %v7825_v30 }
 0x851   :  { %4919 = vmatprep.subr.bf16.mxu0 %v7826_v4  ;;  %4983 = vmatprep.subr.bf16.mxu1 %v7827_v10 }
 0x854   :  { %4921 = vmatpush1.bf16.msra.mxu0 %v7828_v17  ;;  %4985 = vmatpush1.bf16.msra.mxu1 %v7829_v55 }
 0x8ca   :  { %v2897_v22 = vpop.f32.mrb[28].mxu0  ;;  %v2968_v25 = vpop.f32.mrb[28].mxu1 }
 0x8cb   :  { %v2898_v34 = vadd.f32 %v2897_v22, %v7830_v29  ;;  %v2899_v35 = vpop.f32.mrb[29].mxu0  ;;  %v2970_v38 = vpop.f32.mrb[29].mxu1  ;;  %v2969_v1 = vadd.f32 %v2968_v25, %v7533_v44 }
 0x8cc   :  { %v2900_v42 = vadd.f32 %v2899_v35, %v7531_v13  ;;  %v2971_v58 = vadd.f32 %v2970_v38, %v7831_v54 }
 0x8cd   :  { %v3429_v47 = vmul.f32 -1.442695, %v2898_v34 }
 0x8ce   :  { %v3430_v50 = vmul.f32 -1.442695, %v2900_v42  ;;  %v3431_v61 = vmul.f32 -1.442695, %v2971_v58 }
 0x8cf   :  { %5259 = vpow2.f32 %v3429_v47 }
 0x8d0   :  { %5261 = vpow2.f32 %v3430_v50 }
 0x8d1   :  { %5263 = vpow2.f32 %v3431_v61 }
 0x8d2   :  { %5265 = vtanh.f32 %v2969_v1 }
 0x8d9   :  { %v5260_v5 = vpop.eup %5259 }
 0x8da   :  { %v5262_v8 = vpop.eup %5261  ;;  %v2976_v11 = vadd.f32 1.0, %v5260_v5 }
 0x8db   :  { %v2982_v15 = vadd.f32 1.0, %v5262_v8  ;;  %v5264_v19 = vpop.eup %5263 }
 0x8dc   :  { %5267 = vrcp.f32 %v2976_v11  ;;  %v5266_v24 = vpop.eup %5265  ;;  %v2989_v43 = vadd.f32 1.0, %v5264_v19 }
 0x8dd   :  { %5269 = vrcp.f32 %v2982_v15 }
 0x8de   :  { %5271 = vrcp.f32 %v2989_v43 }
 0x8e6   :  { %v5268_v28 = vpop.eup %5267 }
 0x8e7   :  { %v5270_v33 = vpop.eup %5269  ;;  %v2993_v39 = vmul.f32 %v5268_v28, %v5266_v24 }
 0x8e8   :  { %v2992_v46 = vmul.f32 %v5270_v33, %v7061_v51  ;;  %v5272_v51 = vpop.eup %5271 }
 0x8ea   :  { %v3072_v52 = vpop.f32.mrb[14].mxu0  ;;  %v3143_v56 = vpop.f32.mrb[14].mxu1  ;;  %v7176_v60 = vadd.f32 %v2993_v39, %v2992_v46 }
 0x8eb   :  { %v5000_v0 = vadd.f32 %v3072_v52, %v7473_v45  ;;  %v3074_v7 = vpop.f32.mrb[15].mxu0  ;;  %v3145_v12 = vpop.f32.mrb[15].mxu1  ;;  %v5016_v62 = vadd.f32 %v3143_v56, %v6343_v21 }
 0x8ec   :  { %v5001_v18 = vadd.f32 %v3074_v7, %v7474_v16  ;;  %5273 = vtanh.f32 %v7176_v60  ;;  %v5017_v37 = vadd.f32 %v3145_v12, %v7475_v9 }
 0x8ed   :  { %v3433_v27 = vmul.f32 -1.442695, %v5000_v0 }
 0x8ee   :  { %v3434_v36 = vmul.f32 -1.442695, %v5001_v18  ;;  %v3435_v48 = vmul.f32 -1.442695, %v5017_v37 }
 0x8ef   :  { %5275 = vpow2.f32 %v3433_v27 }
 0x8f0   :  { %5277 = vpow2.f32 %v3434_v36 }
 0x8f1   :  { %5279 = vpow2.f32 %v3435_v48 }
 0x8f2   :  { %5281 = vtanh.f32 %v5016_v62 }
 0x8f6   :  { %v5274_v40 = vpop.eup %5273 }
 0x8f7   :  { %v2996_v63 = vmul.f32 %v5274_v40, %v5272_v51 }
 0x8f9   :  { %v5276_v14 = vpop.eup %5275  ;;  %3432 = vst [vmem:[%s7215_s8 + $0x30] sm:$0xff] %v2996_v63  ;;  %3240 = vmatprep.mubr.f32.mxu0 %v2996_v63  ;;  %3311 = vmatprep.mubr.f32.mxu1 %v2996_v63 }
 0x8fa   :  { %v5278_v45 = vpop.eup %5277  ;;  %v3155_v16 = vadd.f32 1.0, %v5276_v14 }
 0x8fb   :  { %v3161_v57 = vadd.f32 1.0, %v5278_v45  ;;  %v5280_v9 = vpop.eup %5279 }
 0x8fc   :  { %5283 = vrcp.f32 %v3155_v16  ;;  %v5282_v2 = vpop.eup %5281  ;;  %v3168_v32 = vadd.f32 1.0, %v5280_v9 }
 0x8fd   :  { %5285 = vrcp.f32 %v3161_v57 }
 0x8fe   :  { %5287 = vrcp.f32 %v3168_v32 }
 0x906   :  { %v5284_v26 = vpop.eup %5283 }
 0x907   :  { %v5286_v31 = vpop.eup %5285  ;;  %v3172_v21 = vmul.f32 %v5284_v26, %v5282_v2 }
 0x908   :  { %v3171_v59 = vmul.f32 %v5286_v31, %v7072_v6  ;;  %v5288_v3 = vpop.eup %5287 }
 0x90a   :  { %v3173_v41 = vadd.f32 %v3172_v21, %v3171_v59 }
 0x90c   :  { %3346 = vst [vmem:[%s7216_s10] sm:$0xff] %v3173_v41  ;;  %5289 = vtanh.f32 %v3173_v41 }
 0x916   :  { %v5290_v23 = vpop.eup %5289 }
 0x917   :  { %v3175_v49 = vmul.f32 %v5290_v23, %v5288_v3 }
 0x919   :  { %3241 = vmatmul.mubr.f32.vlgmr.msra.gmra.mrb[30].mxu0 %v3175_v49  ;;  %3344 = vst [vmem:[%s7217_s9] sm:$0xff] %v3175_v49  ;;  %3312 = vmatmul.mubr.f32.vlgmr.msra.gmra.mrb[30].mxu1 %v3175_v49 }
 0x9ec   :  { %v3242_v20 = vpop.f32.mrb[30].mxu0  ;;  %v3313_v53 = vpop.f32.mrb[30].mxu1 }
 0x9ed   :  { %v3243_v6 = vadd.f32 %v3242_v20, %v7830_v29  ;;  %v3244_v30 = vpop.f32.mrb[31].mxu0  ;;  %v3315_v4 = vpop.f32.mrb[31].mxu1  ;;  %v3314_v34 = vadd.f32 %v3313_v53, %v7533_v44 }
 0x9ee   :  { %v3245_v10 = vadd.f32 %v3244_v30, %v7531_v13  ;;  %v3316_v22 = vadd.f32 %v3315_v4, %v7831_v54 }
 0x9ef   :  { %v3436_v17 = vmul.f32 -1.442695, %v3243_v6 }
 0x9f0   :  { %v3437_v55 = vmul.f32 -1.442695, %v3245_v10  ;;  %v3438_v25 = vmul.f32 -1.442695, %v3316_v22 }
 0x9f1   :  { %5291 = vpow2.f32 %v3436_v17 }
 0x9f2   :  { %5293 = vpow2.f32 %v3437_v55 }
 0x9f3   :  { %5295 = vpow2.f32 %v3438_v25 }
 0x9f4   :  { %5297 = vtanh.f32 %v3314_v34 }
 0x9fb   :  { %v5292_v35 = vpop.eup %5291 }
 0x9fc   :  { %v5294_v38 = vpop.eup %5293  ;;  %v3321_v42 = vadd.f32 1.0, %v5292_v35 }
 0x9fd   :  { %v3327_v47 = vadd.f32 1.0, %v5294_v38  ;;  %v5296_v29 = vpop.eup %5295 }
 0x9fe   :  { %5299 = vrcp.f32 %v3321_v42  ;;  %v5298_v50 = vpop.eup %5297  ;;  %v3334_v1 = vadd.f32 1.0, %v5296_v29 }
 0x9ff   :  { %5301 = vrcp.f32 %v3327_v47 }
 0xa00   :  { %5303 = vrcp.f32 %v3334_v1 }
 0xa08   :  { %v5300_v13 = vpop.eup %5299 }
 0xa09   :  { %v5302_v58 = vpop.eup %5301  ;;  %v3338_v61 = vmul.f32 %v5300_v13, %v5298_v50 }
 0xa0a   :  { %v3337_v5 = vmul.f32 %v5302_v58, %v7176_v60  ;;  %v5304_v44 = vpop.eup %5303 }
 0xa0c   :  { %v3339_v54 = vadd.f32 %v3338_v61, %v3337_v5 }
 0xa0e   :  { %5305 = vtanh.f32 %v3339_v54  ;;  %3441 = vst [vmem:[%s7216_s10 + $0x8] sm:$0xff] %v3339_v54 }
 0xa18   :  { %v5306_v8 = vpop.eup %5305 }
 0xa19   :  { %v3341_v11 = vmul.f32 %v5306_v8, %v5304_v44 }
 0xa1b   :  { %3439 = vst [vmem:[%s7215_s8 + $0x38] sm:$0xff] %v3341_v11  ;;  %3440 = vst [vmem:[%s7217_s9 + $0x8] sm:$0xff] %v3341_v11 }

</bundles_post_ra>
